<compile_context>
chip_gen: v7x
topology: tpu7x:2x2x1
jax: 0.10.0
libtpu: 0.0.40
codegen_flags: <defaults>
</compile_context>

<pallas_src>
import jax
import jax.numpy as jnp
from jax import lax
from jax.experimental import pallas as pl
from jax.experimental.pallas import tpu as pltpu

BN_EPS = 1e-5
_TAPS = tuple((dy, dx) for dy in range(3) for dx in range(3))   # t = dy*3 + dx


# ---------------------------------------------------------------------------
# Fused kernel: (optional 2x2 max-pool) -> conv3x3+BN+ReLU -> conv3x3+BN+ReLU
# ---------------------------------------------------------------------------
def _make_down_kernel(bb, hp, wp, cin, cout, do_pool):
    """Build the fused kernel processing `bb` batch elements per grid step.

    Refs:
      x_ref : (bb, hp, 2, wp, 2*cin) bf16 if do_pool else (bb, hp, wp, cin) bf16
      w1_ref: (9, cin, cout)  bf16   per-tap weights (tap t = dy*3 + dx), BN folded
      b1_ref: (1, cout)       f32    conv bias with BN folded in
      w2_ref: (9, cout, cout) bf16
      b2_ref: (1, cout)       f32
      o_ref : (bb, hp, wp, cout)
    Scratch (VMEM, bf16):
      xpad  : (bb, hp+2, wp+2, cin)   zero-halo'd (pooled) input
      ypad  : (bb, hp+2, wp+2, cout)  zero-halo'd conv1 output
    """
    m_rows = bb * hp * wp

    def conv3x3_bias_relu(pad_ref, w_ref, b_ref, k):
        # 9 accumulated per-tap matmuls; only one (M, k) window is live at a
        # time (no 9x im2col slab, no lane concat).  bf16 x bf16 -> f32 acc.
        acc = None
        for t, (dy, dx) in enumerate(_TAPS):
            win = pad_ref[:, dy:dy + hp, dx:dx + wp, :].reshape(m_rows, k)
            part = jnp.dot(win, w_ref[t], preferred_element_type=jnp.float32)
            acc = part if acc is None else acc + part
        y = jnp.maximum(acc + b_ref[...], 0.0)        # f32 bias + ReLU epilogue
        return y.reshape(bb, hp, wp, cout)

    def kernel(x_ref, w1_ref, b1_ref, w2_ref, b2_ref, o_ref, xpad, ypad):
        # Zero only the 1-pixel halo strips; the interior is fully overwritten
        # below.  Done every step (NOT gated on program_id): under "parallel"
        # megacore sharding each TensorCore owns its own scratch copy.
        for pad, c in ((xpad, cin), (ypad, cout)):
            row = jnp.zeros((bb, 1, wp + 2, c), pad.dtype)
            col = jnp.zeros((bb, hp + 2, 1, c), pad.dtype)
            pad[:, 0:1, :, :] = row
            pad[:, hp + 1:hp + 2, :, :] = row
            pad[:, :, 0:1, :] = col
            pad[:, :, wp + 1:wp + 2, :] = col

        if do_pool:
            # 2x2 stride-2 max pool, entirely in VMEM / VPU.  The wrapper
            # reshaped the input so both pool taps are plain unstrided slices.
            mrow = jnp.maximum(x_ref[:, :, 0, :, :], x_ref[:, :, 1, :, :])
            pooled = jnp.maximum(mrow[..., :cin], mrow[..., cin:])  # (bb,hp,wp,cin)
        else:
            pooled = x_ref[...]

        xpad[:, 1:hp + 1, 1:wp + 1, :] = pooled.astype(xpad.dtype)
        y1 = conv3x3_bias_relu(xpad, w1_ref, b1_ref, cin)        # (bb,hp,wp,cout)
        ypad[:, 1:hp + 1, 1:wp + 1, :] = y1.astype(ypad.dtype)
        y2 = conv3x3_bias_relu(ypad, w2_ref, b2_ref, cout)
        o_ref[...] = y2.astype(o_ref.dtype)

    return kernel


# ---------------------------------------------------------------------------
# BN folding + wrappers
# ---------------------------------------------------------------------------
def fold_bn(p):
    """Fold eval-mode BatchNorm into the preceding conv -> (w_hwio_eff, bias_eff)."""
    scale = p["gamma"] / jnp.sqrt(p["var"] + BN_EPS)
    w_hwio = jnp.transpose(p["w"], (2, 3, 1, 0))                 # OIHW -> HWIO
    w_eff = w_hwio * scale[None, None, None, :]
    b_eff = (p["b"] - p["mean"]) * scale + p["beta"]
    return w_eff, b_eff


def down_forward_nhwc(x_nhwc, layer1, layer2, do_pool=True,
                      out_dtype=jnp.bfloat16, batch_block=None):
    """NHWC, bf16-activation core (no layout transposes around the kernel)."""
    n, h, w, cin = x_nhwc.shape
    cout = layer1["w"].shape[0]
    x = x_nhwc.astype(jnp.bfloat16)              # bf16 activations end-to-end

    if do_pool:
        hp, wp = h // 2, w // 2
        x = x[:, :2 * hp, :2 * wp, :]            # PyTorch MaxPool2d floors odd sizes
        # Free contiguous reshape: exposes the 2x2 pool taps as separate dims
        # (H tap -> dim 2, W tap -> low/high half of the last dim).
        x_in = x.reshape(n, hp, 2, wp, 2 * cin)
    else:
        hp, wp = h, w
        x_in = x

    # Fold the whole batch into one grid step (bigger matmul M, amortises the
    # ~0.35 us per-step overhead) while the per-step footprint is small;
    # otherwise one image per "parallel" grid step (megacore-shardable).
    if batch_block is None:
        per_img = ((hp + 2) * (wp + 2) * (cin + cout) * 2          # scratch (bf16)
                   + 2 * hp * wp * (4 * cin + cout) * 2)           # dbl-buffered I/O
        batch_block = n if n * per_img <= 8 * 2**20 else 1
    bb = batch_block
    assert n % bb == 0, (n, bb)
    grid = (n // bb,)

    w1, b1 = fold_bn(layer1)
    w2, b2 = fold_bn(layer2)
    # Per-tap weight layout (9, Cin, Cout), tap t = dy*3 + dx; bf16 for the MXU.
    w1r = w1.reshape(9, cin, cout).astype(jnp.bfloat16)
    w2r = w2.reshape(9, cout, cout).astype(jnp.bfloat16)
    b1r = b1.reshape(1, cout).astype(jnp.float32)
    b2r = b2.reshape(1, cout).astype(jnp.float32)

    if do_pool:
        in_spec = pl.BlockSpec((bb, hp, 2, wp, 2 * cin),
                               lambda i: (i, 0, 0, 0, 0))
    else:
        in_spec = pl.BlockSpec((bb, hp, wp, cin), lambda i: (i, 0, 0, 0))

    # VMEM budget derived from the footprint (not hard-coded), with headroom
    # for relayout temporaries; clamped to stay inside any generation's VMEM.
    scratch_bytes = bb * (hp + 2) * (wp + 2) * (cin + cout) * 2
    io_bytes = 2 * bb * hp * wp * ((4 * cin if do_pool else cin) * 2
                                   + cout * jnp.dtype(out_dtype).itemsize)
    vmem_limit = int(min(100 * 2**20,
                         max(8 * 2**20, 4 * (scratch_bytes + io_bytes))))

    out_nhwc = pl.pallas_call(
        _make_down_kernel(bb, hp, wp, cin, cout, do_pool),
        out_shape=jax.ShapeDtypeStruct((n, hp, wp, cout), out_dtype),
        grid=grid,
        in_specs=[
            in_spec,
            pl.BlockSpec((9, cin, cout), lambda i: (0, 0, 0)),
            pl.BlockSpec((1, cout), lambda i: (0, 0)),
            pl.BlockSpec((9, cout, cout), lambda i: (0, 0, 0)),
            pl.BlockSpec((1, cout), lambda i: (0, 0)),
        ],
        out_specs=pl.BlockSpec((bb, hp, wp, cout), lambda i: (i, 0, 0, 0)),
        scratch_shapes=[
            pltpu.VMEM((bb, hp + 2, wp + 2, cin), jnp.bfloat16),
            pltpu.VMEM((bb, hp + 2, wp + 2, cout), jnp.bfloat16),
        ],
        compiler_params=pltpu.CompilerParams(
            dimension_semantics=("parallel",),       # batch-block axis over 2 TCs on v7x
            vmem_limit_bytes=vmem_limit),
    )(x_in, w1r, b1r, w2r, b2r)

    return out_nhwc


def down_forward(x_nchw, layer1, layer2, do_pool=True, out_dtype=jnp.bfloat16):
    """PyTorch-layout (NCHW) entry point for parity with `Down.forward`.
    A real NHWC / bf16 UNet should call `down_forward_nhwc` directly and skip
    both transposes (they stream the full activation through HBM)."""
    x = jnp.transpose(x_nchw, (0, 2, 3, 1))                      # NCHW -> NHWC
    y = down_forward_nhwc(x, layer1, layer2, do_pool=do_pool, out_dtype=out_dtype)
    return jnp.transpose(y, (0, 3, 1, 2))                        # NHWC -> NCHW


# ---------------------------------------------------------------------------
# Deterministic parameter setup
# ---------------------------------------------------------------------------
def init_conv_bn(key, cin, cout):
    k = jax.random.split(key, 6)
    return dict(
        w=jax.random.normal(k[0], (cout, cin, 3, 3), jnp.float32) * 0.1,
        b=jax.random.normal(k[1], (cout,), jnp.float32) * 0.1,
        gamma=1.0 + 0.1 * jax.random.normal(k[2], (cout,), jnp.float32),
        beta=0.1 * jax.random.normal(k[3], (cout,), jnp.float32),
        mean=0.1 * jax.random.normal(k[4], (cout,), jnp.float32),
        var=0.5 + jnp.abs(jax.random.normal(k[5], (cout,), jnp.float32)) * 0.5,
    )


# ---------------------------------------------------------------------------
# Pure-JAX references for correctness
# ---------------------------------------------------------------------------
def _pool_ref(x_nhwc):
    n, h, w, c = x_nhwc.shape
    hp, wp = h // 2, w // 2
    return x_nhwc[:, :2 * hp, :2 * wp, :].reshape(n, hp, 2, wp, 2, c).max(axis=(2, 4))


def _ref_conv_bn_relu(x_nhwc, p):
    w_hwio = jnp.transpose(p["w"], (2, 3, 1, 0))
    y = lax.conv_general_dilated(
        x_nhwc, w_hwio, window_strides=(1, 1), padding="SAME",
        dimension_numbers=("NHWC", "HWIO", "NHWC")) + p["b"]
    y = (y - p["mean"]) / jnp.sqrt(p["var"] + BN_EPS) * p["gamma"] + p["beta"]
    return jnp.maximum(y, 0.0)


def down_reference_f32(x_nchw, layer1, layer2, do_pool=True):
    """PyTorch-semantics reference (f32, unfolded BN)."""
    x = jnp.transpose(x_nchw, (0, 2, 3, 1))
    if do_pool:
        x = _pool_ref(x)
    x = _ref_conv_bn_relu(x, layer1)
    x = _ref_conv_bn_relu(x, layer2)
    return jnp.transpose(x, (0, 3, 1, 2))


def down_reference_matched(x_nchw, layer1, layer2, do_pool=True):
    """Reference using the kernel's precision path: folded BN, bf16 conv
    operands, f32 accumulation and epilogue (final bf16 cast applied by caller)."""
    x = jnp.transpose(x_nchw, (0, 2, 3, 1))
    if do_pool:
        x = _pool_ref(x)
    for p in (layer1, layer2):
        w_eff, b_eff = fold_bn(p)
        y = lax.conv_general_dilated(
            x.astype(jnp.bfloat16), w_eff.astype(jnp.bfloat16),
            window_strides=(1, 1), padding="SAME",
            dimension_numbers=("NHWC", "HWIO", "NHWC"),
            preferred_element_type=jnp.float32) + b_eff
        x = jnp.maximum(y, 0.0)
    return jnp.transpose(x, (0, 3, 1, 2))


# ---------------------------------------------------------------------------
if __name__ == "__main__":
    N, CIN, COUT, H, W = 2, 4, 8, 16, 16

    key = jax.random.PRNGKey(0)
    kx, k1, k2 = jax.random.split(key, 3)
    x = jax.random.normal(kx, (N, CIN, H, W), jnp.float32)       # NCHW, like PyTorch
    layer1 = init_conv_bn(k1, CIN, COUT)
    layer2 = init_conv_bn(k2, COUT, COUT)

    for do_pool in (True, False):
        out = jax.block_until_ready(
            down_forward(x, layer1, layer2, do_pool)).astype(jnp.float32)
        hp, wp = (H // 2, W // 2) if do_pool else (H, W)
        assert out.shape == (N, COUT, hp, wp), out.shape

        # Tight check against the precision-matched reference (same bf16 path,
        # same final bf16 output rounding).
        ref_m = down_reference_matched(x, layer1, layer2, do_pool)
        ref_m = ref_m.astype(jnp.bfloat16).astype(jnp.float32)
        assert jnp.allclose(out, ref_m, atol=2e-2, rtol=2e-2), \
            float(jnp.max(jnp.abs(out - ref_m)))

        # PyTorch-semantics check (looser: kernel uses bf16 operands + bf16 out).
        ref_f = down_reference_f32(x, layer1, layer2, do_pool)
        assert jnp.allclose(out, ref_f, atol=1e-1, rtol=5e-2), \
            float(jnp.max(jnp.abs(out - ref_f)))

    print("KERNEL_OK")
</pallas_src>

<mosaic_0001>
module attributes {stable_mosaic.version = 11 : i64} {
  func.func @kernel(%arg0: i32, %arg1: memref<2x8x2x8x8xbf16, #tpu.memory_space<vmem>>, %arg2: memref<9x4x8xbf16, #tpu.memory_space<vmem>>, %arg3: memref<1x8xf32, #tpu.memory_space<vmem>>, %arg4: memref<9x8x8xbf16, #tpu.memory_space<vmem>>, %arg5: memref<1x8xf32, #tpu.memory_space<vmem>>, %arg6: memref<2x8x8x8xbf16, #tpu.memory_space<vmem>>, %arg7: memref<2x10x10x4xbf16, #tpu.memory_space<vmem>>, %arg8: memref<2x10x10x8xbf16, #tpu.memory_space<vmem>>) attributes {dimension_semantics = [#tpu.dimension_semantics<parallel>], iteration_bounds = array<i64: 1>, scalar_prefetch = 0 : i64, scratch_operands = 2 : i64, tpu.core_type = #tpu.core_type<tc>, window_params = [{transform_indices = @transform_0, window_bounds = array<i64: 2, 8, 2, 8, 8>}, {pipeline_mode = #tpu.pipeline_mode<synchronous>, transform_indices = @transform_1, window_bounds = array<i64: 9, 4, 8>}, {pipeline_mode = #tpu.pipeline_mode<synchronous>, transform_indices = @transform_2, window_bounds = array<i64: 1, 8>}, {pipeline_mode = #tpu.pipeline_mode<synchronous>, transform_indices = @transform_3, window_bounds = array<i64: 9, 8, 8>}, {pipeline_mode = #tpu.pipeline_mode<synchronous>, transform_indices = @transform_4, window_bounds = array<i64: 1, 8>}, {transform_indices = @transform_5, window_bounds = array<i64: 2, 8, 8, 8>}]} {
    %cst = arith.constant 0.000000e+00 : bf16
    %0 = vector.broadcast %cst : bf16 to vector<2x1x10x4xbf16>
    %cst_0 = arith.constant 0.000000e+00 : bf16
    %1 = vector.broadcast %cst_0 : bf16 to vector<2x10x1x4xbf16>
    %c0 = arith.constant 0 : index
    %c0_1 = arith.constant 0 : index
    %c0_2 = arith.constant 0 : index
    %c0_3 = arith.constant 0 : index
    %2 = vector.load %arg7[%c0, %c0_1, %c0_2, %c0_3] : memref<2x10x10x4xbf16, #tpu.memory_space<vmem>>, vector<2x1x10x4xbf16>
    tpu.vector_store %arg7[%c0, %c0_1, %c0_2, %c0_3], %0 {strides = array<i32>} : memref<2x10x10x4xbf16, #tpu.memory_space<vmem>>, vector<2x1x10x4xbf16>,
    %c0_4 = arith.constant 0 : index
    %c9 = arith.constant 9 : index
    %c0_5 = arith.constant 0 : index
    %c0_6 = arith.constant 0 : index
    %3 = vector.load %arg7[%c0_4, %c9, %c0_5, %c0_6] : memref<2x10x10x4xbf16, #tpu.memory_space<vmem>>, vector<2x1x10x4xbf16>
    tpu.vector_store %arg7[%c0_4, %c9, %c0_5, %c0_6], %0 {strides = array<i32>} : memref<2x10x10x4xbf16, #tpu.memory_space<vmem>>, vector<2x1x10x4xbf16>,
    %c0_7 = arith.constant 0 : index
    %c0_8 = arith.constant 0 : index
    %c0_9 = arith.constant 0 : index
    %c0_10 = arith.constant 0 : index
    %4 = vector.load %arg7[%c0_7, %c0_8, %c0_9, %c0_10] : memref<2x10x10x4xbf16, #tpu.memory_space<vmem>>, vector<2x10x1x4xbf16>
    tpu.vector_store %arg7[%c0_7, %c0_8, %c0_9, %c0_10], %1 {strides = array<i32>} : memref<2x10x10x4xbf16, #tpu.memory_space<vmem>>, vector<2x10x1x4xbf16>,
    %c0_11 = arith.constant 0 : index
    %c0_12 = arith.constant 0 : index
    %c9_13 = arith.constant 9 : index
    %c0_14 = arith.constant 0 : index
    %5 = vector.load %arg7[%c0_11, %c0_12, %c9_13, %c0_14] : memref<2x10x10x4xbf16, #tpu.memory_space<vmem>>, vector<2x10x1x4xbf16>
    tpu.vector_store %arg7[%c0_11, %c0_12, %c9_13, %c0_14], %1 {strides = array<i32>} : memref<2x10x10x4xbf16, #tpu.memory_space<vmem>>, vector<2x10x1x4xbf16>,
    %cst_15 = arith.constant 0.000000e+00 : bf16
    %6 = vector.broadcast %cst_15 : bf16 to vector<2x1x10x8xbf16>
    %cst_16 = arith.constant 0.000000e+00 : bf16
    %7 = vector.broadcast %cst_16 : bf16 to vector<2x10x1x8xbf16>
    %c0_17 = arith.constant 0 : index
    %c0_18 = arith.constant 0 : index
    %c0_19 = arith.constant 0 : index
    %c0_20 = arith.constant 0 : index
    %8 = vector.load %arg8[%c0_17, %c0_18, %c0_19, %c0_20] : memref<2x10x10x8xbf16, #tpu.memory_space<vmem>>, vector<2x1x10x8xbf16>
    tpu.vector_store %arg8[%c0_17, %c0_18, %c0_19, %c0_20], %6 {strides = array<i32>} : memref<2x10x10x8xbf16, #tpu.memory_space<vmem>>, vector<2x1x10x8xbf16>,
    %c0_21 = arith.constant 0 : index
    %c9_22 = arith.constant 9 : index
    %c0_23 = arith.constant 0 : index
    %c0_24 = arith.constant 0 : index
    %9 = vector.load %arg8[%c0_21, %c9_22, %c0_23, %c0_24] : memref<2x10x10x8xbf16, #tpu.memory_space<vmem>>, vector<2x1x10x8xbf16>
    tpu.vector_store %arg8[%c0_21, %c9_22, %c0_23, %c0_24], %6 {strides = array<i32>} : memref<2x10x10x8xbf16, #tpu.memory_space<vmem>>, vector<2x1x10x8xbf16>,
    %c0_25 = arith.constant 0 : index
    %c0_26 = arith.constant 0 : index
    %c0_27 = arith.constant 0 : index
    %c0_28 = arith.constant 0 : index
    %10 = vector.load %arg8[%c0_25, %c0_26, %c0_27, %c0_28] : memref<2x10x10x8xbf16, #tpu.memory_space<vmem>>, vector<2x10x1x8xbf16>
    tpu.vector_store %arg8[%c0_25, %c0_26, %c0_27, %c0_28], %7 {strides = array<i32>} : memref<2x10x10x8xbf16, #tpu.memory_space<vmem>>, vector<2x10x1x8xbf16>,
    %c0_29 = arith.constant 0 : index
    %c0_30 = arith.constant 0 : index
    %c9_31 = arith.constant 9 : index
    %c0_32 = arith.constant 0 : index
    %11 = vector.load %arg8[%c0_29, %c0_30, %c9_31, %c0_32] : memref<2x10x10x8xbf16, #tpu.memory_space<vmem>>, vector<2x10x1x8xbf16>
    tpu.vector_store %arg8[%c0_29, %c0_30, %c9_31, %c0_32], %7 {strides = array<i32>} : memref<2x10x10x8xbf16, #tpu.memory_space<vmem>>, vector<2x10x1x8xbf16>,
    %c0_33 = arith.constant 0 : index
    %c0_34 = arith.constant 0 : index
    %c0_35 = arith.constant 0 : index
    %c0_36 = arith.constant 0 : index
    %c0_37 = arith.constant 0 : index
    %12 = vector.load %arg1[%c0_33, %c0_34, %c0_35, %c0_36, %c0_37] : memref<2x8x2x8x8xbf16, #tpu.memory_space<vmem>>, vector<2x8x1x8x8xbf16>
    %13 = vector.shape_cast %12 : vector<2x8x1x8x8xbf16> to vector<2x8x8x8xbf16>
    %c0_38 = arith.constant 0 : index
    %c0_39 = arith.constant 0 : index
    %c1 = arith.constant 1 : index
    %c0_40 = arith.constant 0 : index
    %c0_41 = arith.constant 0 : index
    %14 = vector.load %arg1[%c0_38, %c0_39, %c1, %c0_40, %c0_41] : memref<2x8x2x8x8xbf16, #tpu.memory_space<vmem>>, vector<2x8x1x8x8xbf16>
    %15 = vector.shape_cast %14 : vector<2x8x1x8x8xbf16> to vector<2x8x8x8xbf16>
    %16 = arith.maximumf %13, %15 : vector<2x8x8x8xbf16>
    %17 = vector.extract_strided_slice %16 {offsets = [0, 0, 0, 0], sizes = [2, 8, 8, 4], strides = [1, 1, 1, 1]} : vector<2x8x8x8xbf16> to vector<2x8x8x4xbf16>
    %18 = vector.extract_strided_slice %16 {offsets = [0, 0, 0, 4], sizes = [2, 8, 8, 4], strides = [1, 1, 1, 1]} : vector<2x8x8x8xbf16> to vector<2x8x8x4xbf16>
    %19 = arith.maximumf %17, %18 : vector<2x8x8x4xbf16>
    %c0_42 = arith.constant 0 : index
    %c1_43 = arith.constant 1 : index
    %c1_44 = arith.constant 1 : index
    %c0_45 = arith.constant 0 : index
    %20 = vector.load %arg7[%c0_42, %c1_43, %c1_44, %c0_45] : memref<2x10x10x4xbf16, #tpu.memory_space<vmem>>, vector<2x8x8x4xbf16>
    tpu.vector_store %arg7[%c0_42, %c1_43, %c1_44, %c0_45], %19 {strides = array<i32>} : memref<2x10x10x4xbf16, #tpu.memory_space<vmem>>, vector<2x8x8x4xbf16>,
    %c0_46 = arith.constant 0 : index
    %c0_47 = arith.constant 0 : index
    %c0_48 = arith.constant 0 : index
    %c0_49 = arith.constant 0 : index
    %21 = vector.load %arg7[%c0_46, %c0_47, %c0_48, %c0_49] : memref<2x10x10x4xbf16, #tpu.memory_space<vmem>>, vector<2x8x8x4xbf16>
    %22 = vector.shape_cast %21 : vector<2x8x8x4xbf16> to vector<128x4xbf16>
    %c0_50 = arith.constant 0 : index
    %c0_51 = arith.constant 0 : index
    %c0_52 = arith.constant 0 : index
    %23 = vector.load %arg2[%c0_50, %c0_51, %c0_52] : memref<9x4x8xbf16, #tpu.memory_space<vmem>>, vector<1x4x8xbf16>
    %24 = vector.shape_cast %23 : vector<1x4x8xbf16> to vector<4x8xbf16>
    %cst_53 = arith.constant dense<0.000000e+00> : vector<128x8xf32>
    %25 = tpu.matmul %22, %24, %cst_53 {dimension_numbers = #tpu.dot_dimension_numbers<[1], [0], [0], [1], [0, 0, 1, 1], [], []>} : vector<128x4xbf16>, vector<4x8xbf16>, vector<128x8xf32> -> vector<128x8xf32>
    %c0_54 = arith.constant 0 : index
    %c0_55 = arith.constant 0 : index
    %c1_56 = arith.constant 1 : index
    %c0_57 = arith.constant 0 : index
    %26 = vector.load %arg7[%c0_54, %c0_55, %c1_56, %c0_57] : memref<2x10x10x4xbf16, #tpu.memory_space<vmem>>, vector<2x8x8x4xbf16>
    %27 = vector.shape_cast %26 : vector<2x8x8x4xbf16> to vector<128x4xbf16>
    %c1_58 = arith.constant 1 : index
    %c0_59 = arith.constant 0 : index
    %c0_60 = arith.constant 0 : index
    %28 = vector.load %arg2[%c1_58, %c0_59, %c0_60] : memref<9x4x8xbf16, #tpu.memory_space<vmem>>, vector<1x4x8xbf16>
    %29 = vector.shape_cast %28 : vector<1x4x8xbf16> to vector<4x8xbf16>
    %cst_61 = arith.constant dense<0.000000e+00> : vector<128x8xf32>
    %30 = tpu.matmul %27, %29, %cst_61 {dimension_numbers = #tpu.dot_dimension_numbers<[1], [0], [0], [1], [0, 0, 1, 1], [], []>} : vector<128x4xbf16>, vector<4x8xbf16>, vector<128x8xf32> -> vector<128x8xf32>
    %31 = arith.addf %25, %30 : vector<128x8xf32>
    %c0_62 = arith.constant 0 : index
    %c0_63 = arith.constant 0 : index
    %c2 = arith.constant 2 : index
    %c0_64 = arith.constant 0 : index
    %32 = vector.load %arg7[%c0_62, %c0_63, %c2, %c0_64] : memref<2x10x10x4xbf16, #tpu.memory_space<vmem>>, vector<2x8x8x4xbf16>
    %33 = vector.shape_cast %32 : vector<2x8x8x4xbf16> to vector<128x4xbf16>
    %c2_65 = arith.constant 2 : index
    %c0_66 = arith.constant 0 : index
    %c0_67 = arith.constant 0 : index
    %34 = vector.load %arg2[%c2_65, %c0_66, %c0_67] : memref<9x4x8xbf16, #tpu.memory_space<vmem>>, vector<1x4x8xbf16>
    %35 = vector.shape_cast %34 : vector<1x4x8xbf16> to vector<4x8xbf16>
    %cst_68 = arith.constant dense<0.000000e+00> : vector<128x8xf32>
    %36 = tpu.matmul %33, %35, %cst_68 {dimension_numbers = #tpu.dot_dimension_numbers<[1], [0], [0], [1], [0, 0, 1, 1], [], []>} : vector<128x4xbf16>, vector<4x8xbf16>, vector<128x8xf32> -> vector<128x8xf32>
    %37 = arith.addf %31, %36 : vector<128x8xf32>
    %c0_69 = arith.constant 0 : index
    %c1_70 = arith.constant 1 : index
    %c0_71 = arith.constant 0 : index
    %c0_72 = arith.constant 0 : index
    %38 = vector.load %arg7[%c0_69, %c1_70, %c0_71, %c0_72] : memref<2x10x10x4xbf16, #tpu.memory_space<vmem>>, vector<2x8x8x4xbf16>
    %39 = vector.shape_cast %38 : vector<2x8x8x4xbf16> to vector<128x4xbf16>
    %c3 = arith.constant 3 : index
    %c0_73 = arith.constant 0 : index
    %c0_74 = arith.constant 0 : index
    %40 = vector.load %arg2[%c3, %c0_73, %c0_74] : memref<9x4x8xbf16, #tpu.memory_space<vmem>>, vector<1x4x8xbf16>
    %41 = vector.shape_cast %40 : vector<1x4x8xbf16> to vector<4x8xbf16>
    %cst_75 = arith.constant dense<0.000000e+00> : vector<128x8xf32>
    %42 = tpu.matmul %39, %41, %cst_75 {dimension_numbers = #tpu.dot_dimension_numbers<[1], [0], [0], [1], [0, 0, 1, 1], [], []>} : vector<128x4xbf16>, vector<4x8xbf16>, vector<128x8xf32> -> vector<128x8xf32>
    %43 = arith.addf %37, %42 : vector<128x8xf32>
    %c0_76 = arith.constant 0 : index
    %c1_77 = arith.constant 1 : index
    %c1_78 = arith.constant 1 : index
    %c0_79 = arith.constant 0 : index
    %44 = vector.load %arg7[%c0_76, %c1_77, %c1_78, %c0_79] : memref<2x10x10x4xbf16, #tpu.memory_space<vmem>>, vector<2x8x8x4xbf16>
    %45 = vector.shape_cast %44 : vector<2x8x8x4xbf16> to vector<128x4xbf16>
    %c4 = arith.constant 4 : index
    %c0_80 = arith.constant 0 : index
    %c0_81 = arith.constant 0 : index
    %46 = vector.load %arg2[%c4, %c0_80, %c0_81] : memref<9x4x8xbf16, #tpu.memory_space<vmem>>, vector<1x4x8xbf16>
    %47 = vector.shape_cast %46 : vector<1x4x8xbf16> to vector<4x8xbf16>
    %cst_82 = arith.constant dense<0.000000e+00> : vector<128x8xf32>
    %48 = tpu.matmul %45, %47, %cst_82 {dimension_numbers = #tpu.dot_dimension_numbers<[1], [0], [0], [1], [0, 0, 1, 1], [], []>} : vector<128x4xbf16>, vector<4x8xbf16>, vector<128x8xf32> -> vector<128x8xf32>
    %49 = arith.addf %43, %48 : vector<128x8xf32>
    %c0_83 = arith.constant 0 : index
    %c1_84 = arith.constant 1 : index
    %c2_85 = arith.constant 2 : index
    %c0_86 = arith.constant 0 : index
    %50 = vector.load %arg7[%c0_83, %c1_84, %c2_85, %c0_86] : memref<2x10x10x4xbf16, #tpu.memory_space<vmem>>, vector<2x8x8x4xbf16>
    %51 = vector.shape_cast %50 : vector<2x8x8x4xbf16> to vector<128x4xbf16>
    %c5 = arith.constant 5 : index
    %c0_87 = arith.constant 0 : index
    %c0_88 = arith.constant 0 : index
    %52 = vector.load %arg2[%c5, %c0_87, %c0_88] : memref<9x4x8xbf16, #tpu.memory_space<vmem>>, vector<1x4x8xbf16>
    %53 = vector.shape_cast %52 : vector<1x4x8xbf16> to vector<4x8xbf16>
    %cst_89 = arith.constant dense<0.000000e+00> : vector<128x8xf32>
    %54 = tpu.matmul %51, %53, %cst_89 {dimension_numbers = #tpu.dot_dimension_numbers<[1], [0], [0], [1], [0, 0, 1, 1], [], []>} : vector<128x4xbf16>, vector<4x8xbf16>, vector<128x8xf32> -> vector<128x8xf32>
    %55 = arith.addf %49, %54 : vector<128x8xf32>
    %c0_90 = arith.constant 0 : index
    %c2_91 = arith.constant 2 : index
    %c0_92 = arith.constant 0 : index
    %c0_93 = arith.constant 0 : index
    %56 = vector.load %arg7[%c0_90, %c2_91, %c0_92, %c0_93] : memref<2x10x10x4xbf16, #tpu.memory_space<vmem>>, vector<2x8x8x4xbf16>
    %57 = vector.shape_cast %56 : vector<2x8x8x4xbf16> to vector<128x4xbf16>
    %c6 = arith.constant 6 : index
    %c0_94 = arith.constant 0 : index
    %c0_95 = arith.constant 0 : index
    %58 = vector.load %arg2[%c6, %c0_94, %c0_95] : memref<9x4x8xbf16, #tpu.memory_space<vmem>>, vector<1x4x8xbf16>
    %59 = vector.shape_cast %58 : vector<1x4x8xbf16> to vector<4x8xbf16>
    %cst_96 = arith.constant dense<0.000000e+00> : vector<128x8xf32>
    %60 = tpu.matmul %57, %59, %cst_96 {dimension_numbers = #tpu.dot_dimension_numbers<[1], [0], [0], [1], [0, 0, 1, 1], [], []>} : vector<128x4xbf16>, vector<4x8xbf16>, vector<128x8xf32> -> vector<128x8xf32>
    %61 = arith.addf %55, %60 : vector<128x8xf32>
    %c0_97 = arith.constant 0 : index
    %c2_98 = arith.constant 2 : index
    %c1_99 = arith.constant 1 : index
    %c0_100 = arith.constant 0 : index
    %62 = vector.load %arg7[%c0_97, %c2_98, %c1_99, %c0_100] : memref<2x10x10x4xbf16, #tpu.memory_space<vmem>>, vector<2x8x8x4xbf16>
    %63 = vector.shape_cast %62 : vector<2x8x8x4xbf16> to vector<128x4xbf16>
    %c7 = arith.constant 7 : index
    %c0_101 = arith.constant 0 : index
    %c0_102 = arith.constant 0 : index
    %64 = vector.load %arg2[%c7, %c0_101, %c0_102] : memref<9x4x8xbf16, #tpu.memory_space<vmem>>, vector<1x4x8xbf16>
    %65 = vector.shape_cast %64 : vector<1x4x8xbf16> to vector<4x8xbf16>
    %cst_103 = arith.constant dense<0.000000e+00> : vector<128x8xf32>
    %66 = tpu.matmul %63, %65, %cst_103 {dimension_numbers = #tpu.dot_dimension_numbers<[1], [0], [0], [1], [0, 0, 1, 1], [], []>} : vector<128x4xbf16>, vector<4x8xbf16>, vector<128x8xf32> -> vector<128x8xf32>
    %67 = arith.addf %61, %66 : vector<128x8xf32>
    %c0_104 = arith.constant 0 : index
    %c2_105 = arith.constant 2 : index
    %c2_106 = arith.constant 2 : index
    %c0_107 = arith.constant 0 : index
    %68 = vector.load %arg7[%c0_104, %c2_105, %c2_106, %c0_107] : memref<2x10x10x4xbf16, #tpu.memory_space<vmem>>, vector<2x8x8x4xbf16>
    %69 = vector.shape_cast %68 : vector<2x8x8x4xbf16> to vector<128x4xbf16>
    %c8 = arith.constant 8 : index
    %c0_108 = arith.constant 0 : index
    %c0_109 = arith.constant 0 : index
    %70 = vector.load %arg2[%c8, %c0_108, %c0_109] : memref<9x4x8xbf16, #tpu.memory_space<vmem>>, vector<1x4x8xbf16>
    %71 = vector.shape_cast %70 : vector<1x4x8xbf16> to vector<4x8xbf16>
    %cst_110 = arith.constant dense<0.000000e+00> : vector<128x8xf32>
    %72 = tpu.matmul %69, %71, %cst_110 {dimension_numbers = #tpu.dot_dimension_numbers<[1], [0], [0], [1], [0, 0, 1, 1], [], []>} : vector<128x4xbf16>, vector<4x8xbf16>, vector<128x8xf32> -> vector<128x8xf32>
    %73 = arith.addf %67, %72 : vector<128x8xf32>
    %c0_111 = arith.constant 0 : index
    %c0_112 = arith.constant 0 : index
    %74 = vector.load %arg3[%c0_111, %c0_112] : memref<1x8xf32, #tpu.memory_space<vmem>>, vector<1x8xf32>
    %75 = vector.broadcast %74 : vector<1x8xf32> to vector<128x8xf32>
    %76 = arith.addf %73, %75 : vector<128x8xf32>
    %cst_113 = arith.constant 0.000000e+00 : f32
    %77 = vector.broadcast %cst_113 : f32 to vector<128x8xf32>
    %78 = arith.maximumf %76, %77 : vector<128x8xf32>
    %79 = vector.shape_cast %78 : vector<128x8xf32> to vector<2x8x8x8xf32>
    %80 = arith.truncf %79 : vector<2x8x8x8xf32> to vector<2x8x8x8xbf16>
    %c0_114 = arith.constant 0 : index
    %c1_115 = arith.constant 1 : index
    %c1_116 = arith.constant 1 : index
    %c0_117 = arith.constant 0 : index
    %81 = vector.load %arg8[%c0_114, %c1_115, %c1_116, %c0_117] : memref<2x10x10x8xbf16, #tpu.memory_space<vmem>>, vector<2x8x8x8xbf16>
    tpu.vector_store %arg8[%c0_114, %c1_115, %c1_116, %c0_117], %80 {strides = array<i32>} : memref<2x10x10x8xbf16, #tpu.memory_space<vmem>>, vector<2x8x8x8xbf16>,
    %c0_118 = arith.constant 0 : index
    %c0_119 = arith.constant 0 : index
    %c0_120 = arith.constant 0 : index
    %c0_121 = arith.constant 0 : index
    %82 = vector.load %arg8[%c0_118, %c0_119, %c0_120, %c0_121] : memref<2x10x10x8xbf16, #tpu.memory_space<vmem>>, vector<2x8x8x8xbf16>
    %83 = vector.shape_cast %82 : vector<2x8x8x8xbf16> to vector<128x8xbf16>
    %c0_122 = arith.constant 0 : index
    %c0_123 = arith.constant 0 : index
    %c0_124 = arith.constant 0 : index
    %84 = vector.load %arg4[%c0_122, %c0_123, %c0_124] : memref<9x8x8xbf16, #tpu.memory_space<vmem>>, vector<1x8x8xbf16>
    %85 = vector.shape_cast %84 : vector<1x8x8xbf16> to vector<8x8xbf16>
    %cst_125 = arith.constant dense<0.000000e+00> : vector<128x8xf32>
    %86 = tpu.matmul %83, %85, %cst_125 {dimension_numbers = #tpu.dot_dimension_numbers<[1], [0], [0], [1], [0, 0, 1, 1], [], []>} : vector<128x8xbf16>, vector<8x8xbf16>, vector<128x8xf32> -> vector<128x8xf32>
    %c0_126 = arith.constant 0 : index
    %c0_127 = arith.constant 0 : index
    %c1_128 = arith.constant 1 : index
    %c0_129 = arith.constant 0 : index
    %87 = vector.load %arg8[%c0_126, %c0_127, %c1_128, %c0_129] : memref<2x10x10x8xbf16, #tpu.memory_space<vmem>>, vector<2x8x8x8xbf16>
    %88 = vector.shape_cast %87 : vector<2x8x8x8xbf16> to vector<128x8xbf16>
    %c1_130 = arith.constant 1 : index
    %c0_131 = arith.constant 0 : index
    %c0_132 = arith.constant 0 : index
    %89 = vector.load %arg4[%c1_130, %c0_131, %c0_132] : memref<9x8x8xbf16, #tpu.memory_space<vmem>>, vector<1x8x8xbf16>
    %90 = vector.shape_cast %89 : vector<1x8x8xbf16> to vector<8x8xbf16>
    %cst_133 = arith.constant dense<0.000000e+00> : vector<128x8xf32>
    %91 = tpu.matmul %88, %90, %cst_133 {dimension_numbers = #tpu.dot_dimension_numbers<[1], [0], [0], [1], [0, 0, 1, 1], [], []>} : vector<128x8xbf16>, vector<8x8xbf16>, vector<128x8xf32> -> vector<128x8xf32>
    %92 = arith.addf %86, %91 : vector<128x8xf32>
    %c0_134 = arith.constant 0 : index
    %c0_135 = arith.constant 0 : index
    %c2_136 = arith.constant 2 : index
    %c0_137 = arith.constant 0 : index
    %93 = vector.load %arg8[%c0_134, %c0_135, %c2_136, %c0_137] : memref<2x10x10x8xbf16, #tpu.memory_space<vmem>>, vector<2x8x8x8xbf16>
    %94 = vector.shape_cast %93 : vector<2x8x8x8xbf16> to vector<128x8xbf16>
    %c2_138 = arith.constant 2 : index
    %c0_139 = arith.constant 0 : index
    %c0_140 = arith.constant 0 : index
    %95 = vector.load %arg4[%c2_138, %c0_139, %c0_140] : memref<9x8x8xbf16, #tpu.memory_space<vmem>>, vector<1x8x8xbf16>
    %96 = vector.shape_cast %95 : vector<1x8x8xbf16> to vector<8x8xbf16>
    %cst_141 = arith.constant dense<0.000000e+00> : vector<128x8xf32>
    %97 = tpu.matmul %94, %96, %cst_141 {dimension_numbers = #tpu.dot_dimension_numbers<[1], [0], [0], [1], [0, 0, 1, 1], [], []>} : vector<128x8xbf16>, vector<8x8xbf16>, vector<128x8xf32> -> vector<128x8xf32>
    %98 = arith.addf %92, %97 : vector<128x8xf32>
    %c0_142 = arith.constant 0 : index
    %c1_143 = arith.constant 1 : index
    %c0_144 = arith.constant 0 : index
    %c0_145 = arith.constant 0 : index
    %99 = vector.load %arg8[%c0_142, %c1_143, %c0_144, %c0_145] : memref<2x10x10x8xbf16, #tpu.memory_space<vmem>>, vector<2x8x8x8xbf16>
    %100 = vector.shape_cast %99 : vector<2x8x8x8xbf16> to vector<128x8xbf16>
    %c3_146 = arith.constant 3 : index
    %c0_147 = arith.constant 0 : index
    %c0_148 = arith.constant 0 : index
    %101 = vector.load %arg4[%c3_146, %c0_147, %c0_148] : memref<9x8x8xbf16, #tpu.memory_space<vmem>>, vector<1x8x8xbf16>
    %102 = vector.shape_cast %101 : vector<1x8x8xbf16> to vector<8x8xbf16>
    %cst_149 = arith.constant dense<0.000000e+00> : vector<128x8xf32>
    %103 = tpu.matmul %100, %102, %cst_149 {dimension_numbers = #tpu.dot_dimension_numbers<[1], [0], [0], [1], [0, 0, 1, 1], [], []>} : vector<128x8xbf16>, vector<8x8xbf16>, vector<128x8xf32> -> vector<128x8xf32>
    %104 = arith.addf %98, %103 : vector<128x8xf32>
    %c0_150 = arith.constant 0 : index
    %c1_151 = arith.constant 1 : index
    %c1_152 = arith.constant 1 : index
    %c0_153 = arith.constant 0 : index
    %105 = vector.load %arg8[%c0_150, %c1_151, %c1_152, %c0_153] : memref<2x10x10x8xbf16, #tpu.memory_space<vmem>>, vector<2x8x8x8xbf16>
    %106 = vector.shape_cast %105 : vector<2x8x8x8xbf16> to vector<128x8xbf16>
    %c4_154 = arith.constant 4 : index
    %c0_155 = arith.constant 0 : index
    %c0_156 = arith.constant 0 : index
    %107 = vector.load %arg4[%c4_154, %c0_155, %c0_156] : memref<9x8x8xbf16, #tpu.memory_space<vmem>>, vector<1x8x8xbf16>
    %108 = vector.shape_cast %107 : vector<1x8x8xbf16> to vector<8x8xbf16>
    %cst_157 = arith.constant dense<0.000000e+00> : vector<128x8xf32>
    %109 = tpu.matmul %106, %108, %cst_157 {dimension_numbers = #tpu.dot_dimension_numbers<[1], [0], [0], [1], [0, 0, 1, 1], [], []>} : vector<128x8xbf16>, vector<8x8xbf16>, vector<128x8xf32> -> vector<128x8xf32>
    %110 = arith.addf %104, %109 : vector<128x8xf32>
    %c0_158 = arith.constant 0 : index
    %c1_159 = arith.constant 1 : index
    %c2_160 = arith.constant 2 : index
    %c0_161 = arith.constant 0 : index
    %111 = vector.load %arg8[%c0_158, %c1_159, %c2_160, %c0_161] : memref<2x10x10x8xbf16, #tpu.memory_space<vmem>>, vector<2x8x8x8xbf16>
    %112 = vector.shape_cast %111 : vector<2x8x8x8xbf16> to vector<128x8xbf16>
    %c5_162 = arith.constant 5 : index
    %c0_163 = arith.constant 0 : index
    %c0_164 = arith.constant 0 : index
    %113 = vector.load %arg4[%c5_162, %c0_163, %c0_164] : memref<9x8x8xbf16, #tpu.memory_space<vmem>>, vector<1x8x8xbf16>
    %114 = vector.shape_cast %113 : vector<1x8x8xbf16> to vector<8x8xbf16>
    %cst_165 = arith.constant dense<0.000000e+00> : vector<128x8xf32>
    %115 = tpu.matmul %112, %114, %cst_165 {dimension_numbers = #tpu.dot_dimension_numbers<[1], [0], [0], [1], [0, 0, 1, 1], [], []>} : vector<128x8xbf16>, vector<8x8xbf16>, vector<128x8xf32> -> vector<128x8xf32>
    %116 = arith.addf %110, %115 : vector<128x8xf32>
    %c0_166 = arith.constant 0 : index
    %c2_167 = arith.constant 2 : index
    %c0_168 = arith.constant 0 : index
    %c0_169 = arith.constant 0 : index
    %117 = vector.load %arg8[%c0_166, %c2_167, %c0_168, %c0_169] : memref<2x10x10x8xbf16, #tpu.memory_space<vmem>>, vector<2x8x8x8xbf16>
    %118 = vector.shape_cast %117 : vector<2x8x8x8xbf16> to vector<128x8xbf16>
    %c6_170 = arith.constant 6 : index
    %c0_171 = arith.constant 0 : index
    %c0_172 = arith.constant 0 : index
    %119 = vector.load %arg4[%c6_170, %c0_171, %c0_172] : memref<9x8x8xbf16, #tpu.memory_space<vmem>>, vector<1x8x8xbf16>
    %120 = vector.shape_cast %119 : vector<1x8x8xbf16> to vector<8x8xbf16>
    %cst_173 = arith.constant dense<0.000000e+00> : vector<128x8xf32>
    %121 = tpu.matmul %118, %120, %cst_173 {dimension_numbers = #tpu.dot_dimension_numbers<[1], [0], [0], [1], [0, 0, 1, 1], [], []>} : vector<128x8xbf16>, vector<8x8xbf16>, vector<128x8xf32> -> vector<128x8xf32>
    %122 = arith.addf %116, %121 : vector<128x8xf32>
    %c0_174 = arith.constant 0 : index
    %c2_175 = arith.constant 2 : index
    %c1_176 = arith.constant 1 : index
    %c0_177 = arith.constant 0 : index
    %123 = vector.load %arg8[%c0_174, %c2_175, %c1_176, %c0_177] : memref<2x10x10x8xbf16, #tpu.memory_space<vmem>>, vector<2x8x8x8xbf16>
    %124 = vector.shape_cast %123 : vector<2x8x8x8xbf16> to vector<128x8xbf16>
    %c7_178 = arith.constant 7 : index
    %c0_179 = arith.constant 0 : index
    %c0_180 = arith.constant 0 : index
    %125 = vector.load %arg4[%c7_178, %c0_179, %c0_180] : memref<9x8x8xbf16, #tpu.memory_space<vmem>>, vector<1x8x8xbf16>
    %126 = vector.shape_cast %125 : vector<1x8x8xbf16> to vector<8x8xbf16>
    %cst_181 = arith.constant dense<0.000000e+00> : vector<128x8xf32>
    %127 = tpu.matmul %124, %126, %cst_181 {dimension_numbers = #tpu.dot_dimension_numbers<[1], [0], [0], [1], [0, 0, 1, 1], [], []>} : vector<128x8xbf16>, vector<8x8xbf16>, vector<128x8xf32> -> vector<128x8xf32>
    %128 = arith.addf %122, %127 : vector<128x8xf32>
    %c0_182 = arith.constant 0 : index
    %c2_183 = arith.constant 2 : index
    %c2_184 = arith.constant 2 : index
    %c0_185 = arith.constant 0 : index
    %129 = vector.load %arg8[%c0_182, %c2_183, %c2_184, %c0_185] : memref<2x10x10x8xbf16, #tpu.memory_space<vmem>>, vector<2x8x8x8xbf16>
    %130 = vector.shape_cast %129 : vector<2x8x8x8xbf16> to vector<128x8xbf16>
    %c8_186 = arith.constant 8 : index
    %c0_187 = arith.constant 0 : index
    %c0_188 = arith.constant 0 : index
    %131 = vector.load %arg4[%c8_186, %c0_187, %c0_188] : memref<9x8x8xbf16, #tpu.memory_space<vmem>>, vector<1x8x8xbf16>
    %132 = vector.shape_cast %131 : vector<1x8x8xbf16> to vector<8x8xbf16>
    %cst_189 = arith.constant dense<0.000000e+00> : vector<128x8xf32>
    %133 = tpu.matmul %130, %132, %cst_189 {dimension_numbers = #tpu.dot_dimension_numbers<[1], [0], [0], [1], [0, 0, 1, 1], [], []>} : vector<128x8xbf16>, vector<8x8xbf16>, vector<128x8xf32> -> vector<128x8xf32>
    %134 = arith.addf %128, %133 : vector<128x8xf32>
    %c0_190 = arith.constant 0 : index
    %c0_191 = arith.constant 0 : index
    %135 = vector.load %arg5[%c0_190, %c0_191] : memref<1x8xf32, #tpu.memory_space<vmem>>, vector<1x8xf32>
    %136 = vector.broadcast %135 : vector<1x8xf32> to vector<128x8xf32>
    %137 = arith.addf %134, %136 : vector<128x8xf32>
    %cst_192 = arith.constant 0.000000e+00 : f32
    %138 = vector.broadcast %cst_192 : f32 to vector<128x8xf32>
    %139 = arith.maximumf %137, %138 : vector<128x8xf32>
    %140 = vector.shape_cast %139 : vector<128x8xf32> to vector<2x8x8x8xf32>
    %141 = arith.truncf %140 : vector<2x8x8x8xf32> to vector<2x8x8x8xbf16>
    %c0_193 = arith.constant 0 : index
    %c0_194 = arith.constant 0 : index
    %c0_195 = arith.constant 0 : index
    %c0_196 = arith.constant 0 : index
    %142 = vector.load %arg6[%c0_193, %c0_194, %c0_195, %c0_196] : memref<2x8x8x8xbf16, #tpu.memory_space<vmem>>, vector<2x8x8x8xbf16>
    tpu.vector_store %arg6[%c0_193, %c0_194, %c0_195, %c0_196], %141 {strides = array<i32>} : memref<2x8x8x8xbf16, #tpu.memory_space<vmem>>, vector<2x8x8x8xbf16>,
    return
  }
  func.func @transform_0(%arg0: i32) -> (i32, i32, i32, i32, i32) {
    %c0_i32 = arith.constant 0 : i32
    %c0_i32_0 = arith.constant 0 : i32
    %c0_i32_1 = arith.constant 0 : i32
    %c0_i32_2 = arith.constant 0 : i32
    %c0_i32_3 = arith.constant 0 : i32
    return %arg0, %c0_i32, %c0_i32_0, %c0_i32_1, %c0_i32_2 : i32, i32, i32, i32, i32
  }
  func.func @transform_1(%arg0: i32) -> (i32, i32, i32) {
    %c0_i32 = arith.constant 0 : i32
    %c0_i32_0 = arith.constant 0 : i32
    %c0_i32_1 = arith.constant 0 : i32
    %c0_i32_2 = arith.constant 0 : i32
    return %c0_i32, %c0_i32_0, %c0_i32_1 : i32, i32, i32
  }
  func.func @transform_2(%arg0: i32) -> (i32, i32) {
    %c0_i32 = arith.constant 0 : i32
    %c0_i32_0 = arith.constant 0 : i32
    %c0_i32_1 = arith.constant 0 : i32
    return %c0_i32, %c0_i32_0 : i32, i32
  }
  func.func @transform_3(%arg0: i32) -> (i32, i32, i32) {
    %c0_i32 = arith.constant 0 : i32
    %c0_i32_0 = arith.constant 0 : i32
    %c0_i32_1 = arith.constant 0 : i32
    %c0_i32_2 = arith.constant 0 : i32
    return %c0_i32, %c0_i32_0, %c0_i32_1 : i32, i32, i32
  }
  func.func @transform_4(%arg0: i32) -> (i32, i32) {
    %c0_i32 = arith.constant 0 : i32
    %c0_i32_0 = arith.constant 0 : i32
    %c0_i32_1 = arith.constant 0 : i32
    return %c0_i32, %c0_i32_0 : i32, i32
  }
  func.func @transform_5(%arg0: i32) -> (i32, i32, i32, i32) {
    %c0_i32 = arith.constant 0 : i32
    %c0_i32_0 = arith.constant 0 : i32
    %c0_i32_1 = arith.constant 0 : i32
    %c0_i32_2 = arith.constant 0 : i32
    return %arg0, %c0_i32, %c0_i32_0, %c0_i32_1 : i32, i32, i32, i32
  }
}

</mosaic_0001>

<bundles_post_ra>
// kernel: tpu_custom_call.1
= control target key start
LH: loop header
LB: loop body
LE: loop exit
PB: predicated region body
PF: predicated region fallthrough
CT: control target
= control target key end

     0   :  { %10 = vsyncpa [#allocation5], 0  ;;  %s9627_s0 = inlined_call_operand.hbm [shape: bf16[2,8,2,8,8], index: 0, kind: input, shape index: {}]   ;;  %s9628_s1 = inlined_call_operand.vmem [shape: bf16[9,4,8], index: 1, kind: input, shape index: {}]   ;;  %s9629_s2 = inlined_call_operand.vmem [shape: f32[1,8], index: 2, kind: input, shape index: {}]   ;;  %s9630_s3 = inlined_call_operand.vmem [shape: bf16[9,8,8], index: 3, kind: input, shape index: {}]   ;;  %s9631_s4 = inlined_call_operand.vmem [shape: f32[1,8], index: 4, kind: input, shape index: {}]   ;;  %s9632_s5 = inlined_call_operand.hbm [shape: bf16[2,8,8,8], index: 5, kind: output, shape index: {}]  }
   0x1   :  { %11 = vsyncpa [#allocation6], 0  ;;  %s7742_s18 = smov [#allocation4]   ;;  %s7694_s22 = scalar_lea.hbm %s9627_s0, 2048 }
   0x2   :  { %s17_s19 = sshll.u32 %s7742_s18, 4  ;;  %p7695_p0 = scmp.ne.s32.totalorder %s9627_s0, %s7694_s22  ;;  %s18_s19 = int_to_ptr.vmem [resolvable:$true] %s17_s19 }
   0x3   :  { %p7698_p1 = scmp.lt.u32.totalorder %s7694_s22, %s9627_s0 }
   0x5   :  { %p7700_p2 = pnand %p7698_p1, %p7695_p0 }
   0x7   :  { %7703 = shalt.err (!%p7700_p2)
}
   0x8   :  { %s7704_s27 = scalar_lea.vmem %s18_s19, 2048  ;;  %p7709_p4 = scmp.lt.s32.totalorder %s18_s19, %s18_s19 }
   0x9   :  { %p7705_p3 = scmp.ne.s32.totalorder %s18_s19, %s7704_s27  ;;  %p7710_p5 = scmp.lt.s32.totalorder %s7704_s27, %s7704_s27 }
   0xb   :  { %p7711_p6 = por %p7710_p5, %p7709_p4 }
   0xd   :  { %p7712_p7 = pnand %p7711_p6, %p7705_p3 }
   0xf   :  { %7715 = shalt.err (!%p7712_p7)
}
  0x10   :  { %s7743_s28 = smov 64   ;;  %s7744_s29 = smov 4  }
  0x11   :  { %23 = dma.hbm_to_vmem [thread:$0]  %s9627_s0, 2048, %s18_s19, [#allocation5], %s7743_s28, %s7743_s28, %s7744_s29  }
  0x12   :  { %7738 = dma.done.wait [#allocation5], 2048  }
  0x13   :  { %7739 = vsyncadd [#allocation5], 4294965248  ;;  %vm36_vm0 = vcmask 27648   ;;  %vm38_vm1 = vcmask 24576   ;;  %v9633_v0 = vmov 0   ;;  %s7746_s0 = smov 124  }
  0x14   :  { %37 = vst.msk [vmem:[#allocation2] sm:$0xf] %vm36_vm0, %v9633_v0  ;;  %40 = vst.msk [vmem:[#allocation2 + $0x50] sm:$0xf] %vm36_vm0, %v9633_v0  ;;  %v308_v1 = vld [vmem:[#allocation4 + $0x10] sm:$0xf] }
  0x15   :  { %39 = vst.msk [vmem:[#allocation2 + $0x4] sm:$0x1] %vm38_vm1, %v9633_v0  ;;  %41 = vst.msk [vmem:[#allocation2 + $0x54] sm:$0x1] %vm38_vm1, %v9633_v0  ;;  %v325_v2 = vld [vmem:[#allocation4 + $0x14] sm:$0xf] }
  0x16   :  { %43 = vst.msk [vmem:[#allocation2 + $0x48] sm:$0xf] %vm36_vm0, %v9633_v0  ;;  %45 = vst.msk [vmem:[#allocation2 + $0x98] sm:$0xf] %vm36_vm0, %v9633_v0  ;;  %v306_v3 = vld [vmem:[#allocation4] sm:$0xf]  ;;  %v7809_v4 = vmax.bf16 %v325_v2, %v308_v1 }
  0x17   :  { %44 = vst.msk [vmem:[#allocation2 + $0x4c] sm:$0x1] %vm38_vm1, %v9633_v0  ;;  %46 = vst.msk [vmem:[#allocation2 + $0x9c] sm:$0x1] %vm38_vm1, %v9633_v0  ;;  %v323_v5 = vld [vmem:[#allocation4 + $0x4] sm:$0xf] }
  0x18   :  { %v309_v6 = vld [vmem:[#allocation4 + $0x18] sm:$0xf]  ;;  %v326_v7 = vld [vmem:[#allocation4 + $0x1c] sm:$0xf]  ;;  %v7811_v8 = vmax.bf16 %v323_v5, %v306_v3  ;;  %v307_v9 = vld [vmem:[#allocation4 + $0x8] sm:$0xf]  ;;  %375 = vrot.lane.b32.xlu1 %v7809_v4, %s7746_s0 }
  0x19   :  { %v324_v10 = vld [vmem:[#allocation4 + $0xc] sm:$0xf]  ;;  %v7815_v11 = vmax.bf16 %v326_v7, %v309_v6  ;;  %v311_v13 = vld [vmem:[#allocation4 + $0x28] sm:$0xf]  ;;  %v310_v15 = vld [vmem:[#allocation4 + $0x20] sm:$0xf] }
  0x1a   :  { %371 = vrot.lane.b32.xlu0 %v7811_v8, %s7746_s0  ;;  %v7819_v12 = vmax.bf16 %v324_v10, %v307_v9  ;;  %v328_v14 = vld [vmem:[#allocation4 + $0x2c] sm:$0xf]  ;;  %v327_v16 = vld [vmem:[#allocation4 + $0x24] sm:$0xf]  ;;  %vm48_vm2 = vsmask.f32 256 }
  0x1b   :  { %vm110_vm3 = vsmask.f32 7938  ;;  %v7823_v17 = vmax.bf16 %v328_v14, %v311_v13  ;;  %v7827_v18 = vmax.bf16 %v327_v16, %v310_v15  ;;  %v314_v19 = vld [vmem:[#allocation4 + $0x40] sm:$0xf]  ;;  %v331_v20 = vld [vmem:[#allocation4 + $0x44] sm:$0xf]  ;;  %vm7831_vm4 = vmand %vm38_vm1, %vm48_vm2 }
  0x1c   :  { %377 = vrot.lane.b32.xlu1 %v7815_v11, %s7746_s0  ;;  %v312_v22 = vld [vmem:[#allocation4 + $0x30] sm:$0xf]  ;;  %v329_v23 = vld [vmem:[#allocation4 + $0x34] sm:$0xf]  ;;  %vm7837_vm5 = vmand %vm38_vm1, %vm110_vm3  ;;  %v7843_v28 = vmax.bf16 %v331_v20, %v314_v19  ;;  %vm1005_vm6 = vcmask 1041408   ;;  %vm980_vm11 = vcmask 31744  }
  0x1d   :  { %v316_v25 = vld [vmem:[#allocation4 + $0x50] sm:$0xf]  ;;  %v333_v26 = vld [vmem:[#allocation4 + $0x54] sm:$0xf]  ;;  %v59_v27 = vld [vmem:[#allocation2 + $0x18] sm:$0x1]  ;;  %v7849_v34 = vmax.bf16 %v329_v23, %v312_v22 }
  0x1e   :  { %373 = vrot.lane.b32.xlu0 %v7819_v12, %s7746_s0  ;;  %v315_v29 = vld [vmem:[#allocation4 + $0x48] sm:$0xf]  ;;  %v332_v30 = vld [vmem:[#allocation4 + $0x4c] sm:$0xf]  ;;  %v60_v31 = vsel %vm7831_vm4, 0, %v59_v27  ;;  %v7865_v49 = vmax.bf16 %v333_v26, %v316_v25  ;;  %vm8003_vm10 = vmand %vm36_vm0, %vm110_vm3  ;;  %vm1318_vm12 = vcmask 1042432  }
  0x1f   :  { %v121_v32 = vld [vmem:[#allocation2 + $0x1c] sm:$0x1]  ;;  %v53_v33 = vld [vmem:[#allocation2 + $0x8] sm:$0x1]  ;;  %61 = vst [vmem:[#allocation2 + $0x18] sm:$0x1] %v60_v31  ;;  %v7873_v56 = vmax.bf16 %v332_v30, %v315_v29 }
  0x20   :  { %381 = vrot.lane.b32.xlu1 %v7823_v17, %s7746_s0  ;;  %v122_v35 = vsel %vm7837_vm5, 0, %v121_v32  ;;  %v54_v36 = vsel %vm7831_vm4, 0, %v53_v33  ;;  %v115_v37 = vld [vmem:[#allocation2 + $0xc] sm:$0x1]  ;;  %v62_v38 = vld [vmem:[#allocation2 + $0x20] sm:$0x1] }
  0x21   :  { %123 = vst [vmem:[#allocation2 + $0x1c] sm:$0x1] %v122_v35  ;;  %55 = vst [vmem:[#allocation2 + $0x8] sm:$0x1] %v54_v36  ;;  %v116_v39 = vsel %vm7837_vm5, 0, %v115_v37  ;;  %v63_v40 = vsel %vm7831_vm4, 0, %v62_v38 }
  0x22   :  { %379 = vrot.lane.b32.xlu0 %v7827_v18, %s7746_s0  ;;  %v124_v41 = vld [vmem:[#allocation2 + $0x24] sm:$0x1]  ;;  %v56_v42 = vld [vmem:[#allocation2 + $0x10] sm:$0x1]  ;;  %v318_v43 = vld [vmem:[#allocation4 + $0x60] sm:$0xf] }
  0x23   :  { %v335_v44 = vld [vmem:[#allocation4 + $0x64] sm:$0xf]  ;;  %117 = vst [vmem:[#allocation2 + $0xc] sm:$0x1] %v116_v39  ;;  %64 = vst [vmem:[#allocation2 + $0x20] sm:$0x1] %v63_v40 }
  0x24   :  { %v125_v45 = vsel %vm7837_vm5, 0, %v124_v41  ;;  %v57_v46 = vsel %vm7831_vm4, 0, %v56_v42  ;;  %v118_v47 = vld [vmem:[#allocation2 + $0x14] sm:$0x1]  ;;  %v68_v48 = vld [vmem:[#allocation2 + $0x30] sm:$0x1]  ;;  %387 = vrot.lane.b32.xlu1 %v7843_v28, %s7746_s0  ;;  %v7889_v7 = vmax.bf16 %v335_v44, %v318_v43 }
  0x25   :  { %v317_v50 = vld [vmem:[#allocation4 + $0x58] sm:$0xf]  ;;  %v334_v51 = vld [vmem:[#allocation4 + $0x5c] sm:$0xf]  ;;  %126 = vst [vmem:[#allocation2 + $0x24] sm:$0x1] %v125_v45 }
  0x26   :  { %58 = vst [vmem:[#allocation2 + $0x10] sm:$0x1] %v57_v46  ;;  %v119_v52 = vsel %vm7837_vm5, 0, %v118_v47  ;;  %v69_v53 = vsel %vm7831_vm4, 0, %v68_v48  ;;  %v130_v54 = vld [vmem:[#allocation2 + $0x34] sm:$0x1]  ;;  %383 = vrot.lane.b32.xlu0 %v7849_v34, %s7746_s0  ;;  %v7897_v14 = vmax.bf16 %v334_v51, %v317_v50 }
  0x27   :  { %v65_v55 = vld [vmem:[#allocation2 + $0x28] sm:$0x1]  ;;  %120 = vst [vmem:[#allocation2 + $0x14] sm:$0x1] %v119_v52  ;;  %70 = vst [vmem:[#allocation2 + $0x30] sm:$0x1] %v69_v53 }
  0x28   :  { %v131_v57 = vsel %vm7837_vm5, 0, %v130_v54  ;;  %v66_v58 = vsel %vm7831_vm4, 0, %v65_v55  ;;  %v127_v59 = vld [vmem:[#allocation2 + $0x2c] sm:$0x1]  ;;  %v83_v60 = vld [vmem:[#allocation2 + $0x58] sm:$0x1]  ;;  %391 = vrot.lane.b32.xlu1 %v7865_v49, %s7746_s0 }
  0x29   :  { %132 = vst [vmem:[#allocation2 + $0x34] sm:$0x1] %v131_v57  ;;  %67 = vst [vmem:[#allocation2 + $0x28] sm:$0x1] %v66_v58  ;;  %v128_v61 = vsel %vm7837_vm5, 0, %v127_v59  ;;  %v84_v62 = vsel %vm7831_vm4, 0, %v83_v60 }
  0x2a   :  { %v145_v63 = vld [vmem:[#allocation2 + $0x5c] sm:$0x1]  ;;  %v71_v1 = vld [vmem:[#allocation2 + $0x38] sm:$0x1]  ;;  %129 = vst [vmem:[#allocation2 + $0x2c] sm:$0x1] %v128_v61  ;;  %389 = vrot.lane.b32.xlu0 %v7873_v56, %s7746_s0 }
  0x2b   :  { %85 = vst [vmem:[#allocation2 + $0x58] sm:$0x1] %v84_v62  ;;  %v146_v2 = vsel %vm7837_vm5, 0, %v145_v63  ;;  %v72_v3 = vsel %vm7831_vm4, 0, %v71_v1  ;;  %v133_v5 = vld [vmem:[#allocation2 + $0x3c] sm:$0x1] }
  0x2c   :  { %v89_v6 = vld [vmem:[#allocation2 + $0x68] sm:$0x1]  ;;  %147 = vst [vmem:[#allocation2 + $0x5c] sm:$0x1] %v146_v2  ;;  %73 = vst [vmem:[#allocation2 + $0x38] sm:$0x1] %v72_v3  ;;  %395 = vrot.lane.b32.xlu1 %v7889_v7, %s7746_s0 }
  0x2d   :  { %v134_v9 = vsel %vm7837_vm5, 0, %v133_v5  ;;  %v90_v10 = vsel %vm7831_vm4, 0, %v89_v6  ;;  %v151_v13 = vld [vmem:[#allocation2 + $0x6c] sm:$0x1]  ;;  %v320_v15 = vld [vmem:[#allocation4 + $0x70] sm:$0xf] }
  0x2e   :  { %v337_v16 = vld [vmem:[#allocation4 + $0x74] sm:$0xf]  ;;  %135 = vst [vmem:[#allocation2 + $0x3c] sm:$0x1] %v134_v9  ;;  %91 = vst [vmem:[#allocation2 + $0x68] sm:$0x1] %v90_v10  ;;  %393 = vrot.lane.b32.xlu0 %v7897_v14, %s7746_s0 }
  0x2f   :  { %v152_v19 = vsel %vm7837_vm5, 0, %v151_v13  ;;  %v319_v20 = vld [vmem:[#allocation4 + $0x68] sm:$0xf]  ;;  %v336_v22 = vld [vmem:[#allocation4 + $0x6c] sm:$0xf]  ;;  %v7905_v26 = vmax.bf16 %v337_v16, %v320_v15  ;;  %vm1319_vm13 = vcmask 1046532  }
  0x30   :  { %153 = vst [vmem:[#allocation2 + $0x6c] sm:$0x1] %v152_v19  ;;  %v86_v23 = vld [vmem:[#allocation2 + $0x60] sm:$0x1]  ;;  %v148_v27 = vld [vmem:[#allocation2 + $0x64] sm:$0x1]  ;;  %v7909_v29 = vmax.bf16 %v336_v22, %v319_v20  ;;  %vm8236_vm14 = vmor %vm1318_vm12, %vm1319_vm13 }
  0x31   :  { %v87_v25 = vsel %vm7831_vm4, 0, %v86_v23  ;;  %v321_v30 = vld [vmem:[#allocation4 + $0x78] sm:$0xf]  ;;  %v338_v31 = vld [vmem:[#allocation4 + $0x7c] sm:$0xf]  ;;  %v149_v32 = vsel %vm7837_vm5, 0, %v148_v27  ;;  %399 = vrot.lane.b32.xlu1 %v7905_v26, %s7746_s0 }
  0x32   :  { %88 = vst [vmem:[#allocation2 + $0x60] sm:$0x1] %v87_v25  ;;  %v313_v33 = vld [vmem:[#allocation4 + $0x38] sm:$0xf]  ;;  %v330_v35 = vld [vmem:[#allocation4 + $0x3c] sm:$0xf]  ;;  %v7917_v38 = vmax.bf16 %v338_v31, %v321_v30  ;;  %397 = vrot.lane.b32.xlu0 %v7909_v29, %s7746_s0 }
  0x33   :  { %150 = vst [vmem:[#allocation2 + $0x64] sm:$0x1] %v149_v32  ;;  %v95_v36 = vld [vmem:[#allocation2 + $0x78] sm:$0x1]  ;;  %v157_v39 = vld [vmem:[#allocation2 + $0x7c] sm:$0x1]  ;;  %v7921_v40 = vmax.bf16 %v330_v35, %v313_v33 }
  0x34   :  { %v96_v37 = vsel %vm7831_vm4, 0, %v95_v36  ;;  %v158_v41 = vsel %vm7837_vm5, 0, %v157_v39  ;;  %v92_v42 = vld [vmem:[#allocation2 + $0x70] sm:$0x1]  ;;  %v154_v44 = vld [vmem:[#allocation2 + $0x74] sm:$0x1] }
  0x35   :  { %97 = vst [vmem:[#allocation2 + $0x78] sm:$0x1] %v96_v37  ;;  %159 = vst [vmem:[#allocation2 + $0x7c] sm:$0x1] %v158_v41  ;;  %v93_v43 = vsel %vm7831_vm4, 0, %v92_v42  ;;  %v155_v46 = vsel %vm7837_vm5, 0, %v154_v44  ;;  %401 = vrot.lane.b32.xlu1 %v7917_v38, %s7746_s0 }
  0x36   :  { %v101_v45 = vld [vmem:[#allocation2 + $0x88] sm:$0x1]  ;;  %94 = vst [vmem:[#allocation2 + $0x70] sm:$0x1] %v93_v43  ;;  %v163_v48 = vld [vmem:[#allocation2 + $0x8c] sm:$0x1]  ;;  %385 = vrot.lane.b32.xlu0 %v7921_v40, %s7746_s0 }
  0x37   :  { %v102_v47 = vsel %vm7831_vm4, 0, %v101_v45  ;;  %156 = vst [vmem:[#allocation2 + $0x74] sm:$0x1] %v155_v46  ;;  %v164_v50 = vsel %vm7837_vm5, 0, %v163_v48  ;;  %v98_v51 = vld [vmem:[#allocation2 + $0x80] sm:$0x1] }
  0x38   :  { %103 = vst [vmem:[#allocation2 + $0x88] sm:$0x1] %v102_v47  ;;  %v160_v52 = vld [vmem:[#allocation2 + $0x84] sm:$0x1]  ;;  %165 = vst [vmem:[#allocation2 + $0x8c] sm:$0x1] %v164_v50 }
  0x39   :  { %v99_v53 = vsel %vm7831_vm4, 0, %v98_v51  ;;  %v161_v54 = vsel %vm7837_vm5, 0, %v160_v52  ;;  %v6446_v55 = vld [vmem:[%s9628_s1 + $0x2] sm:$0x3]  ;;  %v104_v57 = vld [vmem:[#allocation2 + $0x90] sm:$0x1] }
  0x3a   :  { %100 = vst [vmem:[#allocation2 + $0x80] sm:$0x1] %v99_v53  ;;  %162 = vst [vmem:[#allocation2 + $0x84] sm:$0x1] %v161_v54  ;;  %7622 = vmatprep.subr.msk.bf16.mxu0 %vm1005_vm6, %v6446_v55  ;;  %v166_v58 = vld [vmem:[#allocation2 + $0x94] sm:$0x1] }
  0x3b   :  { %v74_v59 = vld [vmem:[#allocation2 + $0x40] sm:$0x1]  ;;  %v105_v60 = vsel %vm7831_vm4, 0, %v104_v57  ;;  %v167_v61 = vsel %vm7837_vm5, 0, %v166_v58  ;;  %v1007_v63 = vsel %vm1005_vm6, %v6446_v55, 0  ;;  %vm172_vm15 = vcmask 60416  }
  0x3c   :  { %v75_v62 = vsel %vm7831_vm4, 0, %v74_v59  ;;  %106 = vst [vmem:[#allocation2 + $0x90] sm:$0x1] %v105_v60  ;;  %168 = vst [vmem:[#allocation2 + $0x94] sm:$0x1] %v167_v61  ;;  %7043 = vmatpush3.bf16.msra.mxu0 %v1007_v63  ;;  %vm174_vm0 = vcmask 57344  }
  0x3d   :  { %76 = vst [vmem:[#allocation2 + $0x40] sm:$0x1] %v75_v62  ;;  %v136_v1 = vld [vmem:[#allocation2 + $0x44] sm:$0x1]  ;;  %v50_v2 = vld [vmem:[#allocation2] sm:$0x1]  ;;  %vm8511_vm1 = vmand %vm174_vm0, %vm48_vm2 }
  0x3e   :  { %v112_v3 = vld [vmem:[#allocation2 + $0x4] sm:$0x1]  ;;  %v137_v5 = vsel %vm7837_vm5, 0, %v136_v1  ;;  %v51_v6 = vsel %vm7831_vm4, 0, %v50_v2  ;;  %v710_v10 = vld [vmem:[%s9628_s1] sm:$0x3]  ;;  %vm8535_vm2 = vmand %vm174_vm0, %vm110_vm3 }
  0x3f   :  { %v113_v9 = vsel %vm7837_vm5, 0, %v112_v3  ;;  %138 = vst [vmem:[#allocation2 + $0x44] sm:$0x1] %v137_v5  ;;  %52 = vst [vmem:[#allocation2] sm:$0x1] %v51_v6  ;;  %7623 = vmatprep.subr.msk.bf16.mxu0 %vm1005_vm6, %v710_v10  ;;  %v7992_v57 = vsel %vm1005_vm6, %v710_v10, 0 }
  0x40   :  { %114 = vst [vmem:[#allocation2 + $0x4] sm:$0x1] %v113_v9  ;;  %v80_v13 = vld [vmem:[#allocation2 + $0x50] sm:$0x1]  ;;  %v142_v16 = vld [vmem:[#allocation2 + $0x54] sm:$0x1] }
  0x41   :  { %v81_v15 = vsel %vm7831_vm4, 0, %v80_v13  ;;  %v143_v19 = vsel %vm7837_vm5, 0, %v142_v16  ;;  %vm727_vm7 = vsmask.f32 3328  ;;  %vm728_vm8 = vsmask.f32 7440 }
  0x42   :  { %82 = vst [vmem:[#allocation2 + $0x50] sm:$0x1] %v81_v15  ;;  %144 = vst [vmem:[#allocation2 + $0x54] sm:$0x1] %v143_v19  ;;  %v610_v59 = vld [vmem:[#allocation2 + $0x18] sm:$0xf] }
  0x43   :  { %vm7986_vm9 = vmor %vm727_vm7, %vm728_vm8  ;;  %v613_v60 = vld [vmem:[#allocation2 + $0x1c] sm:$0x1]  ;;  %v598_v5 = vld [vmem:[#allocation2 + $0x8] sm:$0xf] }
  0x44   :  { %v601_v13 = vld [vmem:[#allocation2 + $0xc] sm:$0x1] }
  0x46   :  { %v7966_v20 = vld [vmem:[#allocation2] sm:$0xf] }
  0x47   :  { %v731_v22 = vshrl.u32 %v7966_v20, 16  ;;  %v734_v23 = vshll.u32 %v7966_v20, 16  ;;  %v7974_v33 = vld [vmem:[#allocation2 + $0x4] sm:$0x1] }
  0x48   :  { %v740_v36 = vshll.u32 %v7974_v33, 16 }
  0x49   :  { %v7970_v25 = vld [vmem:[#allocation2 + $0x50] sm:$0xf]  ;;  %v733_v27 = vrot.slane %v731_v22, 4  ;;  %v736_v30 = vrot.slane %v734_v23, 5  ;;  %v7977_v42 = vld [vmem:[#allocation2 + $0x54] sm:$0x1] }
  0x4a   :  { %v843_v31 = vshrl.u32 %v7970_v25, 16  ;;  %v846_v32 = vshll.u32 %v7970_v25, 16  ;;  %v7982_v46 = vrot.slane %v740_v36, 5  ;;  %v852_v47 = vshll.u32 %v7977_v42, 16 }
  0x4b   :  { %v737_v35 = vor.u32 %v736_v30, %v733_v27 }
  0x4c   :  { %v845_v37 = vrot.slane %v843_v31, 4  ;;  %v848_v39 = vrot.slane %v846_v32, 5  ;;  %v7999_v63 = vrot.slane %v852_v47, 5  ;;  %v604_v47 = vld [vmem:[#allocation2 + $0x10] sm:$0xf] }
  0x4d   :  { %v7980_v45 = vrot.slane %v737_v35, 4 }
  0x4e   :  { %v849_v51 = vor.u32 %v848_v39, %v845_v37 }
  0x4f   :  { %v743_v62 = vsel %vm7986_vm9, %v7980_v45, %v7982_v46 }
  0x8a   :  { %v376_v41 = vpop.permute.xlu1 %375 }
  0x8b   :  { %v421_v43 = vmax.bf16 %v376_v41, %v7809_v4  ;;  %v1323_v4 = vrot.slane %v7974_v33, 5 }
  0x8c   :  { %v372_v44 = vpop.permute.xlu0 %371 }
  0x8d   :  { %v419_v48 = vmax.bf16 %v372_v44, %v7811_v8  ;;  %v452_v52 = vshrl.u32 %v421_v43, 16  ;;  %v455_v53 = vshll.u32 %v421_v43, 16  ;;  %v619_v43 = vld [vmem:[#allocation2 + $0x24] sm:$0x1] }
  0x8e   :  { %v378_v55 = vpop.permute.xlu1 %377 }
  0x8f   :  { %v436_v54 = vshrl.u32 %v419_v48, 16  ;;  %v454_v58 = vrot.slane %v452_v52, 7  ;;  %v422_v61 = vmax.bf16 %v378_v55, %v7815_v11  ;;  %v439_v3 = vshll.u32 %v419_v48, 16 }
  0x90   :  { %v374_v8 = vpop.permute.xlu0 %373  ;;  %v8008_v11 = vrot.slane %v849_v51, 4 }
  0x91   :  { %v438_v2 = vrot.slane %v436_v54, 7  ;;  %v420_v6 = vmax.bf16 %v374_v8, %v7819_v12  ;;  %v457_v9 = vor.u32 %v455_v53, %v454_v58  ;;  %v458_v10 = vrot.slane %v454_v58, 4  ;;  %v616_v12 = vld [vmem:[#allocation2 + $0x20] sm:$0xf]  ;;  %v607_v53 = vld [vmem:[#allocation2 + $0x14] sm:$0x1] }
  0x92   :  { %v460_v15 = vshrl.u32 %v422_v61, 16  ;;  %v463_v16 = vshll.u32 %v422_v61, 16  ;;  %v382_v30 = vpop.permute.xlu1 %381 }
  0x93   :  { %v441_v19 = vor.u32 %v439_v3, %v438_v2  ;;  %v442_v22 = vrot.slane %v438_v2, 4  ;;  %v444_v23 = vshrl.u32 %v420_v6, 16  ;;  %v447_v27 = vshll.u32 %v420_v6, 16 }
  0x94   :  { %v611_v31 = vsel %vm8003_vm10, %v457_v9, %v610_v59  ;;  %v614_v32 = vsel %vm7831_vm4, %v458_v10, %v613_v60  ;;  %v462_v35 = vrot.slane %v460_v15, 7  ;;  %v424_v36 = vmax.bf16 %v382_v30, %v7823_v17  ;;  %v380_v37 = vpop.permute.xlu0 %379 }
  0x95   :  { %612 = vst [vmem:[#allocation2 + $0x18] sm:$0xf] %v611_v31  ;;  %615 = vst [vmem:[#allocation2 + $0x1c] sm:$0x1] %v614_v32  ;;  %v599_v39 = vsel %vm8003_vm10, %v441_v19, %v598_v5  ;;  %v602_v41 = vsel %vm7831_vm4, %v442_v22, %v601_v13  ;;  %v446_v44 = vrot.slane %v444_v23, 7  ;;  %v423_v48 = vmax.bf16 %v380_v37, %v7827_v18 }
  0x96   :  { %600 = vst [vmem:[#allocation2 + $0x8] sm:$0xf] %v599_v39  ;;  %603 = vst [vmem:[#allocation2 + $0xc] sm:$0x1] %v602_v41  ;;  %v465_v51 = vor.u32 %v463_v16, %v462_v35  ;;  %v466_v52 = vrot.slane %v462_v35, 4  ;;  %v476_v17 = vshrl.u32 %v424_v36, 16  ;;  %v388_v61 = vpop.permute.xlu1 %387 }
  0x97   :  { %v479_v54 = vshll.u32 %v424_v36, 16  ;;  %v449_v55 = vor.u32 %v447_v27, %v446_v44  ;;  %v450_v58 = vrot.slane %v446_v44, 4  ;;  %v468_v59 = vshrl.u32 %v423_v48, 16  ;;  %v628_v18 = vld [vmem:[#allocation2 + $0x30] sm:$0xf] }
  0x98   :  { %v471_v60 = vshll.u32 %v423_v48, 16  ;;  %v617_v8 = vsel %vm8003_vm10, %v465_v51, %v616_v12  ;;  %v620_v2 = vsel %vm7831_vm4, %v466_v52, %v619_v43  ;;  %v478_v3 = vrot.slane %v476_v17, 7  ;;  %v384_v6 = vpop.permute.xlu0 %383  ;;  %v631_v13 = vld [vmem:[#allocation2 + $0x34] sm:$0x1]  ;;  %v622_v16 = vld [vmem:[#allocation2 + $0x28] sm:$0xf] }
  0x99   :  { %v427_v5 = vmax.bf16 %v388_v61, %v7843_v28  ;;  %618 = vst [vmem:[#allocation2 + $0x20] sm:$0xf] %v617_v8  ;;  %621 = vst [vmem:[#allocation2 + $0x24] sm:$0x1] %v620_v2  ;;  %v605_v9 = vsel %vm8003_vm10, %v449_v55, %v604_v47  ;;  %v608_v10 = vsel %vm7831_vm4, %v450_v58, %v607_v53  ;;  %v470_v15 = vrot.slane %v468_v59, 7 }
  0x9a   :  { %v425_v19 = vmax.bf16 %v384_v6, %v7849_v34  ;;  %606 = vst [vmem:[#allocation2 + $0x10] sm:$0xf] %v605_v9  ;;  %609 = vst [vmem:[#allocation2 + $0x14] sm:$0x1] %v608_v10  ;;  %v481_v22 = vor.u32 %v479_v54, %v478_v3  ;;  %v482_v23 = vrot.slane %v478_v3, 4  ;;  %v392_v36 = vpop.permute.xlu1 %391 }
  0x9b   :  { %v625_v27 = vld [vmem:[#allocation2 + $0x2c] sm:$0x1]  ;;  %v500_v28 = vshrl.u32 %v427_v5, 16  ;;  %v503_v30 = vshll.u32 %v427_v5, 16  ;;  %v473_v31 = vor.u32 %v471_v60, %v470_v15  ;;  %v474_v32 = vrot.slane %v470_v15, 4 }
  0x9c   :  { %v484_v35 = vshrl.u32 %v425_v19, 16  ;;  %v487_v12 = vshll.u32 %v425_v19, 16  ;;  %v629_v37 = vsel %vm8003_vm10, %v481_v22, %v628_v18  ;;  %v632_v39 = vsel %vm7831_vm4, %v482_v23, %v631_v13  ;;  %v646_v34 = vld [vmem:[#allocation2 + $0x58] sm:$0xf]  ;;  %v390_v44 = vpop.permute.xlu0 %389  ;;  %v649_v51 = vld [vmem:[#allocation2 + $0x5c] sm:$0x1] }
  0x9d   :  { %v502_v41 = vrot.slane %v500_v28, 7  ;;  %v429_v43 = vmax.bf16 %v392_v36, %v7865_v49  ;;  %630 = vst [vmem:[#allocation2 + $0x30] sm:$0xf] %v629_v37  ;;  %633 = vst [vmem:[#allocation2 + $0x34] sm:$0x1] %v632_v39  ;;  %v623_v47 = vsel %vm8003_vm10, %v473_v31, %v622_v16  ;;  %v626_v48 = vsel %vm7831_vm4, %v474_v32, %v625_v27 }
  0x9e   :  { %v486_v52 = vrot.slane %v484_v35, 7  ;;  %v634_v53 = vld [vmem:[#allocation2 + $0x38] sm:$0xf]  ;;  %v428_v17 = vmax.bf16 %v390_v44, %v7873_v56  ;;  %624 = vst [vmem:[#allocation2 + $0x28] sm:$0xf] %v623_v47  ;;  %v396_v3 = vpop.permute.xlu1 %395 }
  0x9f   :  { %627 = vst [vmem:[#allocation2 + $0x2c] sm:$0x1] %v626_v48  ;;  %v505_v54 = vor.u32 %v503_v30, %v502_v41  ;;  %v506_v55 = vrot.slane %v502_v41, 4  ;;  %v637_v58 = vld [vmem:[#allocation2 + $0x3c] sm:$0x1]  ;;  %v516_v49 = vshrl.u32 %v429_v43, 16  ;;  %v431_v9 = vmax.bf16 %v396_v3, %v7889_v7 }
  0xa0   :  { %v519_v59 = vshll.u32 %v429_v43, 16  ;;  %v489_v60 = vor.u32 %v487_v12, %v486_v52  ;;  %v490_v61 = vrot.slane %v486_v52, 4  ;;  %v508_v8 = vshrl.u32 %v428_v17, 16  ;;  %v658_v56 = vld [vmem:[#allocation2 + $0x68] sm:$0xf]  ;;  %v394_v10 = vpop.permute.xlu0 %393 }
  0xa1   :  { %v511_v2 = vshll.u32 %v428_v17, 16  ;;  %v647_v18 = vsel %vm8003_vm10, %v505_v54, %v646_v34  ;;  %v650_v5 = vsel %vm7831_vm4, %v506_v55, %v649_v51  ;;  %v518_v6 = vrot.slane %v516_v49, 7  ;;  %v661_v16 = vld [vmem:[#allocation2 + $0x6c] sm:$0x1]  ;;  %v652_v22 = vld [vmem:[#allocation2 + $0x60] sm:$0xf] }
  0xa2   :  { %648 = vst [vmem:[#allocation2 + $0x58] sm:$0xf] %v647_v18  ;;  %651 = vst [vmem:[#allocation2 + $0x5c] sm:$0x1] %v650_v5  ;;  %v635_v13 = vsel %vm8003_vm10, %v489_v60, %v634_v53  ;;  %v638_v15 = vsel %vm7831_vm4, %v490_v61, %v637_v58  ;;  %v510_v19 = vrot.slane %v508_v8, 7  ;;  %v430_v23 = vmax.bf16 %v394_v10, %v7897_v14 }
  0xa3   :  { %636 = vst [vmem:[#allocation2 + $0x38] sm:$0xf] %v635_v13  ;;  %639 = vst [vmem:[#allocation2 + $0x3c] sm:$0x1] %v638_v15  ;;  %v521_v27 = vor.u32 %v519_v59, %v518_v6  ;;  %v522_v28 = vrot.slane %v518_v6, 4  ;;  %v532_v7 = vshrl.u32 %v431_v9, 16  ;;  %v400_v37 = vpop.permute.xlu1 %399 }
  0xa4   :  { %v655_v30 = vld [vmem:[#allocation2 + $0x64] sm:$0x1]  ;;  %v535_v31 = vshll.u32 %v431_v9, 16  ;;  %v513_v32 = vor.u32 %v511_v2, %v510_v19  ;;  %v514_v35 = vrot.slane %v510_v19, 4  ;;  %v524_v12 = vshrl.u32 %v430_v23, 16  ;;  %v398_v44 = vpop.permute.xlu0 %397 }
  0xa5   :  { %v527_v36 = vshll.u32 %v430_v23, 16  ;;  %v659_v39 = vsel %vm8003_vm10, %v521_v27, %v658_v56  ;;  %v662_v41 = vsel %vm7831_vm4, %v522_v28, %v661_v16  ;;  %v534_v34 = vrot.slane %v532_v7, 7  ;;  %v670_v14 = vld [vmem:[#allocation2 + $0x78] sm:$0xf]  ;;  %v673_v51 = vld [vmem:[#allocation2 + $0x7c] sm:$0x1] }
  0xa6   :  { %v433_v43 = vmax.bf16 %v400_v37, %v7905_v26  ;;  %660 = vst [vmem:[#allocation2 + $0x68] sm:$0xf] %v659_v39  ;;  %663 = vst [vmem:[#allocation2 + $0x6c] sm:$0x1] %v662_v41  ;;  %v653_v47 = vsel %vm8003_vm10, %v513_v32, %v652_v22  ;;  %v656_v48 = vsel %vm7831_vm4, %v514_v35, %v655_v30  ;;  %v526_v52 = vrot.slane %v524_v12, 7 }
  0xa7   :  { %v664_v53 = vld [vmem:[#allocation2 + $0x70] sm:$0xf]  ;;  %v432_v17 = vmax.bf16 %v398_v44, %v7909_v29  ;;  %654 = vst [vmem:[#allocation2 + $0x60] sm:$0xf] %v653_v47  ;;  %657 = vst [vmem:[#allocation2 + $0x64] sm:$0x1] %v656_v48  ;;  %v537_v54 = vor.u32 %v535_v31, %v534_v34  ;;  %v402_v2 = vpop.permute.xlu1 %401 }
  0xa8   :  { %v538_v55 = vrot.slane %v534_v34, 4  ;;  %v667_v58 = vld [vmem:[#allocation2 + $0x74] sm:$0x1]  ;;  %v548_v26 = vshrl.u32 %v433_v43, 16  ;;  %v551_v49 = vshll.u32 %v433_v43, 16  ;;  %v529_v59 = vor.u32 %v527_v36, %v526_v52  ;;  %v386_v9 = vpop.permute.xlu0 %385 }
  0xa9   :  { %v530_v60 = vrot.slane %v526_v52, 4  ;;  %v540_v61 = vshrl.u32 %v432_v17, 16  ;;  %v543_v8 = vshll.u32 %v432_v17, 16  ;;  %v671_v3 = vsel %vm8003_vm10, %v537_v54, %v670_v14  ;;  %v682_v29 = vld [vmem:[#allocation2 + $0x88] sm:$0xf] }
  0xaa   :  { %v674_v18 = vsel %vm7831_vm4, %v538_v55, %v673_v51  ;;  %v550_v5 = vrot.slane %v548_v26, 7  ;;  %v685_v6 = vld [vmem:[#allocation2 + $0x8c] sm:$0x1]  ;;  %v434_v56 = vmax.bf16 %v402_v2, %v7917_v38  ;;  %672 = vst [vmem:[#allocation2 + $0x78] sm:$0xf] %v671_v3  ;;  %v665_v10 = vsel %vm8003_vm10, %v529_v59, %v664_v53 }
  0xab   :  { %675 = vst [vmem:[#allocation2 + $0x7c] sm:$0x1] %v674_v18  ;;  %v668_v13 = vsel %vm7831_vm4, %v530_v60, %v667_v58  ;;  %v542_v15 = vrot.slane %v540_v61, 7  ;;  %v676_v16 = vld [vmem:[#allocation2 + $0x80] sm:$0xf]  ;;  %v426_v19 = vmax.bf16 %v386_v9, %v7921_v40  ;;  %v855_v26 = vsel %vm7986_vm9, %v8008_v11, %v7999_v63 }
  0xac   :  { %v8070_v22 = vld [vmem:[#allocation2 + $0x8] sm:$0xf]  ;;  %666 = vst [vmem:[#allocation2 + $0x70] sm:$0xf] %v665_v10  ;;  %669 = vst [vmem:[#allocation2 + $0x74] sm:$0x1] %v668_v13  ;;  %v553_v23 = vor.u32 %v551_v49, %v550_v5 }
  0xad   :  { %v554_v27 = vrot.slane %v550_v5, 4  ;;  %v679_v38 = vld [vmem:[#allocation2 + $0x84] sm:$0x1]  ;;  %v556_v28 = vshrl.u32 %v434_v56, 16  ;;  %v559_v30 = vshll.u32 %v434_v56, 16  ;;  %v545_v7 = vor.u32 %v543_v8, %v542_v15 }
  0xae   :  { %v546_v31 = vrot.slane %v542_v15, 4  ;;  %v688_v32 = vld [vmem:[#allocation2 + $0x90] sm:$0xf]  ;;  %v691_v35 = vld [vmem:[#allocation2 + $0x94] sm:$0x1]  ;;  %v492_v12 = vshrl.u32 %v426_v19, 16  ;;  %v683_v37 = vsel %vm8003_vm10, %v553_v23, %v682_v29 }
  0xaf   :  { %v495_v36 = vshll.u32 %v426_v19, 16  ;;  %v686_v40 = vsel %vm7831_vm4, %v554_v27, %v685_v6  ;;  %v558_v39 = vrot.slane %v556_v28, 7  ;;  %v640_v41 = vld [vmem:[#allocation2 + $0x40] sm:$0xf]  ;;  %v8076_v34 = vld [vmem:[#allocation2 + $0xc] sm:$0x1]  ;;  %v677_v43 = vsel %vm8003_vm10, %v545_v7, %v676_v16 }
  0xb0   :  { %v745_v14 = vshrl.u32 %v8070_v22, 16  ;;  %684 = vst [vmem:[#allocation2 + $0x88] sm:$0xf] %v683_v37  ;;  %687 = vst [vmem:[#allocation2 + $0x8c] sm:$0x1] %v686_v40  ;;  %v680_v44 = vsel %vm7831_vm4, %v546_v31, %v679_v38  ;;  %v494_v47 = vrot.slane %v492_v12, 7 }
  0xb1   :  { %v748_v48 = vshll.u32 %v8070_v22, 16  ;;  %v8084_v51 = vld [vmem:[#allocation2 + $0x10] sm:$0xf]  ;;  %v8086_v52 = vld [vmem:[#allocation2] sm:$0xe]  ;;  %v561_v53 = vor.u32 %v559_v30, %v558_v39  ;;  %v562_v17 = vrot.slane %v558_v39, 4 }
  0xb2   :  { %678 = vst [vmem:[#allocation2 + $0x80] sm:$0xf] %v677_v43  ;;  %681 = vst [vmem:[#allocation2 + $0x84] sm:$0x1] %v680_v44  ;;  %v643_v54 = vld [vmem:[#allocation2 + $0x44] sm:$0x1]  ;;  %v497_v49 = vor.u32 %v495_v36, %v494_v47 }
  0xb3   :  { %v747_v55 = vrot.slane %v745_v14, 4  ;;  %v8088_v58 = vld [vmem:[#allocation2 + $0x18] sm:$0xf]  ;;  %v498_v59 = vrot.slane %v494_v47, 4  ;;  %v750_v60 = vrot.slane %v748_v48, 5  ;;  %v754_v61 = vshll.u32 %v8076_v34, 16 }
  0xb4   :  { %v8095_v8 = vld [vmem:[#allocation2 + $0x14] sm:$0x1]  ;;  %v689_v2 = vsel %vm8003_vm10, %v561_v53, %v688_v32  ;;  %v692_v3 = vsel %vm7831_vm4, %v562_v17, %v691_v35  ;;  %v759_v18 = vshrl.u32 %v8084_v51, 16  ;;  %v6479_v5 = vrot.slane %v8086_v52, 9  ;;  %v8107_v9 = vld [vmem:[#allocation2 + $0x1c] sm:$0x1] }
  0xb5   :  { %690 = vst [vmem:[#allocation2 + $0x90] sm:$0xf] %v689_v2  ;;  %693 = vst [vmem:[#allocation2 + $0x94] sm:$0x1] %v692_v3  ;;  %v641_v29 = vsel %vm8003_vm10, %v497_v49, %v640_v41  ;;  %v644_v6 = vsel %vm7831_vm4, %v498_v59, %v643_v54  ;;  %v751_v56 = vor.u32 %v750_v60, %v747_v55  ;;  %v762_v10 = vshll.u32 %v8084_v51, 16 }
  0xb6   :  { %v8110_v13 = vld [vmem:[#allocation2 + $0x50] sm:$0xe]  ;;  %642 = vst [vmem:[#allocation2 + $0x40] sm:$0xf] %v641_v29  ;;  %645 = vst [vmem:[#allocation2 + $0x44] sm:$0x1] %v644_v6 }
  0xb7   :  { %v761_v15 = vrot.slane %v759_v18, 4  ;;  %v768_v16 = vshll.u32 %v8095_v8, 16  ;;  %v773_v19 = vshrl.u32 %v8088_v58, 16  ;;  %v776_v1 = vshll.u32 %v8088_v58, 16  ;;  %v8115_v23 = vld [vmem:[#allocation2 + $0x20] sm:$0xf] }
  0xb8   :  { %v752_v27 = vrot.slane %v751_v56, 4  ;;  %v756_v38 = vrot.slane %v754_v61, 5  ;;  %v764_v28 = vrot.slane %v762_v10, 5  ;;  %v782_v30 = vshll.u32 %v8107_v9, 16  ;;  %v8118_v35 = vld [vmem:[#allocation2 + $0x28] sm:$0xf] }
  0xb9   :  { %v770_v7 = vrot.slane %v768_v16, 5  ;;  %v775_v31 = vrot.slane %v773_v19, 4  ;;  %v778_v32 = vrot.slane %v776_v1, 5  ;;  %v8123_v39 = vld [vmem:[#allocation2 + $0x24] sm:$0x1]  ;;  %v787_v14 = vshrl.u32 %v8115_v23, 16 }
  0xba   :  { %v757_v36 = vsel %vm7986_vm9, %v752_v27, %v756_v38  ;;  %v765_v37 = vor.u32 %v764_v28, %v761_v15  ;;  %v784_v40 = vrot.slane %v782_v30, 5  ;;  %v8125_v41 = vld [vmem:[#allocation2 + $0x2c] sm:$0x1]  ;;  %v790_v47 = vshll.u32 %v8115_v23, 16  ;;  %v8135_v53 = vld [vmem:[#allocation2 + $0x30] sm:$0xf] }
  0xbb   :  { %v6447_v43 = vcombine.low %v743_v62, %v757_v36  ;;  %v779_v44 = vor.u32 %v778_v32, %v775_v31  ;;  %v796_v48 = vshll.u32 %v8123_v39, 16  ;;  %v789_v54 = vrot.slane %v787_v14, 4  ;;  %v8139_v59 = vld [vmem:[#allocation2 + $0x38] sm:$0xf]  ;;  %v8143_v61 = vld [vmem:[#allocation2 + $0x34] sm:$0x1] }
  0xbc   :  { %v766_v17 = vrot.slane %v765_v37, 4  ;;  %v801_v55 = vshrl.u32 %v8118_v35, 16  ;;  %v804_v49 = vshll.u32 %v8118_v35, 16  ;;  %v792_v45 = vrot.slane %v790_v47, 5  ;;  %v8145_v2 = vld [vmem:[#allocation2 + $0x58] sm:$0xf] }
  0xbd   :  { %7044 = vmatprep.mubr.msk.bf16.mxu0 %vm980_vm11, %v6447_v43  ;;  %v780_v60 = vrot.slane %v779_v44, 4  ;;  %v798_v46 = vrot.slane %v796_v48, 5  ;;  %v810_v62 = vshll.u32 %v8125_v41, 16  ;;  %v815_v6 = vshrl.u32 %v8135_v53, 16  ;;  %v8152_v16 = vld [vmem:[#allocation2 + $0x3c] sm:$0x1] }
  0xbe   :  { %v771_v3 = vsel %vm7986_vm9, %v766_v17, %v770_v7  ;;  %v803_v18 = vrot.slane %v801_v55, 4  ;;  %v806_v29 = vrot.slane %v804_v49, 5  ;;  %v793_v10 = vor.u32 %v792_v45, %v789_v54  ;;  %v8159_v30 = vld [vmem:[%s9628_s1 + $0x4] sm:$0x3]  ;;  %v8165_v43 = vld [vmem:[#allocation2 + $0x5c] sm:$0x1] }
  0xbf   :  { %v785_v56 = vsel %vm7986_vm9, %v780_v60, %v784_v40  ;;  %v812_v15 = vrot.slane %v810_v62, 5  ;;  %v818_v19 = vshll.u32 %v8135_v53, 16  ;;  %v817_v38 = vrot.slane %v815_v6, 4  ;;  %v8168_v47 = vld [vmem:[#allocation2 + $0x68] sm:$0xf] }
  0xc0   :  { %v6448_v1 = vcombine.low %v771_v3, %v785_v56  ;;  %v807_v27 = vor.u32 %v806_v29, %v803_v18  ;;  %v824_v28 = vshll.u32 %v8143_v61, 16  ;;  %v794_v7 = vrot.slane %v793_v10, 4  ;;  %v8173_v49 = vld [vmem:[#allocation2 + $0x60] sm:$0xf]  ;;  %v8181_v6 = vld [vmem:[#allocation2 + $0x64] sm:$0x1] }
  0xc1   :  { %v820_v31 = vrot.slane %v818_v19, 5  ;;  %v829_v32 = vshrl.u32 %v8139_v59, 16  ;;  %v832_v36 = vshll.u32 %v8139_v59, 16  ;;  %v838_v14 = vshll.u32 %v8152_v16, 16  ;;  %v8183_v10 = vld [vmem:[#allocation2 + $0x6c] sm:$0x1] }
  0xc2   :  { %7045 = vmatmul.mubr.msk.bf16.vlgmr.msra.gmra.mrb[0].mxu0 %vm980_vm11, %v6448_v1  ;;  %v808_v37 = vrot.slane %v807_v27, 4  ;;  %v826_v40 = vrot.slane %v824_v28, 5  ;;  %v857_v44 = vshrl.u32 %v8145_v2, 16  ;;  %v799_v48 = vsel %vm7986_vm9, %v794_v7, %v798_v46 }
  0xc3   :  { %7061 = vmatpush3.bf16.msra.mxu0 %v7992_v57  ;;  %v821_v17 = vor.u32 %v820_v31, %v817_v38  ;;  %v831_v54 = vrot.slane %v829_v32, 4  ;;  %v834_v55 = vrot.slane %v832_v36, 5  ;;  %v840_v45 = vrot.slane %v838_v14, 5  ;;  %v8192_v31 = vld [vmem:[#allocation2 + $0x70] sm:$0xf] }
  0xc4   :  { %v813_v60 = vsel %vm7986_vm9, %v808_v37, %v812_v15  ;;  %v859_v62 = vrot.slane %v857_v44, 4  ;;  %v860_v3 = vshll.u32 %v8145_v2, 16  ;;  %7624 = vmatprep.subr.msk.bf16.mxu0 %vm1005_vm6, %v8159_v30  ;;  %v866_v46 = vshll.u32 %v8165_v43, 16  ;;  %v8194_v32 = vld [vmem:[#allocation2 + $0x78] sm:$0xf] }
  0xc5   :  { %v6449_v18 = vcombine.low %v799_v48, %v813_v60  ;;  %v822_v57 = vrot.slane %v821_v17, 4  ;;  %v835_v29 = vor.u32 %v834_v55, %v831_v54  ;;  %v871_v19 = vshrl.u32 %v8173_v49, 16 }
  0xc6   :  { %v862_v56 = vrot.slane %v860_v3, 5  ;;  %v874_v15 = vshll.u32 %v8173_v49, 16  ;;  %v880_v1 = vshll.u32 %v8181_v6, 16  ;;  %v868_v28 = vrot.slane %v866_v46, 5 }
  0xc7   :  { %7048 = vmatprep.mubr.msk.bf16.mxu0 %vm980_vm11, %v6449_v18  ;;  %v827_v27 = vsel %vm7986_vm9, %v822_v57, %v826_v40  ;;  %v836_v38 = vrot.slane %v835_v29, 4  ;;  %v885_v7 = vshrl.u32 %v8168_v47, 16  ;;  %v873_v37 = vrot.slane %v871_v19, 4  ;;  %v8200_v18 = vld [vmem:[#allocation2 + $0x74] sm:$0x1] }
  0xc8   :  { %v863_v36 = vor.u32 %v862_v56, %v859_v62  ;;  %v876_v14 = vrot.slane %v874_v15, 5  ;;  %v882_v44 = vrot.slane %v880_v1, 5  ;;  %v888_v54 = vshll.u32 %v8168_v47, 16  ;;  %v8203_v62 = vld [vmem:[#allocation2 + $0x7c] sm:$0x1] }
  0xc9   :  { %v841_v48 = vsel %vm7986_vm9, %v836_v38, %v840_v45  ;;  %v887_v17 = vrot.slane %v885_v7, 4  ;;  %v894_v40 = vshll.u32 %v8183_v10, 16  ;;  %v899_v57 = vshrl.u32 %v8192_v31, 16  ;;  %v8207_v45 = vld [vmem:[#allocation2 + $0x88] sm:$0xf] }
  0xca   :  { %v6450_v55 = vcombine.low %v827_v27, %v841_v48  ;;  %v864_v60 = vrot.slane %v863_v36, 4  ;;  %v877_v3 = vor.u32 %v876_v14, %v873_v37  ;;  %v890_v29 = vrot.slane %v888_v54, 5  ;;  %v8214_v7 = vld [vmem:[#allocation2 + $0x80] sm:$0xf] }
  0xcb   :  { %v902_v46 = vshll.u32 %v8192_v31, 16  ;;  %v908_v56 = vshll.u32 %v8200_v18, 16  ;;  %v1355_v19 = vrot.slane %v7977_v42, 5  ;;  %v901_v27 = vrot.slane %v899_v57, 4  ;;  %v8226_v57 = vld [vmem:[#allocation2 + $0x84] sm:$0x1] }
  0xcc   :  { %7049 = vmatmul.mubr.msk.bf16.gmra.mrb[4].mxu0 %vm980_vm11, %v6450_v55  ;;  %v869_v15 = vsel %vm7986_vm9, %v864_v60, %v868_v28  ;;  %v878_v1 = vrot.slane %v877_v3, 4  ;;  %v913_v38 = vshrl.u32 %v8194_v32, 16  ;;  %v891_v37 = vor.u32 %v890_v29, %v887_v17 }
  0xcd   :  { %v6451_v36 = vcombine.low %v855_v26, %v869_v15  ;;  %v896_v14 = vrot.slane %v894_v40, 5  ;;  %v904_v42 = vrot.slane %v902_v46, 5  ;;  %v916_v28 = vshll.u32 %v8194_v32, 16 }
  0xce   :  { %v883_v48 = vsel %vm7986_vm9, %v878_v1, %v882_v44  ;;  %v915_v54 = vrot.slane %v913_v38, 4  ;;  %v922_v55 = vshll.u32 %v8203_v62, 16  ;;  %v892_v60 = vrot.slane %v891_v37, 4  ;;  %v8240_v37 = vld [vmem:[#allocation2 + $0x8c] sm:$0x1] }
  0xcf   :  { %7052 = vmatprep.mubr.msk.bf16.mxu0 %vm980_vm11, %v6451_v36  ;;  %v905_v3 = vor.u32 %v904_v42, %v901_v27  ;;  %v927_v63 = vshrl.u32 %v8214_v7, 16  ;;  %v930_v11 = vshll.u32 %v8214_v7, 16  ;;  %v910_v26 = vrot.slane %v908_v56, 5 }
  0xd0   :  { %v918_v17 = vrot.slane %v916_v28, 5  ;;  %v936_v40 = vshll.u32 %v8226_v57, 16  ;;  %v941_v44 = vshrl.u32 %v8207_v45, 16  ;;  %v897_v29 = vsel %vm7986_vm9, %v892_v60, %v896_v14  ;;  %v1271_v60 = vld [vmem:[#allocation2 + $0x8] sm:$0xe] }
  0xd1   :  { %v906_v46 = vrot.slane %v905_v3, 4  ;;  %v929_v15 = vrot.slane %v927_v63, 4  ;;  %v932_v1 = vrot.slane %v930_v11, 5  ;;  %v6452_v38 = vcombine.low %v883_v48, %v897_v29 }
  0xd2   :  { %v919_v36 = vor.u32 %v918_v17, %v915_v54  ;;  %v924_v56 = vrot.slane %v922_v55, 5  ;;  %v938_v42 = vrot.slane %v936_v40, 5  ;;  %v943_v0 = vrot.slane %v941_v44, 4  ;;  %v1272_v54 = vld [vmem:[#allocation2 + $0x10] sm:$0xe] }
  0xd3   :  { %v933_v28 = vor.u32 %v932_v1, %v929_v15  ;;  %v944_v12 = vshll.u32 %v8207_v45, 16  ;;  %v950_v14 = vshll.u32 %v8240_v37, 16  ;;  %v911_v3 = vsel %vm7986_vm9, %v906_v46, %v910_v26  ;;  %v1273_v55 = vld [vmem:[#allocation2 + $0x18] sm:$0xe]  ;;  %v1274_v44 = vld [vmem:[#allocation2 + $0x20] sm:$0xe] }
  0xd4   :  { %7053 = vmatmul.mubr.msk.bf16.gmra.mrb[8].mxu0 %vm980_vm11, %v6452_v38  ;;  %v920_v63 = vrot.slane %v919_v36, 4  ;;  %v8253_v48 = vsel %vm8236_vm14, %v6479_v5, %v1323_v4  ;;  %v1327_v11 = vrot.slane %v8076_v34, 5  ;;  %v9645_v29 = vrot.slane %v8110_v13, 9  ;;  %v1275_v34 = vld [vmem:[#allocation2 + $0x28] sm:$0xe] }
  0xd5   :  { %v934_v17 = vrot.slane %v933_v28, 4  ;;  %v946_v40 = vrot.slane %v944_v12, 5  ;;  %v1331_v33 = vrot.slane %v8095_v8, 5  ;;  %v1335_v52 = vrot.slane %v8107_v9, 5  ;;  %v1276_v1 = vld [vmem:[#allocation2 + $0x30] sm:$0xe] }
  0xd6   :  { %v8260_v26 = vsel %vm8236_vm14, %v9645_v29, %v1355_v19  ;;  %v925_v4 = vsel %vm7986_vm9, %v920_v63, %v924_v56  ;;  %v6463_v5 = vcombine.low %v7966_v20, %v8070_v22  ;;  %v952_v15 = vrot.slane %v950_v14, 5  ;;  %v1277_v22 = vld [vmem:[#allocation2 + $0x38] sm:$0xe] }
  0xd7   :  { %v6453_v46 = vcombine.low %v911_v3, %v925_v4  ;;  %v939_v12 = vsel %vm7986_vm9, %v934_v17, %v938_v42  ;;  %v947_v13 = vor.u32 %v946_v40, %v943_v0  ;;  %v6480_v19 = vrot.slane %v1271_v60, 9  ;;  %v1279_v60 = vld [vmem:[#allocation2 + $0x58] sm:$0xe] }
  0xd8   :  { %v6481_v38 = vrot.slane %v1272_v54, 9  ;;  %v6482_v36 = vrot.slane %v1273_v55, 9  ;;  %v6483_v8 = vrot.slane %v1274_v44, 9  ;;  %v1339_v56 = vrot.slane %v8123_v39, 5  ;;  %v1280_v55 = vld [vmem:[#allocation2 + $0x60] sm:$0xe] }
  0xd9   :  { %7056 = vmatprep.mubr.msk.bf16.mxu0 %vm980_vm11, %v6453_v46  ;;  %v948_v9 = vrot.slane %v947_v13, 4  ;;  %v6484_v28 = vrot.slane %v1275_v34, 9  ;;  %v1343_v20 = vrot.slane %v8125_v41, 5  ;;  %v8275_v3 = vsel %vm8236_vm14, %v6480_v19, %v1327_v11  ;;  %v1281_v11 = vld [vmem:[#allocation2 + $0x68] sm:$0xe] }
  0xda   :  { %v8279_v0 = vsel %vm8236_vm14, %v6481_v38, %v1331_v33  ;;  %v8283_v42 = vsel %vm8236_vm14, %v6482_v36, %v1335_v52  ;;  %v6485_v14 = vrot.slane %v1276_v1, 9  ;;  %v6496_v41 = vcombine.low %v8253_v48, %v8275_v3  ;;  %v1282_v33 = vld [vmem:[#allocation2 + $0x70] sm:$0xe]  ;;  %v1283_v13 = vld [vmem:[#allocation2 + $0x78] sm:$0xe] }
  0xdb   :  { %v953_v39 = vsel %vm7986_vm9, %v948_v9, %v952_v15  ;;  %v6497_v63 = vcombine.low %v8279_v0, %v8283_v42  ;;  %v8293_v54 = vsel %vm8236_vm14, %v6483_v8, %v1339_v56  ;;  %v8297_v40 = vsel %vm8236_vm14, %v6484_v28, %v1343_v20  ;;  %v1284_v19 = vld [vmem:[#allocation2 + $0x80] sm:$0xe]  ;;  %v1285_v8 = vld [vmem:[#allocation2 + $0x88] sm:$0xe]  ;;  %v1751_v0 = vld [vmem:[#allocation2 + $0x10] sm:$0xf] }
  0xdc   :  { %v6454_v17 = vcombine.low %v939_v12, %v953_v39  ;;  %v1347_v44 = vrot.slane %v8143_v61, 5  ;;  %v6486_v29 = vrot.slane %v1277_v22, 9  ;;  %v6498_v52 = vcombine.low %v8293_v54, %v8297_v40  ;;  %v7654_v48 = vld [vmem:[#allocation2 + $0x18] ss:$8 sps:$4 sm:$0xff]   ;;  %v7655_v42 = vld [vmem:[#allocation2 + $0x28] ss:$8 sps:$4 sm:$0xff]  }
  0xdd   :  { %v1351_v4 = vrot.slane %v8152_v16, 5  ;;  %v6488_v34 = vrot.slane %v1279_v60, 9  ;;  %v1359_v46 = vrot.slane %v8165_v43, 5  ;;  %v6489_v15 = vrot.slane %v1280_v55, 9 }
  0xde   :  { %7057 = vmatmul.mubr.msk.bf16.gmra.mrb[12].mxu0 %vm980_vm11, %v6454_v17  ;;  %v1348_v12 = vsel %vm8236_vm14, %v6485_v14, %v1347_v44  ;;  %v1363_v1 = vrot.slane %v8181_v6, 5  ;;  %v6490_v61 = vrot.slane %v1281_v11, 9  ;;  %v1367_v43 = vrot.slane %v8183_v10, 5 }
  0xdf   :  { %7062 = vmatprep.mubr.msk.bf16.mxu0 %vm980_vm11, %v6463_v5  ;;  %v1352_v38 = vsel %vm8236_vm14, %v6486_v29, %v1351_v4  ;;  %v1360_v16 = vsel %vm8236_vm14, %v6488_v34, %v1359_v46  ;;  %v6491_v36 = vrot.slane %v1282_v33, 9  ;;  %v1371_v28 = vrot.slane %v8200_v18, 5 }
  0xe0   :  { %v6499_v9 = vcombine.low %v1348_v12, %v1352_v38  ;;  %v6500_v56 = vcombine.low %v8260_v26, %v1360_v16  ;;  %v1364_v6 = vsel %vm8236_vm14, %v6489_v15, %v1363_v1  ;;  %v1368_v5 = vsel %vm8236_vm14, %v6490_v61, %v1367_v43  ;;  %v1753_v12 = vld [vmem:[#allocation2 + $0x18] sm:$0xf]  ;;  %v8394_v38 = vld [vmem:[#allocation2 + $0xc] sm:$0x1]  ;;  %v1757_v16 = vld [vmem:[#allocation2 + $0x28] sm:$0xf] }
  0xe1   :  { %v6492_v20 = vrot.slane %v1283_v13, 9  ;;  %v1375_v22 = vrot.slane %v8203_v62, 5  ;;  %v6493_v14 = vrot.slane %v1284_v19, 9  ;;  %v6501_v60 = vcombine.low %v1364_v6, %v1368_v5  ;;  %v7656_v61 = vld [vmem:[#allocation2 + $0x38] ss:$8 sps:$4 sm:$0xff]  }
  0xe2   :  { %v1372_v10 = vsel %vm8236_vm14, %v6491_v36, %v1371_v28  ;;  %v1379_v39 = vrot.slane %v8226_v57, 5  ;;  %v6494_v54 = vrot.slane %v1285_v8, 9  ;;  %v1383_v55 = vrot.slane %v8240_v37, 5  ;;  %v6512_v57 = vld [vmem:[%s9628_s1 + $0x6] sm:$0x3] }
  0xe3   :  { %v1376_v26 = vsel %vm8236_vm14, %v6492_v20, %v1375_v22  ;;  %v6464_v18 = vcombine.low %v8084_v51, %v8088_v58  ;;  %v1436_v11 = vsel %vm1005_vm6, %v8159_v30, 0  ;;  %v6465_v40 = vcombine.low %v8115_v23, %v8118_v35  ;;  %v7657_v19 = vld [vmem:[#allocation2 + $0x58] ss:$8 sps:$4 sm:$0xff]   ;;  %v8397_v43 = vld [vmem:[#allocation2 + $0x14] sm:$0x1] }
  0xe4   :  { %v6502_v62 = vcombine.low %v1372_v10, %v1376_v26  ;;  %v1380_v17 = vsel %vm8236_vm14, %v6493_v14, %v1379_v39  ;;  %v1384_v37 = vsel %vm8236_vm14, %v6494_v54, %v1383_v55  ;;  %v6466_v58 = vcombine.low %v8135_v53, %v8139_v59  ;;  %v6529_v59 = vld [vmem:[%s9628_s1 + $0x8] sm:$0x3]  ;;  %v8402_v10 = vld [vmem:[#allocation2 + $0x1c] sm:$0x1]  ;;  %v8404_v26 = vld [vmem:[#allocation2 + $0x24] sm:$0x1] }
  0xe5   :  { %v6503_v51 = vcombine.low %v1380_v17, %v1384_v37  ;;  %v6467_v23 = vcombine.low %v7970_v25, %v8145_v2  ;;  %v6468_v35 = vcombine.low %v8173_v49, %v8168_v47  ;;  %v6469_v30 = vcombine.low %v8192_v31, %v8194_v32  ;;  %v77_v2 = vld [vmem:[#allocation2 + $0x48] sm:$0x1]  ;;  %v107_v47 = vld [vmem:[#allocation2 + $0x98] sm:$0x1] }
  0xe6   :  { %7063 = vmatmul.mubr.msk.bf16.vlgmr.msra.gmra.mrb[0].mxu0 %vm980_vm11, %v6464_v18  ;;  %v6470_v53 = vcombine.low %v8214_v7, %v8207_v45  ;;  %v1634_v25 = vsel %vm1005_vm6, %v6512_v57, 0  ;;  %v78_v49 = vsel %vm7831_vm4, 0, %v77_v2  ;;  %v108_v31 = vsel %vm7831_vm4, 0, %v107_v47  ;;  %v7653_v32 = vld [vmem:[#allocation2 + $0x8] ss:$8 sps:$4 sm:$0xff]  }
  0xe7   :  { %7079 = vmatpush3.bf16.msra.mxu0 %v1436_v11  ;;  %7066 = vmatprep.mubr.msk.bf16.mxu0 %vm980_vm11, %v6465_v40  ;;  %79 = vst [vmem:[#allocation2 + $0x48] sm:$0x1] %v78_v49  ;;  %109 = vst [vmem:[#allocation2 + $0x98] sm:$0x1] %v108_v31  ;;  %v1749_v45 = vld [vmem:[#allocation2 + $0x8] sm:$0xf] }
  0xe8   :  { %7625 = vmatprep.subr.msk.bf16.mxu0 %vm1005_vm6, %v6512_v57  ;;  %v139_v7 = vld [vmem:[#allocation2 + $0x4c] sm:$0x1]  ;;  %v2056_v3 = vsel %vm1005_vm6, %v6529_v59, 0  ;;  %v1782_v21 = vshrl.u32 %v1749_v45, 16  ;;  %v1796_v29 = vshrl.u32 %v1751_v0, 16  ;;  %v1799_v33 = vshll.u32 %v1751_v0, 16 }
  0xe9   :  { %v140_v44 = vsel %vm7837_vm5, 0, %v139_v7  ;;  %v1810_v36 = vshrl.u32 %v1753_v12, 16  ;;  %v1813_v8 = vshll.u32 %v1753_v12, 16  ;;  %v1838_v20 = vshrl.u32 %v1757_v16, 16  ;;  %v7658_v37 = vld [vmem:[#allocation2 + $0x68] ss:$8 sps:$4 sm:$0xff]  }
  0xea   :  { %141 = vst [vmem:[#allocation2 + $0x4c] sm:$0x1] %v140_v44  ;;  %v1784_v4 = vrot.slane %v1782_v21, 4  ;;  %v1798_v46 = vrot.slane %v1796_v29, 4  ;;  %v1801_v13 = vrot.slane %v1799_v33, 5  ;;  %v1841_v22 = vshll.u32 %v1757_v16, 16 }
  0xeb   :  { %v1791_v14 = vshll.u32 %v8394_v38, 16  ;;  %v1812_v55 = vrot.slane %v1810_v36, 4  ;;  %v1815_v18 = vrot.slane %v1813_v8, 5  ;;  %v1819_v11 = vshll.u32 %v8402_v10, 16  ;;  %v1763_v2 = vld [vmem:[#allocation2 + $0x40] sm:$0xf] }
  0xec   :  { %v1802_v6 = vor.u32 %v1801_v13, %v1798_v46  ;;  %v1833_v57 = vshll.u32 %v8404_v26, 16  ;;  %v1761_v31 = vld [vmem:[#allocation2 + $0x38] sm:$0xf]  ;;  %v8416_v0 = vld [vmem:[#allocation2 + $0x34] sm:$0x1]  ;;  %v1880_v44 = vshrl.u32 %v1763_v2, 16 }
  0xed   :  { %v1816_v47 = vor.u32 %v1815_v18, %v1812_v55  ;;  %v1821_v49 = vrot.slane %v1819_v11, 5  ;;  %v1883_v29 = vshll.u32 %v1763_v2, 16  ;;  %v1765_v33 = vld [vmem:[#allocation2 + $0x58] sm:$0xf]  ;;  %v1869_v46 = vshll.u32 %v1761_v31, 16 }
  0xee   :  { %7067 = vmatmul.mubr.msk.bf16.gmra.mrb[4].mxu0 %vm980_vm11, %v6466_v58  ;;  %v1803_v17 = vrot.slane %v1802_v6, 4  ;;  %v1840_v58 = vrot.slane %v1838_v20, 4  ;;  %v1894_v36 = vshrl.u32 %v1765_v33, 16  ;;  %v1897_v8 = vshll.u32 %v1765_v33, 16  ;;  %v1771_v11 = vld [vmem:[#allocation2 + $0x70] sm:$0xf] }
  0xef   :  { %7070 = vmatprep.mubr.msk.bf16.mxu0 %vm980_vm11, %v6467_v23  ;;  %v1843_v23 = vrot.slane %v1841_v22, 5  ;;  %v1817_v12 = vrot.slane %v1816_v47, 4  ;;  %v8427_v22 = vld [vmem:[#allocation2 + $0x44] sm:$0x1]  ;;  %v1936_v47 = vshrl.u32 %v1771_v11, 16  ;;  %vm4018_vm4 = vcmask 1043456  }
  0xf0   :  { %v8440_v2 = vld [vmem:[#allocation2 + $0x64] sm:$0x1] }
  0xf1   :  { %v1844_v21 = vor.u32 %v1843_v23, %v1840_v58 }
  0xf6   :  { %7071 = vmatmul.mubr.msk.bf16.gmra.mrb[8].mxu0 %vm980_vm11, %v6468_v35  ;;  %v1793_v35 = vrot.slane %v1791_v14, 5 }
  0xf7   :  { %7074 = vmatprep.mubr.msk.bf16.mxu0 %vm980_vm11, %v6469_v30 }
  0xfe   :  { %7075 = vmatmul.mubr.msk.bf16.gmra.mrb[12].mxu0 %vm980_vm11, %v6470_v53  ;;  %v8408_v53 = vld [vmem:[#allocation2 + $0x2c] sm:$0x1] }
  0xff   :  { %7080 = vmatprep.mubr.msk.bf16.mxu0 %vm980_vm11, %v6496_v41  ;;  %v8386_v41 = vld [vmem:[%s9628_s1 + $0xa] sm:$0x3] }
 0x106   :  { %7081 = vmatmul.mubr.msk.bf16.vlgmr.msra.gmra.mrb[0].mxu0 %vm980_vm11, %v6497_v63  ;;  %v1785_v63 = vshll.u32 %v1749_v45, 16 }
 0x107   :  { %7097 = vmatpush3.bf16.msra.mxu0 %v1634_v25  ;;  %7084 = vmatprep.mubr.msk.bf16.mxu0 %vm980_vm11, %v6498_v52  ;;  %v1755_v52 = vld [vmem:[#allocation2 + $0x20] sm:$0xf] }
 0x108   :  { %7626 = vmatprep.subr.msk.bf16.mxu0 %vm1005_vm6, %v6529_v59  ;;  %v1787_v34 = vrot.slane %v1785_v63, 5  ;;  %v1824_v15 = vshrl.u32 %v1755_v52, 16  ;;  %v1827_v1 = vshll.u32 %v1755_v52, 16  ;;  %v1861_v63 = vshll.u32 %v8416_v0, 16 }
 0x10a   :  { %v1826_v28 = vrot.slane %v1824_v15, 4  ;;  %v1829_v5 = vrot.slane %v1827_v1, 5  ;;  %v1847_v15 = vshll.u32 %v8408_v53, 16  ;;  %v1863_v20 = vrot.slane %v1861_v63, 5 }
 0x10c   :  { %v1830_v40 = vor.u32 %v1829_v5, %v1826_v28  ;;  %v1882_v28 = vrot.slane %v1880_v44, 4  ;;  %v1885_v5 = vrot.slane %v1883_v29, 5 }
 0x10e   :  { %7085 = vmatmul.mubr.msk.bf16.gmra.mrb[4].mxu0 %vm980_vm11, %v6499_v9  ;;  %v1759_v9 = vld [vmem:[#allocation2 + $0x30] sm:$0xf]  ;;  %v1886_v23 = vor.u32 %v1885_v5, %v1882_v28 }
 0x10f   :  { %7088 = vmatprep.mubr.msk.bf16.mxu0 %vm980_vm11, %v6500_v56  ;;  %v1788_v56 = vor.u32 %v1787_v34, %v1784_v4  ;;  %v1852_v39 = vshrl.u32 %v1759_v9, 16  ;;  %v1855_v54 = vshll.u32 %v1759_v9, 16  ;;  %v8419_v4 = vld [vmem:[#allocation2 + $0x3c] sm:$0x1]  ;;  %v1866_v34 = vshrl.u32 %v1761_v31, 16 }
 0x110   :  { %v7660_v9 = vld [vmem:[#allocation2 + $0x88] ss:$8 sps:$4 sm:$0xff]   ;;  %v1875_v6 = vshll.u32 %v8419_v4, 16  ;;  %v8442_v31 = vld [vmem:[#allocation2 + $0x5c] sm:$0x1]  ;;  %v1887_v44 = vrot.slane %v1886_v23, 4 }
 0x111   :  { %v1854_v25 = vrot.slane %v1852_v39, 4  ;;  %v1857_v59 = vrot.slane %v1855_v54, 5  ;;  %v1868_v14 = vrot.slane %v1866_v34, 4  ;;  %v1822_v39 = vsel %vm7986_vm9, %v1817_v12, %v1821_v49 }
 0x112   :  { %v1849_v54 = vrot.slane %v1847_v15, 5  ;;  %v1877_v58 = vrot.slane %v1875_v6, 5  ;;  %v1939_v49 = vshll.u32 %v1771_v11, 16  ;;  %v8449_v15 = vld [vmem:[%s9628_s1 + $0xc] sm:$0x3] }
 0x113   :  { %v1858_v52 = vor.u32 %v1857_v59, %v1854_v25 }
 0x114   :  { %v1941_v12 = vrot.slane %v1939_v49, 5 }
 0x115   :  { %v1859_v24 = vrot.slane %v1858_v52, 4 }
 0x116   :  { %7089 = vmatmul.mubr.msk.bf16.gmra.mrb[8].mxu0 %vm980_vm11, %v6501_v60  ;;  %v1805_v60 = vshll.u32 %v8397_v43, 16 }
 0x117   :  { %7092 = vmatprep.mubr.msk.bf16.mxu0 %vm980_vm11, %v6502_v62  ;;  %v1789_v62 = vrot.slane %v1788_v56, 4  ;;  %v1845_v56 = vrot.slane %v1844_v21, 4  ;;  %v1864_v25 = vsel %vm7986_vm9, %v1859_v24, %v1863_v20 }
 0x118   :  { %v1807_v30 = vrot.slane %v1805_v60, 5  ;;  %v1871_v60 = vrot.slane %v1869_v46, 5 }
 0x119   :  { %v1794_v45 = vsel %vm7986_vm9, %v1789_v62, %v1793_v35  ;;  %v1889_v35 = vshll.u32 %v8427_v22, 16 }
 0x11a   :  { %v1808_v7 = vsel %vm7986_vm9, %v1803_v17, %v1807_v30  ;;  %v2334_v17 = vsel %vm1005_vm6, %v8386_v41, 0  ;;  %v1769_v30 = vld [vmem:[#allocation2 + $0x68] sm:$0xf]  ;;  %v1872_v59 = vor.u32 %v1871_v60, %v1868_v14 }
 0x11b   :  { %v1922_v21 = vshrl.u32 %v1769_v30, 16  ;;  %v1925_v63 = vshll.u32 %v1769_v30, 16  ;;  %v1891_v29 = vrot.slane %v1889_v35, 5  ;;  %v1777_v60 = vld [vmem:[#allocation2 + $0x88] sm:$0xf] }
 0x11c   :  { %v1873_v46 = vrot.slane %v1872_v59, 4  ;;  %v8470_v35 = vld [vmem:[#allocation2 + $0x7c] sm:$0x1]  ;;  %v1981_v30 = vshll.u32 %v1777_v60, 16 }
 0x11d   :  { %v1924_v6 = vrot.slane %v1922_v21, 4  ;;  %v1927_v28 = vrot.slane %v1925_v63, 5  ;;  %v1892_v5 = vsel %vm7986_vm9, %v1887_v44, %v1891_v29  ;;  %v1959_v49 = vshll.u32 %v8470_v35, 16 }
 0x11e   :  { %7093 = vmatmul.mubr.msk.bf16.gmra.mrb[12].mxu0 %vm980_vm11, %v6503_v51  ;;  %v7659_v51 = vld [vmem:[#allocation2 + $0x78] ss:$8 sps:$4 sm:$0xff]   ;;  %v1983_v44 = vrot.slane %v1981_v30, 5 }
 0x11f   :  { %7098 = vmatprep.mubr.msk.bf16.mxu0 %vm980_vm11, %v7653_v32  ;;  %v169_v32 = vld [vmem:[#allocation2 + $0x9c] sm:$0x1]  ;;  %v1928_v23 = vor.u32 %v1927_v28, %v1924_v6  ;;  %v2171_v6 = vld [vmem:[#allocation2 + $0x8] sm:$0xe]  ;;  %v2173_v30 = vld [vmem:[#allocation2 + $0x18] sm:$0xe] }
 0x120   :  { %v170_v13 = vsel %vm7837_vm5, 0, %v169_v32  ;;  %vm8869_vm5 = vmand %vm172_vm15, %vm110_vm3  ;;  %vm3993_vm3 = vcmask 64512  }
 0x121   :  { %171 = vst [vmem:[#allocation2 + $0x9c] sm:$0x1] %v170_v13  ;;  %v1938_v13 = vrot.slane %v1936_v47, 4 }
 0x126   :  { %7099 = vmatmul.mubr.msk.bf16.vlgmr.msra.gmra.mrb[0].mxu0 %vm980_vm11, %v7654_v48  ;;  %v1831_v48 = vrot.slane %v1830_v40, 4  ;;  %v1896_v40 = vrot.slane %v1894_v36, 4  ;;  %v1779_v36 = vld [vmem:[#allocation2 + $0x90] sm:$0xf] }
 0x127   :  { %7115 = vmatpush3.bf16.msra.mxu0 %v2056_v3  ;;  %7102 = vmatprep.mubr.msk.bf16.mxu0 %vm980_vm11, %v7655_v42  ;;  %v1835_v3 = vrot.slane %v1833_v57, 5  ;;  %v1767_v42 = vld [vmem:[#allocation2 + $0x60] sm:$0xf]  ;;  %v1899_v57 = vrot.slane %v1897_v8, 5  ;;  %v1992_v11 = vshrl.u32 %v1779_v36, 16 }
 0x128   :  { %7627 = vmatprep.subr.msk.bf16.mxu0 %vm1005_vm6, %v8386_v41  ;;  %v1908_v1 = vshrl.u32 %v1767_v42, 16  ;;  %v1773_v41 = vld [vmem:[#allocation2 + $0x78] sm:$0xf] }
 0x129   :  { %v1836_v16 = vsel %vm7986_vm9, %v1831_v48, %v1835_v3  ;;  %v1900_v3 = vor.u32 %v1899_v57, %v1896_v40  ;;  %v1950_v33 = vshrl.u32 %v1773_v41, 16  ;;  %v1953_v52 = vshll.u32 %v1773_v41, 16 }
 0x12a   :  { %v1910_v55 = vrot.slane %v1908_v1, 4  ;;  %v6531_v62 = vcombine.low %v1822_v39, %v1836_v16  ;;  %v1878_v39 = vsel %vm7986_vm9, %v1873_v46, %v1877_v58  ;;  %v1978_v58 = vshrl.u32 %v1777_v60, 16 }
 0x12b   :  { %v1901_v8 = vrot.slane %v1900_v3, 4  ;;  %v1952_v20 = vrot.slane %v1950_v33, 4  ;;  %v1955_v14 = vrot.slane %v1953_v52, 5  ;;  %v1961_v33 = vrot.slane %v1959_v49, 5  ;;  %v8477_v52 = vld [vmem:[#allocation2 + $0x94] sm:$0x1] }
 0x12c   :  { %v1980_v63 = vrot.slane %v1978_v58, 4 }
 0x12d   :  { %v1956_v47 = vor.u32 %v1955_v14, %v1952_v20  ;;  %v2225_v14 = vrot.slane %v8397_v43, 5 }
 0x12e   :  { %7103 = vmatmul.mubr.msk.bf16.gmra.mrb[4].mxu0 %vm980_vm11, %v7656_v61  ;;  %v1911_v61 = vshll.u32 %v1767_v42, 16  ;;  %v1903_v42 = vshll.u32 %v8442_v31, 16 }
 0x12f   :  { %7106 = vmatprep.mubr.msk.bf16.mxu0 %vm980_vm11, %v7657_v19  ;;  %v6530_v19 = vcombine.low %v1794_v45, %v1808_v7  ;;  %v1917_v45 = vshll.u32 %v8440_v2, 16  ;;  %v1957_v29 = vrot.slane %v1956_v47, 4  ;;  %v2237_v47 = vrot.slane %v8408_v53, 5 }
 0x130   :  { %v1913_v18 = vrot.slane %v1911_v61, 5  ;;  %v9648_v53 = vmov 0  }
 0x131   :  { %v1919_v61 = vrot.slane %v1917_v45, 5  ;;  %v1994_v45 = vrot.slane %v1992_v11, 4  ;;  %v2221_v11 = vrot.slane %v8394_v38, 5  ;;  %v2233_v38 = vrot.slane %v8404_v26, 5  ;;  %173 = vst.msk [vmem:[#allocation3] sm:$0xf] %vm172_vm15, %v9648_v53 }
 0x132   :  { %v1914_v32 = vor.u32 %v1913_v18, %v1910_v55  ;;  %v1942_v55 = vor.u32 %v1941_v12, %v1938_v13  ;;  %v8464_v18 = vld [vmem:[#allocation2 + $0x84] sm:$0x1]  ;;  %v2001_v13 = vshll.u32 %v8477_v52, 16  ;;  %v2172_v12 = vld [vmem:[#allocation2 + $0x10] sm:$0xe] }
 0x133   :  { %v6547_v28 = vrot.slane %v2172_v12, 9  ;;  %175 = vst.msk [vmem:[#allocation3 + $0x4] sm:$0x1] %vm174_vm0, %v9648_v53  ;;  %177 = vst.msk [vmem:[#allocation3 + $0x54] sm:$0x1] %vm174_vm0, %v9648_v53 }
 0x134   :  { %v1915_v1 = vrot.slane %v1914_v32, 4  ;;  %v1943_v32 = vrot.slane %v1942_v55, 4  ;;  %v2003_v20 = vrot.slane %v2001_v13, 5  ;;  %v6546_v55 = vrot.slane %v2171_v6, 9  ;;  %176 = vst.msk [vmem:[#allocation3 + $0x50] sm:$0xf] %vm172_vm15, %v9648_v53 }
 0x135   :  { %179 = vst.msk [vmem:[#allocation3 + $0x48] sm:$0xf] %vm172_vm15, %v9648_v53  ;;  %181 = vst.msk [vmem:[#allocation3 + $0x98] sm:$0xf] %vm172_vm15, %v9648_v53  ;;  %v2177_v13 = vld [vmem:[#allocation2 + $0x38] sm:$0xe] }
 0x136   :  { %7107 = vmatmul.mubr.msk.bf16.gmra.mrb[8].mxu0 %vm980_vm11, %v7658_v37  ;;  %v1775_v37 = vld [vmem:[#allocation2 + $0x80] sm:$0xf]  ;;  %180 = vst.msk [vmem:[#allocation3 + $0x4c] sm:$0x1] %vm174_vm0, %v9648_v53  ;;  %182 = vst.msk [vmem:[#allocation3 + $0x9c] sm:$0x1] %vm174_vm0, %v9648_v53 }
 0x137   :  { %7110 = vmatprep.mubr.msk.bf16.mxu0 %vm980_vm11, %v7659_v51  ;;  %v1850_v51 = vsel %vm7986_vm9, %v1845_v56, %v1849_v54  ;;  %v1964_v7 = vshrl.u32 %v1775_v37, 16  ;;  %v1967_v48 = vshll.u32 %v1775_v37, 16  ;;  %v8453_v56 = vld [vmem:[#allocation2 + $0x74] sm:$0x1]  ;;  %v8462_v54 = vld [vmem:[#allocation2 + $0x6c] sm:$0x1] }
 0x138   :  { %v6532_v34 = vcombine.low %v1850_v51, %v1864_v25  ;;  %v1945_v24 = vshll.u32 %v8453_v56, 16  ;;  %v1931_v40 = vshll.u32 %v8462_v54, 16  ;;  %v1973_v37 = vshll.u32 %v8464_v18, 16 }
 0x139   :  { %v1969_v16 = vrot.slane %v1967_v48, 5  ;;  %v6533_v51 = vcombine.low %v1878_v39, %v1892_v5  ;;  %v6552_v6 = vrot.slane %v2177_v13, 9 }
 0x13a   :  { %v1947_v59 = vrot.slane %v1945_v24, 5  ;;  %v1975_v3 = vrot.slane %v1973_v37, 5  ;;  %v1933_v21 = vrot.slane %v1931_v40, 5  ;;  %v2174_v40 = vld [vmem:[#allocation2 + $0x20] sm:$0xe] }
 0x13b   :  { %v2176_v37 = vld [vmem:[#allocation2 + $0x30] sm:$0xe] }
 0x13c   :  { %v6551_v49 = vrot.slane %v2176_v37, 9  ;;  %v2261_v37 = vrot.slane %v8462_v54, 5 }
 0x13e   :  { %7111 = vmatmul.mubr.msk.bf16.gmra.mrb[12].mxu0 %vm980_vm11, %v7660_v9  ;;  %v1905_v9 = vrot.slane %v1903_v42, 5  ;;  %v1929_v42 = vrot.slane %v1928_v23, 4 }
 0x13f   :  { %7116 = vmatprep.mubr.msk.bf16.mxu0 %vm980_vm11, %v6530_v19  ;;  %v1966_v19 = vrot.slane %v1964_v7, 4 }
 0x140   :  { %v1906_v25 = vsel %vm7986_vm9, %v1901_v8, %v1905_v9  ;;  %v1962_v9 = vsel %vm7986_vm9, %v1957_v29, %v1961_v33  ;;  %v2180_v33 = vld [vmem:[#allocation2 + $0x60] sm:$0xe] }
 0x141   :  { %v1970_v57 = vor.u32 %v1969_v16, %v1966_v19  ;;  %v1934_v19 = vsel %vm7986_vm9, %v1929_v42, %v1933_v21  ;;  %v1984_v16 = vor.u32 %v1983_v44, %v1980_v63  ;;  %v2178_v44 = vld [vmem:[#allocation2 + $0x40] sm:$0xe] }
 0x143   :  { %v1971_v48 = vrot.slane %v1970_v57, 4  ;;  %v1985_v60 = vrot.slane %v1984_v16, 4  ;;  %v2175_v57 = vld [vmem:[#allocation2 + $0x28] sm:$0xe]  ;;  %v2179_v16 = vld [vmem:[#allocation2 + $0x58] sm:$0xe] }
 0x146   :  { %7117 = vmatmul.mubr.msk.bf16.vlgmr.msra.gmra.mrb[0].mxu0 %vm980_vm11, %v6531_v62  ;;  %v1995_v62 = vshll.u32 %v1779_v36, 16 }
 0x147   :  { %7133 = vmatpush3.bf16.msra.mxu0 %v2334_v17  ;;  %7120 = vmatprep.mubr.msk.bf16.mxu0 %vm980_vm11, %v6532_v34  ;;  %v1920_v17 = vsel %vm7986_vm9, %v1915_v1, %v1919_v61  ;;  %v1948_v34 = vsel %vm7986_vm9, %v1943_v32, %v1947_v59  ;;  %v1976_v1 = vsel %vm7986_vm9, %v1971_v48, %v1975_v3  ;;  %v8484_v61 = vld [vmem:[#allocation2 + $0x8c] sm:$0x1]  ;;  %v6550_v59 = vrot.slane %v2175_v57, 9  ;;  %v194_v32 = vld [vmem:[#allocation3 + $0x18] sm:$0x1] }
 0x148   :  { %7628 = vmatprep.subr.msk.bf16.mxu0 %vm1005_vm6, %v8449_v15  ;;  %v6534_v41 = vcombine.low %v1906_v25, %v1920_v17  ;;  %v1997_v7 = vrot.slane %v1995_v62, 5  ;;  %v1987_v36 = vshll.u32 %v8484_v61, 16  ;;  %v6535_v8 = vcombine.low %v1934_v19, %v1948_v34 }
 0x149   :  { %v6536_v5 = vcombine.low %v1962_v9, %v1976_v1  ;;  %v2226_v17 = vsel %vm8236_vm14, %v6547_v28, %v2225_v14  ;;  %v6549_v25 = vrot.slane %v2174_v40, 9  ;;  %v2229_v48 = vrot.slane %v8402_v10, 5  ;;  %v2184_v14 = vld [vmem:[#allocation2 + $0x80] sm:$0xe] }
 0x14a   :  { %v1998_v46 = vor.u32 %v1997_v7, %v1994_v45  ;;  %v1989_v39 = vrot.slane %v1987_v36, 5  ;;  %v255_v45 = vld [vmem:[#allocation3 + $0x1c] sm:$0x1]  ;;  %v6548_v7 = vrot.slane %v2173_v30, 9  ;;  %v195_v10 = vsel %vm8511_vm1, 0, %v194_v32 }
 0x14b   :  { %v2234_v3 = vsel %vm8236_vm14, %v6549_v25, %v2233_v38  ;;  %196 = vst [vmem:[#allocation3 + $0x18] sm:$0x1] %v195_v10  ;;  %v256_v42 = vsel %vm8535_vm2, 0, %v255_v45  ;;  %v2238_v21 = vsel %vm8236_vm14, %v6550_v59, %v2237_v47  ;;  %v6553_v1 = vrot.slane %v2178_v44, 9  ;;  %v6596_v36 = vld [vmem:[%s9628_s1 + $0xe] sm:$0x3] }
 0x14c   :  { %v1999_v24 = vrot.slane %v1998_v46, 4  ;;  %v1990_v43 = vsel %vm7986_vm9, %v1985_v60, %v1989_v39  ;;  %257 = vst [vmem:[#allocation3 + $0x1c] sm:$0x1] %v256_v42  ;;  %v2230_v29 = vsel %vm8236_vm14, %v6548_v7, %v2229_v48  ;;  %v2533_v46 = vsel %vm1005_vm6, %v8449_v15, 0  ;;  %v2181_v39 = vld [vmem:[#allocation2 + $0x68] sm:$0xe] }
 0x14d   :  { %v6564_v34 = vcombine.low %v2230_v29, %v2234_v3  ;;  %v2249_v19 = vrot.slane %v8427_v22, 5  ;;  %v2257_v9 = vrot.slane %v8440_v2, 5  ;;  %v2245_v15 = vrot.slane %v8419_v4, 5  ;;  %v2185_v38 = vld [vmem:[#allocation2 + $0x88] sm:$0xe] }
 0x14e   :  { %7121 = vmatmul.mubr.msk.bf16.gmra.mrb[4].mxu0 %vm980_vm11, %v6533_v51  ;;  %v2004_v62 = vsel %vm7986_vm9, %v1999_v24, %v2003_v20  ;;  %v2222_v51 = vsel %vm8236_vm14, %v6546_v55, %v2221_v11  ;;  %v6554_v28 = vrot.slane %v2179_v16, 9  ;;  %v2182_v20 = vld [vmem:[#allocation2 + $0x70] sm:$0xe]  ;;  %v2265_v11 = vrot.slane %v8453_v56, 5  ;;  %v7662_v48 = vld [vmem:[#allocation2 + $0x20] ss:$8 sps:$4 sm:$0xff]  }
 0x14f   :  { %7124 = vmatprep.mubr.msk.bf16.mxu0 %vm980_vm11, %v6534_v41  ;;  %v6537_v23 = vcombine.low %v1990_v43, %v2004_v62  ;;  %v6563_v58 = vcombine.low %v2222_v51, %v2226_v17  ;;  %v2241_v41 = vrot.slane %v8416_v0, 5  ;;  %v2250_v22 = vsel %vm8236_vm14, %v6553_v1, %v2249_v19  ;;  %v2183_v62 = vld [vmem:[#allocation2 + $0x78] sm:$0xe]  ;;  %v2656_v16 = vld [vmem:[#allocation2 + $0x30] sm:$0xf] }
 0x150   :  { %v2246_v2 = vsel %vm8236_vm14, %v6552_v6, %v2245_v15  ;;  %v6559_v17 = vrot.slane %v2184_v14, 9  ;;  %v2273_v40 = vrot.slane %v8464_v18, 5  ;;  %v6556_v57 = vrot.slane %v2181_v39, 9  ;;  %v7661_v7 = vld [vmem:[#allocation2 + $0x10] ss:$8 sps:$4 sm:$0xff]  }
 0x151   :  { %v2242_v63 = vsel %vm8236_vm14, %v6551_v49, %v2241_v41  ;;  %v6566_v60 = vcombine.low %v2246_v2, %v2250_v22  ;;  %v6558_v43 = vrot.slane %v2183_v62, 9  ;;  %v2269_v51 = vrot.slane %v8470_v35, 5  ;;  %v7663_v10 = vld [vmem:[#allocation2 + $0x30] ss:$8 sps:$4 sm:$0xff]   ;;  %v7665_v15 = vld [vmem:[#allocation2 + $0x60] ss:$8 sps:$4 sm:$0xff]  }
 0x152   :  { %v6565_v12 = vcombine.low %v2238_v21, %v2242_v63  ;;  %v2274_v56 = vsel %vm8236_vm14, %v6559_v17, %v2273_v40  ;;  %v2262_v30 = vsel %vm8236_vm14, %v6556_v57, %v2261_v37  ;;  %v2281_v47 = vrot.slane %v8477_v52, 5  ;;  %v2648_v52 = vld [vmem:[#allocation2 + $0x10] sm:$0xf]  ;;  %v2650_v3 = vld [vmem:[#allocation2 + $0x18] sm:$0xf] }
 0x153   :  { %v2270_v18 = vsel %vm8236_vm14, %v6558_v43, %v2269_v51  ;;  %v6560_v35 = vrot.slane %v2185_v38, 9  ;;  %v2277_v49 = vrot.slane %v8484_v61, 5  ;;  %v2955_v53 = vsel %vm1005_vm6, %v6596_v36, 0  ;;  %v8597_v61 = vld [vmem:[%s9628_s1 + $0x10] sm:$0x3] }
 0x154   :  { %v6569_v59 = vcombine.low %v2270_v18, %v2274_v56  ;;  %v2681_v42 = vshrl.u32 %v2648_v52, 16  ;;  %v2684_v21 = vshll.u32 %v2648_v52, 16  ;;  %v2652_v63 = vld [vmem:[#allocation2 + $0x20] sm:$0xf]  ;;  %v2695_v44 = vshrl.u32 %v2650_v3, 16 }
 0x155   :  { %v2278_v32 = vsel %vm8236_vm14, %v6560_v35, %v2277_v49  ;;  %v2698_v29 = vshll.u32 %v2650_v3, 16  ;;  %v8606_v22 = vld [vmem:[#allocation2 + $0x1c] sm:$0x1]  ;;  %v2737_v2 = vshrl.u32 %v2656_v16, 16  ;;  %v2740_v14 = vshll.u32 %v2656_v16, 16 }
 0x156   :  { %7125 = vmatmul.mubr.msk.bf16.gmra.mrb[8].mxu0 %vm980_vm11, %v6535_v8  ;;  %v6555_v8 = vrot.slane %v2180_v33, 9  ;;  %v2654_v33 = vld [vmem:[#allocation2 + $0x28] sm:$0xf]  ;;  %v2686_v13 = vrot.slane %v2684_v21, 5  ;;  %v8611_v39 = vld [vmem:[#allocation2 + $0x24] sm:$0x1] }
 0x157   :  { %7128 = vmatprep.mubr.msk.bf16.mxu0 %vm980_vm11, %v6536_v5  ;;  %v2253_v5 = vrot.slane %v8442_v31, 5  ;;  %v6557_v31 = vrot.slane %v2182_v20, 9  ;;  %v2723_v1 = vshrl.u32 %v2654_v33, 16  ;;  %v2726_v19 = vshll.u32 %v2654_v33, 16  ;;  %v8613_v62 = vld [vmem:[#allocation2 + $0x2c] sm:$0x1] }
 0x158   :  { %v2258_v24 = vsel %vm8236_vm14, %v6555_v8, %v2257_v9  ;;  %v8603_v8 = vld [vmem:[#allocation2 + $0x14] sm:$0x1]  ;;  %v2697_v9 = vrot.slane %v2695_v44, 4  ;;  %v2700_v6 = vrot.slane %v2698_v29, 5  ;;  %v2718_v17 = vshll.u32 %v8611_v39, 16 }
 0x159   :  { %v2254_v4 = vsel %vm8236_vm14, %v6554_v28, %v2253_v5  ;;  %v2658_v5 = vld [vmem:[#allocation2 + $0x38] sm:$0xf]  ;;  %v2660_v37 = vld [vmem:[#allocation2 + $0x40] sm:$0xf]  ;;  %v2739_v56 = vrot.slane %v2737_v2, 4 }
 0x15a   :  { %v6567_v55 = vcombine.low %v2254_v4, %v2258_v24  ;;  %v2704_v4 = vshll.u32 %v8606_v22, 16  ;;  %v2751_v40 = vshrl.u32 %v2658_v5, 16  ;;  %v2754_v57 = vshll.u32 %v2658_v5, 16  ;;  %v7666_v43 = vld [vmem:[#allocation2 + $0x70] ss:$8 sps:$4 sm:$0xff]  }
 0x15b   :  { %v2720_v49 = vrot.slane %v2718_v17, 5  ;;  %v2768_v52 = vshll.u32 %v2660_v37, 16  ;;  %v8624_v33 = vld [vmem:[#allocation2 + $0x3c] sm:$0x1]  ;;  %v8628_v16 = vld [vmem:[#allocation2 + $0x44] sm:$0x1] }
 0x15c   :  { %v2706_v38 = vrot.slane %v2704_v4, 5 }
 0x15e   :  { %7129 = vmatmul.mubr.msk.bf16.gmra.mrb[12].mxu0 %vm980_vm11, %v6537_v23  ;;  %v2266_v23 = vsel %vm8236_vm14, %v6557_v31, %v2265_v11  ;;  %v2728_v31 = vrot.slane %v2726_v19, 5  ;;  %v2701_v11 = vor.u32 %v2700_v6, %v2697_v9  ;;  %v2770_v9 = vrot.slane %v2768_v52, 5 }
 0x15f   :  { %7134 = vmatprep.mubr.msk.bf16.mxu0 %vm980_vm11, %v6563_v58  ;;  %v2186_v58 = vld [vmem:[#allocation2 + $0x90] sm:$0xe]  ;;  %v6568_v25 = vcombine.low %v2262_v30, %v2266_v23  ;;  %v2662_v30 = vld [vmem:[#allocation2 + $0x48] sm:$0xf] }
 0x160   :  { %v6561_v54 = vrot.slane %v2186_v58, 9  ;;  %v2742_v58 = vrot.slane %v2740_v14, 5  ;;  %v2702_v35 = vrot.slane %v2701_v11, 4  ;;  %v7668_v11 = vld [vmem:[#allocation2 + $0x90] ss:$8 sps:$4 sm:$0xff]  }
 0x162   :  { %v2282_v41 = vsel %vm8236_vm14, %v6561_v54, %v2281_v47  ;;  %v2732_v54 = vshll.u32 %v8613_v62, 16  ;;  %v8617_v47 = vld [vmem:[#allocation2 + $0x34] sm:$0x1]  ;;  %v2743_v21 = vor.u32 %v2742_v58, %v2739_v56  ;;  %v8640_v56 = vld [vmem:[#allocation2 + $0x6c] sm:$0x1] }
 0x163   :  { %v6570_v45 = vcombine.low %v2278_v32, %v2282_v41  ;;  %v2753_v41 = vrot.slane %v2751_v40, 4  ;;  %v2756_v32 = vrot.slane %v2754_v57, 5  ;;  %v3233_v40 = vsel %vm1005_vm6, %v8597_v61, 0 }
 0x164   :  { %v2734_v29 = vrot.slane %v2732_v54, 5  ;;  %v2672_v54 = vld [vmem:[#allocation2 + $0x80] sm:$0xf] }
 0x166   :  { %7135 = vmatmul.mubr.msk.bf16.vlgmr.msra.gmra.mrb[0].mxu0 %vm980_vm11, %v6564_v34  ;;  %v2709_v34 = vshrl.u32 %v2652_v63, 16 }
 0x167   :  { %7151 = vmatpush3.bf16.msra.mxu0 %v2533_v46  ;;  %7138 = vmatprep.mubr.msk.bf16.mxu0 %vm980_vm11, %v6565_v12  ;;  %v2683_v46 = vrot.slane %v2681_v42, 4  ;;  %v2712_v12 = vshll.u32 %v2652_v63, 16  ;;  %v2746_v63 = vshll.u32 %v8617_v47, 16 }
 0x168   :  { %7629 = vmatprep.subr.msk.bf16.mxu0 %vm1005_vm6, %v6596_v36  ;;  %v7664_v36 = vld [vmem:[#allocation2 + $0x40] ss:$8 sps:$4 sm:$0xff]   ;;  %v2711_v28 = vrot.slane %v2709_v34, 4 }
 0x169   :  { %v2687_v24 = vor.u32 %v2686_v13, %v2683_v46  ;;  %v2714_v20 = vrot.slane %v2712_v12, 5  ;;  %v2707_v13 = vsel %vm7986_vm9, %v2702_v35, %v2706_v38  ;;  %v2757_v12 = vor.u32 %v2756_v32, %v2753_v41 }
 0x16a   :  { %v2748_v5 = vrot.slane %v2746_v63, 5  ;;  %v2816_v41 = vshll.u32 %v8640_v56, 16  ;;  %v2849_v63 = vshrl.u32 %v2672_v54, 16 }
 0x16b   :  { %v2688_v51 = vrot.slane %v2687_v24, 4  ;;  %v2715_v23 = vor.u32 %v2714_v20, %v2711_v28  ;;  %v2744_v28 = vrot.slane %v2743_v21, 4  ;;  %v2760_v24 = vshll.u32 %v8624_v33, 16 }
 0x16c   :  { %v2774_v20 = vshll.u32 %v8628_v16, 16 }
 0x16d   :  { %v2716_v42 = vrot.slane %v2715_v23, 4  ;;  %v2762_v38 = vrot.slane %v2760_v24, 5  ;;  %v2851_v24 = vrot.slane %v2849_v63, 4 }
 0x16e   :  { %7139 = vmatmul.mubr.msk.bf16.gmra.mrb[4].mxu0 %vm980_vm11, %v6566_v60  ;;  %v2690_v60 = vshll.u32 %v8603_v8, 16 }
 0x16f   :  { %7142 = vmatprep.mubr.msk.bf16.mxu0 %vm980_vm11, %v6567_v55  ;;  %v2725_v55 = vrot.slane %v2723_v1, 4  ;;  %v2721_v17 = vsel %vm7986_vm9, %v2716_v42, %v2720_v49 }
 0x170   :  { %v2692_v18 = vrot.slane %v2690_v60, 5  ;;  %v8634_v60 = vld [vmem:[#allocation2 + $0x64] sm:$0x1] }
 0x171   :  { %v2802_v58 = vshll.u32 %v8634_v60, 16 }
 0x172   :  { %v2693_v3 = vsel %vm7986_vm9, %v2688_v51, %v2692_v18  ;;  %v2749_v18 = vsel %vm7986_vm9, %v2744_v28, %v2748_v5  ;;  %v8653_v28 = vld [vmem:[#allocation2 + $0x74] sm:$0x1]  ;;  %v2676_v5 = vld [vmem:[#allocation2 + $0x90] sm:$0xf] }
 0x173   :  { %v6597_v2 = vcombine.low %v2693_v3, %v2707_v13  ;;  %v2804_v21 = vrot.slane %v2802_v58, 5  ;;  %v8671_v58 = vld [vmem:[#allocation2 + $0x8c] sm:$0x1] }
 0x176   :  { %7143 = vmatmul.mubr.msk.bf16.gmra.mrb[8].mxu0 %vm980_vm11, %v6568_v25  ;;  %v7667_v25 = vld [vmem:[#allocation2 + $0x80] ss:$8 sps:$4 sm:$0xff]  }
 0x177   :  { %7146 = vmatprep.mubr.msk.bf16.mxu0 %vm980_vm11, %v6569_v59  ;;  %v2729_v59 = vor.u32 %v2728_v31, %v2725_v55  ;;  %v2668_v31 = vld [vmem:[#allocation2 + $0x70] sm:$0xf] }
 0x178   :  { %v2821_v32 = vshrl.u32 %v2668_v31, 16  ;;  %v2824_v52 = vshll.u32 %v2668_v31, 16 }
 0x179   :  { %v2730_v44 = vrot.slane %v2729_v59, 4  ;;  %v8646_v59 = vld [vmem:[#allocation2 + $0x4c] sm:$0x1] }
 0x17a   :  { %v2788_v35 = vshll.u32 %v8646_v59, 16 }
 0x17b   :  { %v2735_v14 = vsel %vm7986_vm9, %v2730_v44, %v2734_v29  ;;  %v2852_v44 = vshll.u32 %v2672_v54, 16 }
 0x17e   :  { %7147 = vmatmul.mubr.msk.bf16.gmra.mrb[12].mxu0 %vm980_vm11, %v6570_v45  ;;  %v2664_v45 = vld [vmem:[#allocation2 + $0x60] sm:$0xf] }
 0x17f   :  { %7152 = vmatprep.mubr.msk.bf16.mxu0 %vm980_vm11, %v7661_v7  ;;  %v2765_v7 = vshrl.u32 %v2660_v37, 16  ;;  %v2793_v34 = vshrl.u32 %v2664_v45, 16  ;;  %v2796_v46 = vshll.u32 %v2664_v45, 16  ;;  %v2674_v45 = vld [vmem:[#allocation2 + $0x88] sm:$0xf] }
 0x180   :  { %v2863_v29 = vshrl.u32 %v2674_v45, 16 }
 0x181   :  { %v2795_v4 = vrot.slane %v2793_v34, 4  ;;  %v2798_v55 = vrot.slane %v2796_v46, 5  ;;  %v2866_v34 = vshll.u32 %v2674_v45, 16  ;;  %v2790_v46 = vrot.slane %v2788_v35, 5 }
 0x183   :  { %v2799_v49 = vor.u32 %v2798_v55, %v2795_v4  ;;  %v2678_v4 = vld [vmem:[#allocation2 + $0x98] sm:$0xf] }
 0x185   :  { %v2800_v13 = vrot.slane %v2799_v49, 4  ;;  %v2872_v49 = vshll.u32 %v8671_v58, 16 }
 0x186   :  { %7153 = vmatmul.mubr.msk.bf16.vlgmr.msra.gmra.mrb[0].mxu0 %vm980_vm11, %v7662_v48  ;;  %v2779_v48 = vshrl.u32 %v2662_v30, 16 }
 0x187   :  { %7169 = vmatpush3.bf16.msra.mxu0 %v2955_v53  ;;  %7156 = vmatprep.mubr.msk.bf16.mxu0 %vm980_vm11, %v7663_v10  ;;  %v2782_v53 = vshll.u32 %v2662_v30, 16  ;;  %v2666_v10 = vld [vmem:[#allocation2 + $0x68] sm:$0xf]  ;;  %v2670_v30 = vld [vmem:[#allocation2 + $0x78] sm:$0xf] }
 0x188   :  { %7630 = vmatprep.subr.msk.bf16.mxu0 %vm1005_vm6, %v8597_v61  ;;  %v2807_v1 = vshrl.u32 %v2666_v10, 16  ;;  %v2810_v19 = vshll.u32 %v2666_v10, 16  ;;  %v2781_v6 = vrot.slane %v2779_v48, 4  ;;  %v2776_v61 = vrot.slane %v2774_v20, 5 }
 0x189   :  { %v2835_v48 = vshrl.u32 %v2670_v30, 16  ;;  %v2854_v20 = vrot.slane %v2852_v44, 5 }
 0x18a   :  { %v2809_v57 = vrot.slane %v2807_v1, 4  ;;  %v2812_v37 = vrot.slane %v2810_v19, 5  ;;  %v2823_v1 = vrot.slane %v2821_v32, 4 }
 0x18e   :  { %7157 = vmatmul.mubr.msk.bf16.gmra.mrb[4].mxu0 %vm980_vm11, %v7664_v36  ;;  %v2767_v36 = vrot.slane %v2765_v7, 4  ;;  %v2813_v7 = vor.u32 %v2812_v37, %v2809_v57  ;;  %v2830_v57 = vshll.u32 %v8653_v28, 16 }
 0x18f   :  { %7160 = vmatprep.mubr.msk.bf16.mxu0 %vm980_vm11, %v7665_v15  ;;  %v2784_v15 = vrot.slane %v2782_v53, 5  ;;  %v2838_v53 = vshll.u32 %v2670_v30, 16  ;;  %v2877_v30 = vshrl.u32 %v2676_v5, 16 }
 0x190   :  { %v2771_v51 = vor.u32 %v2770_v9, %v2767_v36  ;;  %v2814_v19 = vrot.slane %v2813_v7, 4  ;;  %v2826_v36 = vrot.slane %v2824_v52, 5  ;;  %v2837_v9 = vrot.slane %v2835_v48, 4 }
 0x191   :  { %v2785_v23 = vor.u32 %v2784_v15, %v2781_v6  ;;  %v2840_v6 = vrot.slane %v2838_v53, 5  ;;  %v2832_v32 = vrot.slane %v2830_v57, 5  ;;  %v2879_v53 = vrot.slane %v2877_v30, 4 }
 0x192   :  { %v2772_v3 = vrot.slane %v2771_v51, 4  ;;  %v3120_v57 = vrot.slane %v8603_v8, 5 }
 0x193   :  { %v2786_v42 = vrot.slane %v2785_v23, 4  ;;  %v8669_v23 = vld [vmem:[#allocation2 + $0x84] sm:$0x1] }
 0x194   :  { %v2777_v55 = vsel %vm7986_vm9, %v2772_v3, %v2776_v61  ;;  %v2855_v61 = vor.u32 %v2854_v20, %v2851_v24  ;;  %v2858_v54 = vshll.u32 %v8669_v23, 16 }
 0x195   :  { %v2791_v31 = vsel %vm7986_vm9, %v2786_v42, %v2790_v46 }
 0x196   :  { %7161 = vmatmul.mubr.msk.bf16.gmra.mrb[8].mxu0 %vm980_vm11, %v7666_v43  ;;  %v2758_v43 = vrot.slane %v2757_v12, 4  ;;  %v2818_v12 = vrot.slane %v2816_v41, 5  ;;  %v6600_v41 = vcombine.low %v2777_v55, %v2791_v31  ;;  %v2860_v63 = vrot.slane %v2858_v54, 5  ;;  %v3071_v31 = vld [vmem:[#allocation2 + $0x18] sm:$0xe] }
 0x197   :  { %7164 = vmatprep.mubr.msk.bf16.mxu0 %vm980_vm11, %v7667_v25  ;;  %v6598_v25 = vcombine.low %v2721_v17, %v2735_v14  ;;  %v2868_v14 = vrot.slane %v2866_v34, 5  ;;  %v8663_v17 = vld [vmem:[#allocation2 + $0x7c] sm:$0x1]  ;;  %v8677_v34 = vld [vmem:[#allocation2 + $0x94] sm:$0x1] }
 0x198   :  { %v2763_v10 = vsel %vm7986_vm9, %v2758_v43, %v2762_v38  ;;  %v2819_v37 = vsel %vm7986_vm9, %v2814_v19, %v2818_v12  ;;  %v2827_v43 = vor.u32 %v2826_v36, %v2823_v1  ;;  %v2844_v51 = vshll.u32 %v8663_v17, 16 }
 0x199   :  { %v6599_v15 = vcombine.low %v2749_v18, %v2763_v10  ;;  %v2891_v18 = vshrl.u32 %v2678_v4, 16  ;;  %v2894_v38 = vshll.u32 %v2678_v4, 16  ;;  %v2886_v12 = vshll.u32 %v8677_v34, 16 }
 0x19a   :  { %v2828_v7 = vrot.slane %v2827_v43, 4  ;;  %v2846_v48 = vrot.slane %v2844_v51, 5  ;;  %v3124_v43 = vrot.slane %v8606_v22, 5  ;;  %v3132_v22 = vrot.slane %v8613_v62, 5 }
 0x19b   :  { %v2893_v3 = vrot.slane %v2891_v18, 4  ;;  %v2896_v42 = vrot.slane %v2894_v38, 5  ;;  %v2888_v20 = vrot.slane %v2886_v12, 5  ;;  %v3075_v18 = vld [vmem:[#allocation2 + $0x38] sm:$0xe]  ;;  %v3148_v12 = vrot.slane %v8646_v59, 5 }
 0x19c   :  { %v2833_v46 = vsel %vm7986_vm9, %v2828_v7, %v2832_v32  ;;  %v3140_v32 = vrot.slane %v8624_v33, 5  ;;  %v3128_v7 = vrot.slane %v8611_v39, 5  ;;  %v3078_v33 = vld [vmem:[#allocation2 + $0x60] sm:$0xe] }
 0x19d   :  { %v2897_v36 = vor.u32 %v2896_v42, %v2893_v3  ;;  %v3077_v3 = vld [vmem:[#allocation2 + $0x48] sm:$0xe] }
 0x19e   :  { %7165 = vmatmul.mubr.msk.bf16.gmra.mrb[12].mxu0 %vm980_vm11, %v7668_v11  ;;  %v2805_v11 = vsel %vm7986_vm9, %v2800_v13, %v2804_v21  ;;  %v2856_v21 = vrot.slane %v2855_v61, 4  ;;  %v8681_v13 = vld [vmem:[#allocation2 + $0x9c] sm:$0x1]  ;;  %v3072_v61 = vld [vmem:[#allocation2 + $0x20] sm:$0xe] }
 0x19f   :  { %7170 = vmatprep.mubr.msk.bf16.mxu0 %vm980_vm11, %v6597_v2  ;;  %v2865_v2 = vrot.slane %v2863_v29, 4  ;;  %v6601_v45 = vcombine.low %v2805_v11, %v2819_v37  ;;  %v2874_v29 = vrot.slane %v2872_v49, 5  ;;  %v2898_v4 = vrot.slane %v2897_v36, 4  ;;  %v3074_v49 = vld [vmem:[#allocation2 + $0x30] sm:$0xe] }
 0x1a0   :  { %v6614_v37 = vrot.slane %v3071_v31, 9  ;;  %v3164_v31 = vrot.slane %v8663_v17, 5 }
 0x1a1   :  { %v2869_v35 = vor.u32 %v2868_v14, %v2865_v2 }
 0x1a2   :  { %v3125_v8 = vsel %vm8236_vm14, %v6614_v37, %v3124_v43  ;;  %v3172_v43 = vrot.slane %v8671_v58, 5  ;;  %v3176_v58 = vrot.slane %v8677_v34, 5 }
 0x1a3   :  { %v2870_v44 = vrot.slane %v2869_v35, 4 }
 0x1a6   :  { %7171 = vmatmul.mubr.msk.bf16.vlgmr.msra.gmra.mrb[0].mxu0 %vm980_vm11, %v6598_v25  ;;  %v2880_v25 = vshll.u32 %v2676_v5, 16  ;;  %v3070_v5 = vld [vmem:[#allocation2 + $0x10] sm:$0xe] }
 0x1a7   :  { %7187 = vmatpush3.bf16.msra.mxu0 %v3233_v40  ;;  %7174 = vmatprep.mubr.msk.bf16.mxu0 %vm980_vm11, %v6599_v15  ;;  %v2841_v40 = vor.u32 %v2840_v6, %v2837_v9  ;;  %v2900_v9 = vshll.u32 %v8681_v13, 16  ;;  %v2861_v6 = vsel %vm7986_vm9, %v2856_v21, %v2860_v63  ;;  %v2875_v15 = vsel %vm7986_vm9, %v2870_v44, %v2874_v29  ;;  %v3079_v21 = vld [vmem:[#allocation2 + $0x68] sm:$0xe] }
 0x1a8   :  { %v2882_v10 = vrot.slane %v2880_v25, 5  ;;  %v6603_v2 = vcombine.low %v2861_v6, %v2875_v15  ;;  %v6613_v11 = vrot.slane %v3070_v5, 9  ;;  %v3073_v25 = vld [vmem:[#allocation2 + $0x28] sm:$0xe]  ;;  %v6622_v36 = vrot.slane %v3079_v21, 9 }
 0x1a9   :  { %v2842_v52 = vrot.slane %v2841_v40, 4  ;;  %v2902_v55 = vrot.slane %v2900_v9, 5  ;;  %v6616_v35 = vrot.slane %v3073_v25, 9  ;;  %v3156_v9 = vrot.slane %v8640_v56, 5  ;;  %v3085_v25 = vld [vmem:[#allocation2 + $0x98] sm:$0xe] }
 0x1aa   :  { %v2883_v19 = vor.u32 %v2882_v10, %v2879_v53  ;;  %v3121_v30 = vsel %vm8236_vm14, %v6613_v11, %v3120_v57  ;;  %v3076_v10 = vld [vmem:[#allocation2 + $0x40] sm:$0xe]  ;;  %v3168_v57 = vrot.slane %v8669_v23, 5 }
 0x1ab   :  { %v2847_v1 = vsel %vm7986_vm9, %v2842_v52, %v2846_v48  ;;  %v2903_v51 = vsel %vm7986_vm9, %v2898_v4, %v2902_v55  ;;  %v6630_v54 = vcombine.low %v3121_v30, %v3125_v8  ;;  %v6617_v52 = vrot.slane %v3074_v49, 9  ;;  %v188_v49 = vld [vmem:[#allocation3 + $0x8] sm:$0x1] }
 0x1ac   :  { %v6602_v24 = vcombine.low %v2833_v46, %v2847_v1  ;;  %v2884_v14 = vrot.slane %v2883_v19, 4  ;;  %v3136_v48 = vrot.slane %v8617_v47, 5  ;;  %v3133_v53 = vsel %vm8236_vm14, %v6616_v35, %v3132_v22 }
 0x1ad   :  { %v6619_v44 = vrot.slane %v3076_v10, 9  ;;  %v3144_v47 = vrot.slane %v8628_v16, 5  ;;  %v6620_v46 = vrot.slane %v3077_v3, 9  ;;  %v6621_v1 = vrot.slane %v3078_v33, 9  ;;  %v3080_v16 = vld [vmem:[#allocation2 + $0x70] sm:$0xe] }
 0x1ae   :  { %7175 = vmatmul.mubr.msk.bf16.gmra.mrb[4].mxu0 %vm980_vm11, %v6600_v41  ;;  %v2889_v40 = vsel %vm7986_vm9, %v2884_v14, %v2888_v20  ;;  %v6618_v41 = vrot.slane %v3075_v18, 9  ;;  %v3137_v39 = vsel %vm8236_vm14, %v6617_v52, %v3136_v48  ;;  %v3152_v19 = vrot.slane %v8634_v60, 5  ;;  %v3082_v60 = vld [vmem:[#allocation2 + $0x80] sm:$0xe]  ;;  %v3083_v20 = vld [vmem:[#allocation2 + $0x88] sm:$0xe] }
 0x1af   :  { %7178 = vmatprep.mubr.msk.bf16.mxu0 %vm980_vm11, %v6601_v45  ;;  %v6604_v38 = vcombine.low %v2889_v40, %v2903_v51  ;;  %v6615_v45 = vrot.slane %v3072_v61, 9  ;;  %v3145_v6 = vsel %vm8236_vm14, %v6619_v44, %v3144_v47  ;;  %v3149_v15 = vsel %vm8236_vm14, %v6620_v46, %v3148_v12  ;;  %v191_v48 = vld [vmem:[#allocation3 + $0x10] sm:$0x1]  ;;  %v206_v3 = vld [vmem:[#allocation3 + $0x38] sm:$0x1] }
 0x1b0   :  { %v3141_v62 = vsel %vm8236_vm14, %v6618_v41, %v3140_v32  ;;  %v3153_v59 = vsel %vm8236_vm14, %v6621_v1, %v3152_v19  ;;  %v3157_v5 = vsel %vm8236_vm14, %v6622_v36, %v3156_v9  ;;  %v6623_v56 = vrot.slane %v3080_v16, 9  ;;  %v249_v41 = vld [vmem:[#allocation3 + $0xc] sm:$0x1]  ;;  %v197_v32 = vld [vmem:[#allocation3 + $0x20] sm:$0x1] }
 0x1b1   :  { %v3129_v42 = vsel %vm8236_vm14, %v6615_v45, %v3128_v7  ;;  %v6632_v29 = vcombine.low %v3137_v39, %v3141_v62  ;;  %v6634_v14 = vcombine.low %v3153_v59, %v3157_v5  ;;  %v3160_v4 = vrot.slane %v8653_v28, 5  ;;  %v3084_v28 = vld [vmem:[#allocation2 + $0x90] sm:$0xe]  ;;  %v258_v45 = vld [vmem:[#allocation3 + $0x24] sm:$0x1] }
 0x1b2   :  { %v6631_v63 = vcombine.low %v3129_v42, %v3133_v53  ;;  %v6625_v11 = vrot.slane %v3082_v60, 9  ;;  %v6626_v37 = vrot.slane %v3083_v20, 9  ;;  %v6627_v18 = vrot.slane %v3084_v28, 9  ;;  %v252_v53 = vld [vmem:[#allocation3 + $0x14] sm:$0x1] }
 0x1b3   :  { %v3161_v40 = vsel %vm8236_vm14, %v6623_v56, %v3160_v4  ;;  %v6628_v8 = vrot.slane %v3085_v25, 9  ;;  %v3180_v61 = vrot.slane %v8681_v13, 5  ;;  %v189_v34 = vsel %vm8511_vm1, 0, %v188_v49  ;;  %v267_v42 = vld [vmem:[#allocation3 + $0x3c] sm:$0x1] }
 0x1b4   :  { %v3169_v17 = vsel %vm8236_vm14, %v6625_v11, %v3168_v57  ;;  %v3173_v30 = vsel %vm8236_vm14, %v6626_v37, %v3172_v43  ;;  %v250_v13 = vsel %vm8535_vm2, 0, %v249_v41  ;;  %190 = vst [vmem:[#allocation3 + $0x8] sm:$0x1] %v189_v34  ;;  %v198_v7 = vsel %vm8511_vm1, 0, %v197_v32  ;;  %v261_v44 = vld [vmem:[#allocation3 + $0x2c] sm:$0x1] }
 0x1b5   :  { %v3181_v35 = vsel %vm8236_vm14, %v6628_v8, %v3180_v61  ;;  %251 = vst [vmem:[#allocation3 + $0xc] sm:$0x1] %v250_v13  ;;  %v259_v52 = vsel %vm8535_vm2, 0, %v258_v45  ;;  %199 = vst [vmem:[#allocation3 + $0x20] sm:$0x1] %v198_v7  ;;  %v192_v10 = vsel %vm8511_vm1, 0, %v191_v48 }
 0x1b6   :  { %7179 = vmatmul.mubr.msk.bf16.gmra.mrb[8].mxu0 %vm980_vm11, %v6602_v24  ;;  %v3081_v24 = vld [vmem:[#allocation2 + $0x78] sm:$0xe]  ;;  %260 = vst [vmem:[#allocation3 + $0x24] sm:$0x1] %v259_v52  ;;  %v253_v62 = vsel %vm8535_vm2, 0, %v252_v53  ;;  %v207_v33 = vsel %vm8511_vm1, 0, %v206_v3 }
 0x1b7   :  { %7182 = vmatprep.mubr.msk.bf16.mxu0 %vm980_vm11, %v6603_v2  ;;  %v6633_v2 = vcombine.low %v3145_v6, %v3149_v15  ;;  %v6624_v55 = vrot.slane %v3081_v24, 9  ;;  %193 = vst [vmem:[#allocation3 + $0x10] sm:$0x1] %v192_v10  ;;  %254 = vst [vmem:[#allocation3 + $0x14] sm:$0x1] %v253_v62  ;;  %v268_v21 = vsel %vm8535_vm2, 0, %v267_v42 }
 0x1b8   :  { %208 = vst [vmem:[#allocation3 + $0x38] sm:$0x1] %v207_v33  ;;  %269 = vst [vmem:[#allocation3 + $0x3c] sm:$0x1] %v268_v21  ;;  %v209_v47 = vld [vmem:[#allocation3 + $0x40] sm:$0x1] }
 0x1b9   :  { %v3165_v51 = vsel %vm8236_vm14, %v6624_v55, %v3164_v31  ;;  %v270_v46 = vld [vmem:[#allocation3 + $0x44] sm:$0x1]  ;;  %v210_v12 = vsel %vm8511_vm1, 0, %v209_v47  ;;  %v203_v19 = vld [vmem:[#allocation3 + $0x30] sm:$0x1] }
 0x1ba   :  { %v6635_v23 = vcombine.low %v3161_v40, %v3165_v51  ;;  %v271_v1 = vsel %vm8535_vm2, 0, %v270_v46  ;;  %211 = vst [vmem:[#allocation3 + $0x40] sm:$0x1] %v210_v12  ;;  %v264_v36 = vld [vmem:[#allocation3 + $0x34] sm:$0x1]  ;;  %v204_v6 = vsel %vm8511_vm1, 0, %v203_v19 }
 0x1bb   :  { %272 = vst [vmem:[#allocation3 + $0x44] sm:$0x1] %v271_v1  ;;  %v224_v9 = vld [vmem:[#allocation3 + $0x68] sm:$0x1]  ;;  %v265_v15 = vsel %vm8535_vm2, 0, %v264_v36 }
 0x1bc   :  { %v225_v16 = vsel %vm8511_vm1, 0, %v224_v9  ;;  %v285_v59 = vld [vmem:[#allocation3 + $0x6c] sm:$0x1]  ;;  %205 = vst [vmem:[#allocation3 + $0x30] sm:$0x1] %v204_v6 }
 0x1bd   :  { %266 = vst [vmem:[#allocation3 + $0x34] sm:$0x1] %v265_v15  ;;  %226 = vst [vmem:[#allocation3 + $0x68] sm:$0x1] %v225_v16  ;;  %v286_v5 = vsel %vm8535_vm2, 0, %v285_v59 }
 0x1be   :  { %7183 = vmatmul.mubr.msk.bf16.gmra.mrb[12].mxu0 %vm980_vm11, %v6604_v38  ;;  %v6636_v38 = vcombine.low %v3169_v17, %v3173_v30  ;;  %287 = vst [vmem:[#allocation3 + $0x6c] sm:$0x1] %v286_v5  ;;  %v218_v24 = vld [vmem:[#allocation3 + $0x58] sm:$0x1]  ;;  %v279_v60 = vld [vmem:[#allocation3 + $0x5c] sm:$0x1] }
 0x1bf   :  { %7188 = vmatprep.mubr.msk.bf16.mxu0 %vm980_vm11, %v6630_v54  ;;  %v3177_v54 = vsel %vm8236_vm14, %v6627_v18, %v3176_v58  ;;  %v227_v20 = vld [vmem:[#allocation3 + $0x70] sm:$0x1]  ;;  %v280_v56 = vsel %vm8535_vm2, 0, %v279_v60  ;;  %v288_v4 = vld [vmem:[#allocation3 + $0x74] sm:$0x1] }
 0x1c0   :  { %v6637_v22 = vcombine.low %v3177_v54, %v3181_v35  ;;  %281 = vst [vmem:[#allocation3 + $0x5c] sm:$0x1] %v280_v56  ;;  %v289_v55 = vsel %vm8535_vm2, 0, %v288_v4  ;;  %v221_v31 = vld [vmem:[#allocation3 + $0x60] sm:$0x1] }
 0x1c1   :  { %290 = vst [vmem:[#allocation3 + $0x74] sm:$0x1] %v289_v55  ;;  %v282_v11 = vld [vmem:[#allocation3 + $0x64] sm:$0x1]  ;;  %v222_v57 = vsel %vm8511_vm1, 0, %v221_v31 }
 0x1c2   :  { %v283_v37 = vsel %vm8535_vm2, 0, %v282_v11  ;;  %223 = vst [vmem:[#allocation3 + $0x60] sm:$0x1] %v222_v57  ;;  %v236_v43 = vld [vmem:[#allocation3 + $0x88] sm:$0x1] }
 0x1c3   :  { %284 = vst [vmem:[#allocation3 + $0x64] sm:$0x1] %v283_v37  ;;  %v297_v40 = vld [vmem:[#allocation3 + $0x8c] sm:$0x1]  ;;  %v237_v51 = vsel %vm8511_vm1, 0, %v236_v43 }
 0x1c4   :  { %v298_v28 = vsel %vm8535_vm2, 0, %v297_v40  ;;  %v230_v17 = vld [vmem:[#allocation3 + $0x78] sm:$0x1]  ;;  %v291_v30 = vld [vmem:[#allocation3 + $0x7c] sm:$0x1] }
 0x1c5   :  { %238 = vst [vmem:[#allocation3 + $0x88] sm:$0x1] %v237_v51  ;;  %299 = vst [vmem:[#allocation3 + $0x8c] sm:$0x1] %v298_v28  ;;  %v231_v25 = vsel %vm8511_vm1, 0, %v230_v17 }
 0x1c6   :  { %7189 = vmatmul.mubr.msk.bf16.vlgmr.msra.gmra.mrb[0].mxu0 %vm980_vm11, %v6631_v63  ;;  %v200_v63 = vld [vmem:[#allocation3 + $0x28] sm:$0x1]  ;;  %232 = vst [vmem:[#allocation3 + $0x78] sm:$0x1] %v231_v25  ;;  %v239_v18 = vld [vmem:[#allocation3 + $0x90] sm:$0x1] }
 0x1c7   :  { %7192 = vmatprep.mubr.msk.bf16.mxu0 %vm980_vm11, %v6632_v29  ;;  %v201_v39 = vsel %vm8511_vm1, 0, %v200_v63  ;;  %v262_v29 = vsel %vm8535_vm2, 0, %v261_v44  ;;  %v240_v58 = vsel %vm8511_vm1, 0, %v239_v18  ;;  %v233_v61 = vld [vmem:[#allocation3 + $0x80] sm:$0x1] }
 0x1c8   :  { %202 = vst [vmem:[#allocation3 + $0x28] sm:$0x1] %v201_v39  ;;  %263 = vst [vmem:[#allocation3 + $0x2c] sm:$0x1] %v262_v29  ;;  %v294_v54 = vld [vmem:[#allocation3 + $0x84] sm:$0x1] }
 0x1c9   :  { %241 = vst [vmem:[#allocation3 + $0x90] sm:$0x1] %v240_v58  ;;  %v234_v35 = vsel %vm8511_vm1, 0, %v233_v61  ;;  %v6663_v49 = vld [vmem:[%s9630_s3 + $0x4] sm:$0xf] }
 0x1ca   :  { %235 = vst [vmem:[#allocation3 + $0x80] sm:$0x1] %v234_v35  ;;  %v185_v41 = vld [vmem:[#allocation3] sm:$0x1]  ;;  %7631 = vmatprep.subr.msk.bf16.mxu1 %vm4018_vm4, %v6663_v49  ;;  %v4020_v34 = vsel %vm4018_vm4, %v6663_v49, 0 }
 0x1cb   :  { %v186_v13 = vsel %vm8511_vm1, 0, %v185_v41  ;;  %7205 = vmatpush3.bf16.msra.mxu1 %v4020_v34  ;;  %v246_v32 = vld [vmem:[#allocation3 + $0x4] sm:$0x1]  ;;  %v3726_v7 = vld [vmem:[%s9630_s3] sm:$0xf] }
 0x1cc   :  { %187 = vst [vmem:[#allocation3] sm:$0x1] %v186_v13  ;;  %v247_v45 = vsel %vm8535_vm2, 0, %v246_v32  ;;  %7632 = vmatprep.subr.msk.bf16.mxu1 %vm4018_vm4, %v3726_v7  ;;  %v215_v52 = vld [vmem:[#allocation3 + $0x50] sm:$0x1]  ;;  %v8855_v57 = vsel %vm4018_vm4, %v3726_v7, 0 }
 0x1cd   :  { %248 = vst [vmem:[#allocation3 + $0x4] sm:$0x1] %v247_v45  ;;  %v276_v48 = vld [vmem:[#allocation3 + $0x54] sm:$0x1]  ;;  %v216_v53 = vsel %vm8511_vm1, 0, %v215_v52 }
 0x1ce   :  { %7193 = vmatmul.mubr.msk.bf16.gmra.mrb[4].mxu0 %vm980_vm11, %v6633_v2  ;;  %v219_v2 = vsel %vm8511_vm1, 0, %v218_v24  ;;  %v277_v10 = vsel %vm8535_vm2, 0, %v276_v48  ;;  %217 = vst [vmem:[#allocation3 + $0x50] sm:$0x1] %v216_v53  ;;  %v8840_v47 = vld [vmem:[%s9629_s2] ss:$0 sm:$0xff] }
 0x1cf   :  { %7196 = vmatprep.mubr.msk.bf16.mxu0 %vm980_vm11, %v6634_v14  ;;  %v228_v14 = vsel %vm8511_vm1, 0, %v227_v20  ;;  %220 = vst [vmem:[#allocation3 + $0x58] sm:$0x1] %v219_v2  ;;  %278 = vst [vmem:[#allocation3 + $0x54] sm:$0x1] %v277_v10 }
 0x1d0   :  { %229 = vst [vmem:[#allocation3 + $0x70] sm:$0x1] %v228_v14  ;;  %v3626_v18 = vld [vmem:[#allocation3 + $0x18] sm:$0xf]  ;;  %v3617_v7 = vld [vmem:[#allocation3 + $0xc] sm:$0x1] }
 0x1d3   :  { %v8831_v62 = vld [vmem:[#allocation3] sm:$0xf] }
 0x1d4   :  { %v3744_v3 = vshrl.u32 %v8831_v62, 16  ;;  %v3747_v42 = vshll.u32 %v8831_v62, 16  ;;  %v8835_v29 = vld [vmem:[#allocation3 + $0x4] sm:$0x1] }
 0x1d5   :  { %v3718_v33 = vld [vmem:[#allocation3 + $0x50] sm:$0xf]  ;;  %v3753_v12 = vshll.u32 %v8835_v29, 16  ;;  %v4333_v51 = vrot.slane %v8835_v29, 5 }
 0x1d6   :  { %7197 = vmatmul.mubr.msk.bf16.gmra.mrb[8].mxu0 %vm980_vm11, %v6635_v23  ;;  %v292_v23 = vsel %vm8535_vm2, 0, %v291_v30  ;;  %v3746_v21 = vrot.slane %v3744_v3, 4  ;;  %v3749_v63 = vrot.slane %v3747_v42, 5  ;;  %v3856_v39 = vshrl.u32 %v3718_v33, 16  ;;  %v8849_v24 = vld [vmem:[#allocation3 + $0x54] sm:$0x1] }
 0x1d7   :  { %7200 = vmatprep.mubr.msk.bf16.mxu0 %vm980_vm11, %v6636_v38  ;;  %293 = vst [vmem:[#allocation3 + $0x7c] sm:$0x1] %v292_v23  ;;  %v300_v38 = vld [vmem:[#allocation3 + $0x94] sm:$0x1]  ;;  %v3859_v44 = vshll.u32 %v3718_v33, 16  ;;  %v8847_v5 = vrot.slane %v3753_v12, 5 }
 0x1d8   :  { %v301_v8 = vsel %vm8535_vm2, 0, %v300_v38  ;;  %v3750_v46 = vor.u32 %v3749_v63, %v3746_v21  ;;  %v3858_v1 = vrot.slane %v3856_v39, 4  ;;  %v3865_v14 = vshll.u32 %v8849_v24, 16  ;;  %v3629_v38 = vld [vmem:[#allocation3 + $0x1c] sm:$0x1] }
 0x1d9   :  { %302 = vst [vmem:[#allocation3 + $0x94] sm:$0x1] %v301_v8  ;;  %v3861_v19 = vrot.slane %v3859_v44, 5  ;;  %v3632_v21 = vld [vmem:[#allocation3 + $0x20] sm:$0xf] }
 0x1da   :  { %v8845_v59 = vrot.slane %v3750_v46, 4  ;;  %v8864_v25 = vrot.slane %v3865_v14, 5  ;;  %v3635_v12 = vld [vmem:[#allocation3 + $0x24] sm:$0x1] }
 0x1db   :  { %v3862_v56 = vor.u32 %v3861_v19, %v3858_v1 }
 0x1dc   :  { %v3756_v40 = vsel %vm7986_vm9, %v8845_v59, %v8847_v5 }
 0x1dd   :  { %v8862_v30 = vrot.slane %v3862_v56, 4 }
 0x1de   :  { %7201 = vmatmul.mubr.msk.bf16.gmra.mrb[12].mxu0 %vm980_vm11, %v6637_v22  ;;  %v295_v22 = vsel %vm8535_vm2, 0, %v294_v54 }
 0x1df   :  { %296 = vst [vmem:[#allocation3 + $0x84] sm:$0x1] %v295_v22  ;;  %v3614_v22 = vld [vmem:[#allocation3 + $0x8] sm:$0xf] }
 0x299   :  { %v7190_v36 = vpop.f32.mrb[0].mxu0 }
 0x29a   :  { %v3357_v9 = vadd.f32 %v7190_v36, %v8840_v47  ;;  %v3269_v6 = vpop.f32.mrb[1].mxu0 }
 0x29b   :  { %v3355_v15 = vadd.f32 %v8840_v47, %v3269_v6  ;;  %v7191_v16 = vpop.f32.mrb[2].mxu0 }
 0x29c   :  { %v3373_v60 = vmax.f32 %v3357_v9, 0.0  ;;  %v3358_v20 = vadd.f32 %v7191_v16, %v8840_v47  ;;  %v3272_v2 = vpop.f32.mrb[3].mxu0  ;;  %v3620_v16 = vld [vmem:[#allocation3 + $0x10] sm:$0xf] }
 0x29d   :  { %v3371_v4 = vmax.f32 %v3355_v15, 0.0  ;;  %v3356_v55 = vadd.f32 %v8840_v47, %v3272_v2 }
 0x29e   :  { %v6866_v31 = vpack.c.bf16 %v3373_v60, %v3373_v60  ;;  %v3374_v11 = vmax.f32 %v3358_v20, 0.0  ;;  %v3623_v60 = vld [vmem:[#allocation3 + $0x14] sm:$0x1] }
 0x29f   :  { %v6864_v37 = vpack.c.bf16 %v3371_v4, %v3371_v4  ;;  %v3372_v43 = vmax.f32 %v3356_v55, 0.0  ;;  %v8882_v4 = vld [vmem:[#allocation3] sm:$0xe] }
 0x2a0   :  { %v3468_v28 = vshrl.u32 %v6866_v31, 16  ;;  %v6867_v17 = vpack.c.bf16 %v3374_v11, %v3374_v11  ;;  %v3471_v23 = vshll.u32 %v6866_v31, 16 }
 0x2a1   :  { %v3452_v58 = vshrl.u32 %v6864_v37, 16  ;;  %v3455_v8 = vshll.u32 %v6864_v37, 16  ;;  %v6865_v61 = vpack.c.bf16 %v3372_v43, %v3372_v43  ;;  %v7194_v54 = vpop.f32.mrb[4].mxu0 }
 0x2a2   :  { %v3470_v35 = vrot.slane %v3468_v28, 7  ;;  %v3476_v49 = vshrl.u32 %v6867_v17, 16  ;;  %v3479_v41 = vshll.u32 %v6867_v17, 16  ;;  %v3361_v34 = vadd.f32 %v7194_v54, %v8840_v47  ;;  %v3285_v13 = vpop.f32.mrb[5].mxu0 }
 0x2a3   :  { %v3454_v45 = vrot.slane %v3452_v58, 7  ;;  %v3460_v52 = vshrl.u32 %v6865_v61, 16  ;;  %v3463_v48 = vshll.u32 %v6865_v61, 16  ;;  %v3359_v53 = vadd.f32 %v8840_v47, %v3285_v13  ;;  %v7195_v10 = vpop.f32.mrb[6].mxu0 }
 0x2a4   :  { %v3473_v3 = vor.u32 %v3471_v23, %v3470_v35  ;;  %v3474_v42 = vrot.slane %v3470_v35, 4  ;;  %v3478_v33 = vrot.slane %v3476_v49, 7  ;;  %v3377_v63 = vmax.f32 %v3361_v34, 0.0  ;;  %v3288_v39 = vpop.f32.mrb[7].mxu0  ;;  %v3650_v35 = vld [vmem:[#allocation3 + $0x38] sm:$0xf] }
 0x2a5   :  { %v3457_v44 = vor.u32 %v3455_v8, %v3454_v45  ;;  %v3458_v46 = vrot.slane %v3454_v45, 4  ;;  %v3462_v1 = vrot.slane %v3460_v52, 7  ;;  %v3375_v19 = vmax.f32 %v3359_v53, 0.0 }
 0x2a6   :  { %v3627_v36 = vsel %vm8869_vm5, %v3473_v3, %v3626_v18  ;;  %v3630_v9 = vsel %vm8511_vm1, %v3474_v42, %v3629_v38  ;;  %v3481_v6 = vor.u32 %v3479_v41, %v3478_v33  ;;  %v3482_v15 = vrot.slane %v3478_v33, 4  ;;  %v3638_v3 = vld [vmem:[#allocation3 + $0x28] sm:$0xf]  ;;  %v3641_v42 = vld [vmem:[#allocation3 + $0x2c] sm:$0x1] }
 0x2a7   :  { %3628 = vst [vmem:[#allocation3 + $0x18] sm:$0xf] %v3627_v36  ;;  %3631 = vst [vmem:[#allocation3 + $0x1c] sm:$0x1] %v3630_v9  ;;  %v3615_v20 = vsel %vm8869_vm5, %v3457_v44, %v3614_v22  ;;  %v3618_v2 = vsel %vm8511_vm1, %v3458_v46, %v3617_v7  ;;  %v3465_v56 = vor.u32 %v3463_v48, %v3462_v1  ;;  %v3466_v14 = vrot.slane %v3462_v1, 4 }
 0x2a8   :  { %3616 = vst [vmem:[#allocation3 + $0x8] sm:$0xf] %v3615_v20  ;;  %3619 = vst [vmem:[#allocation3 + $0xc] sm:$0x1] %v3618_v2  ;;  %v3633_v55 = vsel %vm8869_vm5, %v3481_v6, %v3632_v21  ;;  %v3636_v31 = vsel %vm8511_vm1, %v3482_v15, %v3635_v12  ;;  %v6870_v11 = vpack.c.bf16 %v3377_v63, %v3377_v63  ;;  %v6696_v54 = vrot.slane %v8882_v4, 9 }
 0x2a9   :  { %v6868_v37 = vpack.c.bf16 %v3375_v19, %v3375_v19  ;;  %3634 = vst [vmem:[#allocation3 + $0x20] sm:$0xf] %v3633_v55  ;;  %3637 = vst [vmem:[#allocation3 + $0x24] sm:$0x1] %v3636_v31  ;;  %v3621_v43 = vsel %vm8869_vm5, %v3465_v56, %v3620_v16  ;;  %v3624_v28 = vsel %vm8511_vm1, %v3466_v14, %v3623_v60  ;;  %v7198_v18 = vpop.f32.mrb[8].mxu0 }
 0x2aa   :  { %v3362_v17 = vadd.f32 %v7195_v10, %v8840_v47  ;;  %v3360_v23 = vadd.f32 %v8840_v47, %v3288_v39  ;;  %3622 = vst [vmem:[#allocation3 + $0x10] sm:$0xf] %v3621_v43  ;;  %3625 = vst [vmem:[#allocation3 + $0x14] sm:$0x1] %v3624_v28  ;;  %v3500_v38 = vshrl.u32 %v6870_v11, 16  ;;  %v3503_v58 = vshll.u32 %v6870_v11, 16 }
 0x2ab   :  { %v3484_v8 = vshrl.u32 %v6868_v37, 16  ;;  %v3301_v61 = vpop.f32.mrb[9].mxu0  ;;  %v3365_v41 = vadd.f32 %v7198_v18, %v8840_v47  ;;  %v3653_v7 = vld [vmem:[#allocation3 + $0x3c] sm:$0x1]  ;;  %v3487_v48 = vshll.u32 %v6868_v37, 16 }
 0x2ac   :  { %v3378_v22 = vmax.f32 %v3362_v17, 0.0  ;;  %v3376_v49 = vmax.f32 %v3360_v23, 0.0  ;;  %v3363_v34 = vadd.f32 %v8840_v47, %v3301_v61  ;;  %v7199_v13 = vpop.f32.mrb[10].mxu0  ;;  %v3502_v45 = vrot.slane %v3500_v38, 7  ;;  %v3656_v2 = vld [vmem:[#allocation3 + $0x40] sm:$0xf] }
 0x2ad   :  { %v3486_v52 = vrot.slane %v3484_v8, 7  ;;  %v8898_v53 = vadd.f32 %v7199_v13, %v8840_v47  ;;  %v3304_v10 = vpop.f32.mrb[11].mxu0  ;;  %v3381_v63 = vmax.f32 %v3365_v41, 0.0  ;;  %v3659_v56 = vld [vmem:[#allocation3 + $0x44] sm:$0x1] }
 0x2ae   :  { %v6871_v33 = vpack.c.bf16 %v3378_v22, %v3378_v22  ;;  %v6869_v21 = vpack.c.bf16 %v3376_v49, %v3376_v49  ;;  %v3379_v39 = vmax.f32 %v3363_v34, 0.0  ;;  %v3505_v44 = vor.u32 %v3503_v58, %v3502_v45  ;;  %v3644_v31 = vld [vmem:[#allocation3 + $0x30] sm:$0xf]  ;;  %v3647_v28 = vld [vmem:[#allocation3 + $0x34] sm:$0x1] }
 0x2af   :  { %v3506_v46 = vrot.slane %v3502_v45, 4  ;;  %v3489_v12 = vor.u32 %v3487_v48, %v3486_v52  ;;  %v3490_v1 = vrot.slane %v3486_v52, 4  ;;  %v6874_v11 = vpack.c.bf16 %v3381_v63, %v3381_v63 }
 0x2b0   :  { %v3508_v19 = vshrl.u32 %v6871_v33, 16  ;;  %v3511_v36 = vshll.u32 %v6871_v33, 16  ;;  %v3492_v9 = vshrl.u32 %v6869_v21, 16  ;;  %v3495_v6 = vshll.u32 %v6869_v21, 16  ;;  %v3662_v33 = vld [vmem:[#allocation3 + $0x58] sm:$0xf] }
 0x2b1   :  { %v3651_v15 = vsel %vm8869_vm5, %v3505_v44, %v3650_v35  ;;  %v3654_v16 = vsel %vm8511_vm1, %v3506_v46, %v3653_v7  ;;  %v3639_v60 = vsel %vm8869_vm5, %v3489_v12, %v3638_v3  ;;  %v3642_v20 = vsel %vm8511_vm1, %v3490_v1, %v3641_v42  ;;  %v7202_v43 = vpop.f32.mrb[12].mxu0  ;;  %v3674_v3 = vld [vmem:[#allocation3 + $0x68] sm:$0xf]  ;;  %v3677_v42 = vld [vmem:[#allocation3 + $0x6c] sm:$0x1] }
 0x2b2   :  { %3652 = vst [vmem:[#allocation3 + $0x38] sm:$0xf] %v3651_v15  ;;  %3655 = vst [vmem:[#allocation3 + $0x3c] sm:$0x1] %v3654_v16  ;;  %v3510_v14 = vrot.slane %v3508_v19, 7  ;;  %v3494_v55 = vrot.slane %v3492_v9, 7  ;;  %v6872_v37 = vpack.c.bf16 %v3379_v39, %v3379_v39  ;;  %v3364_v23 = vadd.f32 %v8840_v47, %v3304_v10 }
 0x2b3   :  { %3640 = vst [vmem:[#allocation3 + $0x28] sm:$0xf] %v3639_v60  ;;  %3643 = vst [vmem:[#allocation3 + $0x2c] sm:$0x1] %v3642_v20  ;;  %v3382_v17 = vmax.f32 %v8898_v53, 0.0  ;;  %v3369_v18 = vadd.f32 %v7202_v43, %v8840_v47  ;;  %v3317_v38 = vpop.f32.mrb[13].mxu0 }
 0x2b4   :  { %v4365_v58 = vrot.slane %v8849_v24, 5  ;;  %v3513_v8 = vor.u32 %v3511_v36, %v3510_v14  ;;  %v3514_v61 = vrot.slane %v3510_v14, 4  ;;  %v3497_v35 = vor.u32 %v3495_v6, %v3494_v55  ;;  %v7203_v49 = vpop.f32.mrb[14].mxu0  ;;  %v8920_v21 = vld [vmem:[#allocation3 + $0x8] sm:$0xf] }
 0x2b5   :  { %v3498_v22 = vrot.slane %v3494_v55, 4  ;;  %v3532_v41 = vshrl.u32 %v6874_v11, 16  ;;  %v3535_v34 = vshll.u32 %v6874_v11, 16  ;;  %v3516_v13 = vshrl.u32 %v6872_v37, 16  ;;  %v3320_v7 = vpop.f32.mrb[15].mxu0 }
 0x2b6   :  { %v3519_v45 = vshll.u32 %v6872_v37, 16  ;;  %v3657_v52 = vsel %vm8869_vm5, %v3513_v8, %v3656_v2  ;;  %v3660_v48 = vsel %vm8511_vm1, %v3514_v61, %v3659_v56  ;;  %v3645_v53 = vsel %vm8869_vm5, %v3497_v35, %v3644_v31  ;;  %v3665_v12 = vld [vmem:[#allocation3 + $0x5c] sm:$0x1]  ;;  %v3680_v37 = vld [vmem:[#allocation3 + $0x70] sm:$0xf] }
 0x2b7   :  { %v3648_v10 = vsel %vm8511_vm1, %v3498_v22, %v3647_v28  ;;  %3658 = vst [vmem:[#allocation3 + $0x40] sm:$0xf] %v3657_v52  ;;  %3661 = vst [vmem:[#allocation3 + $0x44] sm:$0x1] %v3660_v48  ;;  %v3534_v63 = vrot.slane %v3532_v41, 7  ;;  %v3518_v39 = vrot.slane %v3516_v13, 7  ;;  %v6875_v44 = vpack.c.bf16 %v3382_v17, %v3382_v17 }
 0x2b8   :  { %3646 = vst [vmem:[#allocation3 + $0x30] sm:$0xf] %v3645_v53  ;;  %3649 = vst [vmem:[#allocation3 + $0x34] sm:$0x1] %v3648_v10  ;;  %v3380_v46 = vmax.f32 %v3364_v23, 0.0  ;;  %v3385_v1 = vmax.f32 %v3369_v18, 0.0  ;;  %v3367_v19 = vadd.f32 %v8840_v47, %v3317_v38  ;;  %v3370_v36 = vadd.f32 %v7203_v49, %v8840_v47 }
 0x2b9   :  { %v3368_v9 = vadd.f32 %v8840_v47, %v3320_v7  ;;  %v3537_v6 = vor.u32 %v3535_v34, %v3534_v63  ;;  %v3538_v15 = vrot.slane %v3534_v63, 4  ;;  %v3521_v16 = vor.u32 %v3519_v45, %v3518_v39  ;;  %v3683_v43 = vld [vmem:[#allocation3 + $0x74] sm:$0x1]  ;;  %v3668_v8 = vld [vmem:[#allocation3 + $0x60] sm:$0xf] }
 0x2ba   :  { %v3522_v60 = vrot.slane %v3518_v39, 4  ;;  %v3540_v20 = vshrl.u32 %v6875_v44, 16  ;;  %v6873_v2 = vpack.c.bf16 %v3380_v46, %v3380_v46  ;;  %v6878_v56 = vpack.c.bf16 %v3385_v1, %v3385_v1  ;;  %v3671_v13 = vld [vmem:[#allocation3 + $0x64] sm:$0x1]  ;;  %v3698_v52 = vld [vmem:[#allocation3 + $0x88] sm:$0xf] }
 0x2bb   :  { %v3758_v14 = vshrl.u32 %v8920_v21, 16  ;;  %v3675_v55 = vsel %vm8869_vm5, %v3537_v6, %v3674_v3  ;;  %v3678_v31 = vsel %vm8511_vm1, %v3538_v15, %v3677_v42  ;;  %v3663_v11 = vsel %vm8869_vm5, %v3521_v16, %v3662_v33  ;;  %v3701_v48 = vld [vmem:[#allocation3 + $0x8c] sm:$0x1]  ;;  %v3686_v15 = vld [vmem:[#allocation3 + $0x78] sm:$0xf] }
 0x2bc   :  { %v3666_v47 = vsel %vm8511_vm1, %v3522_v60, %v3665_v12  ;;  %3676 = vst [vmem:[#allocation3 + $0x68] sm:$0xf] %v3675_v55  ;;  %3679 = vst [vmem:[#allocation3 + $0x6c] sm:$0x1] %v3678_v31  ;;  %v3542_v28 = vrot.slane %v3540_v20, 7  ;;  %v3543_v17 = vshll.u32 %v6875_v44, 16 }
 0x2bd   :  { %3664 = vst [vmem:[#allocation3 + $0x58] sm:$0xf] %v3663_v11  ;;  %3667 = vst [vmem:[#allocation3 + $0x5c] sm:$0x1] %v3666_v47  ;;  %v3524_v23 = vshrl.u32 %v6873_v2, 16  ;;  %v3564_v18 = vshrl.u32 %v6878_v56, 16 }
 0x2be   :  { %v3527_v38 = vshll.u32 %v6873_v2, 16  ;;  %v3383_v61 = vmax.f32 %v3367_v19, 0.0  ;;  %v3386_v35 = vmax.f32 %v3370_v36, 0.0  ;;  %v3384_v22 = vmax.f32 %v3368_v9, 0.0  ;;  %v8938_v44 = vld [vmem:[#allocation3 + $0xc] sm:$0x1] }
 0x2bf   :  { %v3545_v49 = vor.u32 %v3543_v17, %v3542_v28  ;;  %v3546_v41 = vrot.slane %v3542_v28, 4  ;;  %v3526_v34 = vrot.slane %v3524_v23, 7  ;;  %v3566_v45 = vrot.slane %v3564_v18, 7  ;;  %v3689_v16 = vld [vmem:[#allocation3 + $0x7c] sm:$0x1] }
 0x2c0   :  { %v3567_v7 = vshll.u32 %v6878_v56, 16  ;;  %v6876_v53 = vpack.c.bf16 %v3383_v61, %v3383_v61  ;;  %v6879_v10 = vpack.c.bf16 %v3386_v35, %v3386_v35  ;;  %v6877_v3 = vpack.c.bf16 %v3384_v22, %v3384_v22  ;;  %v3707_v55 = vld [vmem:[#allocation3 + $0x94] sm:$0x1]  ;;  %v8950_v61 = vld [vmem:[#allocation3 + $0x10] sm:$0xf] }
 0x2c1   :  { %v3681_v42 = vsel %vm8869_vm5, %v3545_v49, %v3680_v37  ;;  %v3684_v33 = vsel %vm8511_vm1, %v3546_v41, %v3683_v43  ;;  %v3529_v63 = vor.u32 %v3527_v38, %v3526_v34  ;;  %v3530_v39 = vrot.slane %v3526_v34, 4  ;;  %v3692_v37 = vld [vmem:[#allocation3 + $0x80] sm:$0xf]  ;;  %v3695_v43 = vld [vmem:[#allocation3 + $0x84] sm:$0x1] }
 0x2c2   :  { %3682 = vst [vmem:[#allocation3 + $0x70] sm:$0xf] %v3681_v42  ;;  %3685 = vst [vmem:[#allocation3 + $0x74] sm:$0x1] %v3684_v33  ;;  %v3569_v46 = vor.u32 %v3567_v7, %v3566_v45  ;;  %v3570_v12 = vrot.slane %v3566_v45, 4  ;;  %v3548_v1 = vshrl.u32 %v6876_v53, 16 }
 0x2c3   :  { %v3760_v19 = vrot.slane %v3758_v14, 4  ;;  %v3669_v36 = vsel %vm8869_vm5, %v3529_v63, %v3668_v8  ;;  %v3672_v9 = vsel %vm8511_vm1, %v3530_v39, %v3671_v13  ;;  %v3551_v6 = vshll.u32 %v6876_v53, 16  ;;  %v3704_v14 = vld [vmem:[#allocation3 + $0x90] sm:$0xf]  ;;  %v8952_v34 = vld [vmem:[#allocation3 + $0x14] sm:$0x1] }
 0x2c4   :  { %v3572_v60 = vshrl.u32 %v6879_v10, 16  ;;  %3670 = vst [vmem:[#allocation3 + $0x60] sm:$0xf] %v3669_v36  ;;  %3673 = vst [vmem:[#allocation3 + $0x64] sm:$0x1] %v3672_v9  ;;  %v3699_v20 = vsel %vm8869_vm5, %v3569_v46, %v3698_v52  ;;  %v3702_v2 = vsel %vm8511_vm1, %v3570_v12, %v3701_v48  ;;  %v3550_v56 = vrot.slane %v3548_v1, 7 }
 0x2c5   :  { %v3556_v31 = vshrl.u32 %v6877_v3, 16  ;;  %3700 = vst [vmem:[#allocation3 + $0x88] sm:$0xf] %v3699_v20  ;;  %3703 = vst [vmem:[#allocation3 + $0x8c] sm:$0x1] %v3702_v2  ;;  %v3575_v47 = vshll.u32 %v6879_v10, 16 }
 0x2c6   :  { %v3574_v11 = vrot.slane %v3572_v60, 7  ;;  %v3761_v28 = vshll.u32 %v8920_v21, 16  ;;  %v3767_v17 = vshll.u32 %v8938_v44, 16  ;;  %v3553_v23 = vor.u32 %v3551_v6, %v3550_v56  ;;  %v8958_v48 = vld [vmem:[#allocation3 + $0x18] sm:$0xf] }
 0x2c7   :  { %v3554_v18 = vrot.slane %v3550_v56, 4  ;;  %v3558_v38 = vrot.slane %v3556_v31, 7  ;;  %v3559_v8 = vshll.u32 %v6877_v3, 16  ;;  %v8964_v42 = vld [vmem:[#allocation3 + $0x1c] sm:$0x1]  ;;  %v3772_v33 = vshrl.u32 %v8950_v61, 16 }
 0x2c8   :  { %v3577_v35 = vor.u32 %v3575_v47, %v3574_v11  ;;  %v3578_v22 = vrot.slane %v3574_v11, 4  ;;  %v3763_v49 = vrot.slane %v3761_v28, 5  ;;  %v3769_v41 = vrot.slane %v3767_v17, 5  ;;  %v8975_v6 = vld [vmem:[#allocation3 + $0x20] sm:$0xf] }
 0x2c9   :  { %v3687_v13 = vsel %vm8869_vm5, %v3553_v23, %v3686_v15  ;;  %v3690_v45 = vsel %vm8511_vm1, %v3554_v18, %v3689_v16  ;;  %v3561_v7 = vor.u32 %v3559_v8, %v3558_v38  ;;  %v3562_v52 = vrot.slane %v3558_v38, 4  ;;  %v8978_v16 = vld [vmem:[#allocation3 + $0x28] sm:$0xf]  ;;  %v8980_v60 = vld [vmem:[#allocation3 + $0x24] sm:$0x1] }
 0x2ca   :  { %3688 = vst [vmem:[#allocation3 + $0x78] sm:$0xf] %v3687_v13  ;;  %3691 = vst [vmem:[#allocation3 + $0x7c] sm:$0x1] %v3690_v45  ;;  %v3705_v53 = vsel %vm8869_vm5, %v3577_v35, %v3704_v14  ;;  %v3708_v10 = vsel %vm8511_vm1, %v3578_v22, %v3707_v55  ;;  %v3764_v3 = vor.u32 %v3763_v49, %v3760_v19  ;;  %v3775_v46 = vshll.u32 %v8950_v61, 16 }
 0x2cb   :  { %3706 = vst [vmem:[#allocation3 + $0x90] sm:$0xf] %v3705_v53  ;;  %3709 = vst [vmem:[#allocation3 + $0x94] sm:$0x1] %v3708_v10  ;;  %v3693_v63 = vsel %vm8869_vm5, %v3561_v7, %v3692_v37  ;;  %v3696_v39 = vsel %vm8511_vm1, %v3562_v52, %v3695_v43  ;;  %v3781_v12 = vshll.u32 %v8952_v34, 16  ;;  %v3774_v19 = vrot.slane %v3772_v33, 4 }
 0x2cc   :  { %3694 = vst [vmem:[#allocation3 + $0x80] sm:$0xf] %v3693_v63  ;;  %3697 = vst [vmem:[#allocation3 + $0x84] sm:$0x1] %v3696_v39  ;;  %v3765_v1 = vrot.slane %v3764_v3, 4  ;;  %v3786_v36 = vshrl.u32 %v8958_v48, 16 }
 0x2cd   :  { %v3789_v9 = vshll.u32 %v8958_v48, 16  ;;  %v3777_v15 = vrot.slane %v3775_v46, 5  ;;  %v3795_v32 = vshll.u32 %v8964_v42, 16  ;;  %v3783_v2 = vrot.slane %v3781_v12, 5  ;;  %v8984_v55 = vld [vmem:[#allocation3 + $0x2c] sm:$0x1] }
 0x2ce   :  { %v3770_v20 = vsel %vm7986_vm9, %v3765_v1, %v3769_v41  ;;  %v3788_v56 = vrot.slane %v3786_v36, 4  ;;  %v3800_v37 = vshrl.u32 %v8975_v6, 16  ;;  %v3803_v28 = vshll.u32 %v8975_v6, 16  ;;  %v8995_v18 = vld [vmem:[#allocation3 + $0x30] sm:$0xf] }
 0x2cf   :  { %v3791_v14 = vrot.slane %v3789_v9, 5  ;;  %v6664_v31 = vcombine.low %v3756_v40, %v3770_v20  ;;  %v3778_v11 = vor.u32 %v3777_v15, %v3774_v19  ;;  %v3797_v47 = vrot.slane %v3795_v32, 5  ;;  %v9000_v40 = vld [vmem:[#allocation3 + $0x34] sm:$0x1]  ;;  %v9002_v13 = vld [vmem:[#allocation3 + $0x38] sm:$0xf] }
 0x2d0   :  { %v3809_v17 = vshll.u32 %v8980_v60, 16  ;;  %v3814_v23 = vshrl.u32 %v8978_v16, 16  ;;  %v3802_v8 = vrot.slane %v3800_v37, 4  ;;  %v3817_v59 = vshll.u32 %v8978_v16, 16  ;;  %v9009_v33 = vld [vmem:[#allocation3 + $0x3c] sm:$0x1] }
 0x2d1   :  { %v3792_v43 = vor.u32 %v3791_v14, %v3788_v56  ;;  %7206 = vmatprep.mubr.msk.bf16.mxu1 %vm3993_vm3, %v6664_v31  ;;  %v3779_v38 = vrot.slane %v3778_v11, 4  ;;  %v3823_v5 = vshll.u32 %v8984_v55, 16  ;;  %v3805_v22 = vrot.slane %v3803_v28, 5  ;;  %v9013_v46 = vld [vmem:[#allocation3 + $0x58] sm:$0xf] }
 0x2d2   :  { %v3811_v49 = vrot.slane %v3809_v17, 5  ;;  %v3816_v41 = vrot.slane %v3814_v23, 4  ;;  %v3819_v7 = vrot.slane %v3817_v59, 5  ;;  %v3828_v53 = vshrl.u32 %v8995_v18, 16  ;;  %v9018_v12 = vld [vmem:[%s9630_s3 + $0x8] sm:$0xf] }
 0x2d3   :  { %v3793_v35 = vrot.slane %v3792_v43, 4  ;;  %v3784_v45 = vsel %vm7986_vm9, %v3779_v38, %v3783_v2  ;;  %v3825_v52 = vrot.slane %v3823_v5, 5  ;;  %v3806_v3 = vor.u32 %v3805_v22, %v3802_v8  ;;  %v9021_v15 = vld [vmem:[#allocation3 + $0x5c] sm:$0x1]  ;;  %v9024_v14 = vld [vmem:[#allocation3 + $0x60] sm:$0xf] }
 0x2d4   :  { %v3831_v63 = vshll.u32 %v8995_v18, 16  ;;  %v3837_v39 = vshll.u32 %v9000_v40, 16  ;;  %v3820_v19 = vor.u32 %v3819_v7, %v3816_v41  ;;  %v3830_v36 = vrot.slane %v3828_v53, 4  ;;  %v9029_v43 = vld [vmem:[#allocation3 + $0x64] sm:$0x1] }
 0x2d5   :  { %v3798_v10 = vsel %vm7986_vm9, %v3793_v35, %v3797_v47  ;;  %v3842_v9 = vshrl.u32 %v9002_v13, 16  ;;  %v3807_v32 = vrot.slane %v3806_v3, 4  ;;  %v3845_v56 = vshll.u32 %v9002_v13, 16  ;;  %v9042_v22 = vld [vmem:[#allocation3 + $0x68] sm:$0xf] }
 0x2d6   :  { %v6665_v1 = vcombine.low %v3784_v45, %v3798_v10  ;;  %v3833_v20 = vrot.slane %v3831_v63, 5  ;;  %v3839_v2 = vrot.slane %v3837_v39, 5  ;;  %v3821_v31 = vrot.slane %v3820_v19, 4  ;;  %v9051_v10 = vld [vmem:[#allocation3 + $0x70] sm:$0xf] }
 0x2d7   :  { %v3844_v11 = vrot.slane %v3842_v9, 4  ;;  %v3851_v47 = vshll.u32 %v9009_v33, 16  ;;  %v3870_v37 = vshrl.u32 %v9013_v46, 16  ;;  %v3847_v17 = vrot.slane %v3845_v56, 5 }
 0x2d8   :  { %7207 = vmatmul.mubr.msk.bf16.vlgmr.msra.gmra.mrb[0].mxu1 %vm3993_vm3, %v6665_v1  ;;  %v3834_v28 = vor.u32 %v3833_v20, %v3830_v36  ;;  %v3868_v23 = vsel %vm7986_vm9, %v8862_v30, %v8864_v25  ;;  %v3873_v38 = vshll.u32 %v9013_v46, 16  ;;  %v3812_v8 = vsel %vm7986_vm9, %v3807_v32, %v3811_v49 }
 0x2d9   :  { %7223 = vmatpush3.bf16.msra.mxu1 %v8855_v57  ;;  %v3826_v59 = vsel %vm7986_vm9, %v3821_v31, %v3825_v52  ;;  %v3872_v5 = vrot.slane %v3870_v37, 4  ;;  %v3879_v35 = vshll.u32 %v9021_v15, 16  ;;  %v9044_v57 = vld [vmem:[#allocation3 + $0x6c] sm:$0x1]  ;;  %v3848_v25 = vor.u32 %v3847_v17, %v3844_v11  ;;  %v9063_v17 = vld [vmem:[#allocation3 + $0x78] sm:$0xf] }
 0x2da   :  { %7633 = vmatprep.subr.msk.bf16.mxu1 %vm4018_vm4, %v9018_v12  ;;  %v6666_v41 = vcombine.low %v3812_v8, %v3826_v59  ;;  %v3835_v30 = vrot.slane %v3834_v28, 4  ;;  %v3875_v45 = vrot.slane %v3873_v38, 5  ;;  %v3853_v7 = vrot.slane %v3851_v47, 5  ;;  %v9061_v47 = vld [vmem:[#allocation3 + $0x74] sm:$0x1] }
 0x2db   :  { %v3884_v49 = vshrl.u32 %v9024_v14, 16  ;;  %v3887_v53 = vshll.u32 %v9024_v14, 16  ;;  %v3893_v52 = vshll.u32 %v9029_v43, 16  ;;  %v3849_v63 = vrot.slane %v3848_v25, 4  ;;  %v9065_v38 = vld [vmem:[#allocation3 + $0x7c] sm:$0x1] }
 0x2dc   :  { %7210 = vmatprep.mubr.msk.bf16.mxu1 %vm3993_vm3, %v6666_v41  ;;  %v3840_v3 = vsel %vm7986_vm9, %v3835_v30, %v3839_v2  ;;  %v3876_v39 = vor.u32 %v3875_v45, %v3872_v5  ;;  %v3898_v1 = vshrl.u32 %v9042_v22, 16  ;;  %v3881_v19 = vrot.slane %v3879_v35, 5  ;;  %v9071_v30 = vld [vmem:[#allocation3 + $0x80] sm:$0xf] }
 0x2dd   :  { %v3886_v36 = vrot.slane %v3884_v49, 4  ;;  %v3889_v9 = vrot.slane %v3887_v53, 5  ;;  %v3901_v32 = vshll.u32 %v9042_v22, 16  ;;  %v3854_v20 = vsel %vm7986_vm9, %v3849_v63, %v3853_v7  ;;  %v4291_v53 = vld [vmem:[#allocation3 + $0x50] sm:$0xe] }
 0x2de   :  { %v3877_v56 = vrot.slane %v3876_v39, 4  ;;  %v3900_v31 = vrot.slane %v3898_v1, 4  ;;  %v3907_v11 = vshll.u32 %v9044_v57, 16  ;;  %v6667_v37 = vcombine.low %v3840_v3, %v3854_v20 }
 0x2df   :  { %v3890_v2 = vor.u32 %v3889_v9, %v3886_v36  ;;  %v3903_v28 = vrot.slane %v3901_v32, 5  ;;  %v3912_v8 = vshrl.u32 %v9051_v10, 16  ;;  %v3895_v5 = vrot.slane %v3893_v52, 5  ;;  %v9077_v52 = vld [vmem:[#allocation3 + $0x84] sm:$0x1] }
 0x2e0   :  { %v3882_v59 = vsel %vm7986_vm9, %v3877_v56, %v3881_v19  ;;  %v3909_v35 = vrot.slane %v3907_v11, 5  ;;  %v3915_v41 = vshll.u32 %v9051_v10, 16  ;;  %7211 = vmatmul.mubr.msk.bf16.gmra.mrb[4].mxu1 %vm3993_vm3, %v6667_v37  ;;  %v3921_v63 = vshll.u32 %v9061_v47, 16 }
 0x2e1   :  { %v6668_v25 = vcombine.low %v3868_v23, %v3882_v59  ;;  %v3891_v45 = vrot.slane %v3890_v2, 4  ;;  %v3904_v7 = vor.u32 %v3903_v28, %v3900_v31  ;;  %v3914_v49 = vrot.slane %v3912_v8, 4  ;;  %v9084_v31 = vld [vmem:[#allocation3 + $0x88] sm:$0xf]  ;;  %v9089_v2 = vld [vmem:[#allocation3 + $0x8c] sm:$0x1] }
 0x2e2   :  { %v3917_v3 = vrot.slane %v3915_v41, 5  ;;  %v3926_v39 = vshrl.u32 %v9063_v17, 16  ;;  %v3929_v1 = vshll.u32 %v9063_v17, 16  ;;  %v3935_v23 = vshll.u32 %v9065_v38, 16 }
 0x2e3   :  { %7214 = vmatprep.mubr.msk.bf16.mxu1 %vm3993_vm3, %v6668_v25  ;;  %v3896_v19 = vsel %vm7986_vm9, %v3891_v45, %v3895_v5  ;;  %v3905_v36 = vrot.slane %v3904_v7, 4  ;;  %v3940_v9 = vshrl.u32 %v9071_v30, 16  ;;  %v3943_v11 = vshll.u32 %v9071_v30, 16 }
 0x2e4   :  { %v3918_v32 = vor.u32 %v3917_v3, %v3914_v49  ;;  %v3928_v20 = vrot.slane %v3926_v39, 4  ;;  %v3931_v56 = vrot.slane %v3929_v1, 5  ;;  %v3949_v8 = vshll.u32 %v9077_v52, 16 }
 0x2e5   :  { %v3910_v37 = vsel %vm7986_vm9, %v3905_v36, %v3909_v35  ;;  %v3942_v28 = vrot.slane %v3940_v9, 4  ;;  %v6704_v59 = vrot.slane %v4291_v53, 9  ;;  %v3945_v45 = vrot.slane %v3943_v11, 5  ;;  %v4284_v36 = vld [vmem:[#allocation3 + $0x8] sm:$0xe] }
 0x2e6   :  { %v6669_v5 = vcombine.low %v3896_v19, %v3910_v37  ;;  %v3919_v41 = vrot.slane %v3918_v32, 4  ;;  %v3932_v25 = vor.u32 %v3931_v56, %v3928_v20  ;;  %v3923_v7 = vrot.slane %v3921_v63, 5  ;;  %v4285_v20 = vld [vmem:[#allocation3 + $0x10] sm:$0xe]  ;;  %v4287_v56 = vld [vmem:[#allocation3 + $0x20] sm:$0xe] }
 0x2e7   :  { %v3954_v49 = vshrl.u32 %v9084_v31, 16  ;;  %v3957_v3 = vshll.u32 %v9084_v31, 16  ;;  %v9100_v35 = vsel %vm8236_vm14, %v6696_v54, %v4333_v51  ;;  %v3937_v1 = vrot.slane %v3935_v23, 5 }
 0x2e8   :  { %v3933_v39 = vrot.slane %v3932_v25, 4  ;;  %v3946_v53 = vor.u32 %v3945_v45, %v3942_v28  ;;  %v3963_v19 = vshll.u32 %v9089_v2, 16  ;;  %v4337_v63 = vrot.slane %v8938_v44, 5  ;;  %7215 = vmatmul.mubr.msk.bf16.gmra.mrb[8].mxu1 %vm3993_vm3, %v6669_v5  ;;  %v4286_v44 = vld [vmem:[#allocation3 + $0x18] sm:$0xe] }
 0x2e9   :  { %v3956_v9 = vrot.slane %v3954_v49, 4  ;;  %v3959_v32 = vrot.slane %v3957_v3, 5  ;;  %v9109_v29 = vsel %vm8236_vm14, %v6704_v59, %v4365_v58  ;;  %v3924_v51 = vsel %vm7986_vm9, %v3919_v41, %v3923_v7  ;;  %v4288_v5 = vld [vmem:[#allocation3 + $0x28] sm:$0xe] }
 0x2ea   :  { %v3938_v4 = vsel %vm7986_vm9, %v3933_v39, %v3937_v1  ;;  %v3947_v54 = vrot.slane %v3946_v53, 4  ;;  %v3951_v23 = vrot.slane %v3949_v8, 5  ;;  %v4341_v11 = vrot.slane %v8952_v34, 5  ;;  %v4290_v34 = vld [vmem:[#allocation3 + $0x38] sm:$0xe] }
 0x2eb   :  { %v4345_v37 = vrot.slane %v8964_v42, 5  ;;  %v6670_v28 = vcombine.low %v3924_v51, %v3938_v4  ;;  %v3960_v24 = vor.u32 %v3959_v32, %v3956_v9  ;;  %v3965_v59 = vrot.slane %v3963_v19, 5  ;;  %v4289_v53 = vld [vmem:[#allocation3 + $0x30] sm:$0xe]  ;;  %v4294_v51 = vld [vmem:[#allocation3 + $0x68] sm:$0xe] }
 0x2ec   :  { %v3952_v58 = vsel %vm7986_vm9, %v3947_v54, %v3951_v23  ;;  %v6680_v41 = vcombine.low %v8831_v62, %v8920_v21  ;;  %v6697_v25 = vrot.slane %v4284_v36, 9  ;;  %v6698_v45 = vrot.slane %v4285_v20, 9 }
 0x2ed   :  { %7218 = vmatprep.mubr.msk.bf16.mxu1 %vm3993_vm3, %v6670_v28  ;;  %v3961_v8 = vrot.slane %v3960_v24, 4  ;;  %v6699_v7 = vrot.slane %v4286_v44, 9  ;;  %v6700_v49 = vrot.slane %v4287_v56, 9  ;;  %v4349_v3 = vrot.slane %v8980_v60, 5  ;;  %v4293_v60 = vld [vmem:[#allocation3 + $0x60] sm:$0xe] }
 0x2ee   :  { %v9124_v42 = vsel %vm8236_vm14, %v6697_v25, %v4337_v63  ;;  %v6701_v39 = vrot.slane %v4288_v5, 9  ;;  %v4353_v1 = vrot.slane %v8984_v55, 5  ;;  %v9134_v19 = vsel %vm8236_vm14, %v6698_v45, %v4341_v11  ;;  %v4292_v63 = vld [vmem:[#allocation3 + $0x58] sm:$0xe]  ;;  %v4295_v56 = vld [vmem:[#allocation3 + $0x70] sm:$0xe] }
 0x2ef   :  { %v3966_v62 = vsel %vm7986_vm9, %v3961_v8, %v3965_v59  ;;  %v6713_v21 = vcombine.low %v9100_v35, %v9124_v42  ;;  %v9138_v36 = vsel %vm8236_vm14, %v6699_v7, %v4345_v37  ;;  %v9144_v32 = vsel %vm8236_vm14, %v6700_v49, %v4349_v3  ;;  %v4296_v25 = vld [vmem:[#allocation3 + $0x78] sm:$0xe]  ;;  %v4297_v7 = vld [vmem:[#allocation3 + $0x80] sm:$0xe] }
 0x2f0   :  { %v6671_v9 = vcombine.low %v3952_v58, %v3966_v62  ;;  %v6714_v55 = vcombine.low %v9134_v19, %v9138_v36  ;;  %v9148_v20 = vsel %vm8236_vm14, %v6701_v39, %v4353_v1  ;;  %v6702_v54 = vrot.slane %v4289_v53, 9  ;;  %v7678_v35 = vld [vmem:[#allocation3 + $0x18] ss:$8 sps:$4 sm:$0xff]   ;;  %v7679_v19 = vld [vmem:[#allocation3 + $0x28] ss:$8 sps:$4 sm:$0xff]  }
 0x2f1   :  { %v6715_v4 = vcombine.low %v9144_v32, %v9148_v20  ;;  %v4357_v23 = vrot.slane %v9000_v40, 5  ;;  %v6703_v44 = vrot.slane %v4290_v34, 9  ;;  %v4361_v11 = vrot.slane %v9009_v33, 5  ;;  %v4761_v36 = vld [vmem:[#allocation3 + $0x10] sm:$0xf] }
 0x2f2   :  { %7219 = vmatmul.mubr.msk.bf16.gmra.mrb[12].mxu1 %vm3993_vm3, %v6671_v9  ;;  %v6705_v37 = vrot.slane %v4292_v63, 9  ;;  %v4369_v28 = vrot.slane %v9021_v15, 5  ;;  %v6706_v24 = vrot.slane %v4293_v60, 9  ;;  %v4373_v58 = vrot.slane %v9029_v43, 5 }
 0x2f3   :  { %7224 = vmatprep.mubr.msk.bf16.mxu1 %vm3993_vm3, %v6680_v41  ;;  %v4358_v5 = vsel %vm8236_vm14, %v6702_v54, %v4357_v23  ;;  %v6707_v59 = vrot.slane %v4294_v51, 9  ;;  %v4377_v40 = vrot.slane %v9044_v57, 5  ;;  %v4362_v8 = vsel %vm8236_vm14, %v6703_v44, %v4361_v11  ;;  %v4298_v41 = vld [vmem:[#allocation3 + $0x88] sm:$0xe]  ;;  %v4763_v11 = vld [vmem:[#allocation3 + $0x18] sm:$0xf] }
 0x2f4   :  { %v4370_v33 = vsel %vm8236_vm14, %v6705_v37, %v4369_v28  ;;  %v6708_v45 = vrot.slane %v4295_v56, 9  ;;  %v4381_v15 = vrot.slane %v9061_v47, 5  ;;  %v6716_v49 = vcombine.low %v4358_v5, %v4362_v8  ;;  %v4765_v37 = vld [vmem:[#allocation3 + $0x20] sm:$0xf] }
 0x2f5   :  { %v6717_v34 = vcombine.low %v9109_v29, %v4370_v33  ;;  %v4374_v43 = vsel %vm8236_vm14, %v6706_v24, %v4373_v58  ;;  %v4378_v57 = vsel %vm8236_vm14, %v6707_v59, %v4377_v40  ;;  %v6709_v39 = vrot.slane %v4296_v25, 9  ;;  %v7680_v40 = vld [vmem:[#allocation3 + $0x38] ss:$8 sps:$4 sm:$0xff]  }
 0x2f6   :  { %v6718_v3 = vcombine.low %v4374_v43, %v4378_v57  ;;  %v4385_v1 = vrot.slane %v9065_v38, 5  ;;  %v6710_v53 = vrot.slane %v4297_v7, 9  ;;  %v4389_v62 = vrot.slane %v9077_v52, 5  ;;  %v6729_v52 = vld [vmem:[%s9630_s3 + $0xc] sm:$0xf] }
 0x2f7   :  { %v6711_v63 = vrot.slane %v4298_v41, 9  ;;  %v4393_v47 = vrot.slane %v9089_v2, 5  ;;  %v6681_v60 = vcombine.low %v8950_v61, %v8958_v48  ;;  %v4446_v29 = vsel %vm4018_vm4, %v9018_v12, 0  ;;  %v9248_v7 = vld [vmem:[#allocation3 + $0xc] sm:$0x1] }
 0x2f8   :  { %v4382_v9 = vsel %vm8236_vm14, %v6708_v45, %v4381_v15  ;;  %v4386_v51 = vsel %vm8236_vm14, %v6709_v39, %v4385_v1  ;;  %v6682_v38 = vcombine.low %v8975_v6, %v8978_v16  ;;  %v4390_v61 = vsel %vm8236_vm14, %v6710_v53, %v4389_v62  ;;  %v7693_v16 = vld [vmem:[#allocation3 + $0x50] sm:$0xf]  ;;  %v7681_v45 = vld [vmem:[#allocation3 + $0x58] ss:$8 sps:$4 sm:$0xff]   ;;  %v4767_v15 = vld [vmem:[#allocation3 + $0x28] sm:$0xf] }
 0x2f9   :  { %v6719_v2 = vcombine.low %v4382_v9, %v4386_v51  ;;  %v4394_v48 = vsel %vm8236_vm14, %v6711_v63, %v4393_v47  ;;  %v6683_v6 = vcombine.low %v8995_v18, %v9002_v13  ;;  %v6684_v54 = vcombine.low %v7693_v16, %v9013_v46  ;;  %v6746_v46 = vld [vmem:[%s9630_s3 + $0x10] sm:$0xf]  ;;  %v9250_v41 = vld [vmem:[#allocation3 + $0x14] sm:$0x1]  ;;  %v9255_v53 = vld [vmem:[#allocation3 + $0x24] sm:$0x1] }
 0x2fa   :  { %7225 = vmatmul.mubr.msk.bf16.vlgmr.msra.gmra.mrb[0].mxu1 %vm3993_vm3, %v6681_v60  ;;  %v6720_v12 = vcombine.low %v4390_v61, %v4394_v48  ;;  %v6685_v23 = vcombine.low %v9024_v14, %v9042_v22  ;;  %v6686_v44 = vcombine.low %v9051_v10, %v9063_v17  ;;  %v6687_v18 = vcombine.low %v9071_v30, %v9084_v31  ;;  %v212_v14 = vld [vmem:[#allocation3 + $0x48] sm:$0x1]  ;;  %v242_v22 = vld [vmem:[#allocation3 + $0x98] sm:$0x1]  ;;  %v4769_v39 = vld [vmem:[#allocation3 + $0x30] sm:$0xf] }
 0x2fb   :  { %7241 = vmatpush3.bf16.msra.mxu1 %v4446_v29  ;;  %7228 = vmatprep.mubr.msk.bf16.mxu1 %vm3993_vm3, %v6682_v38  ;;  %v4644_v13 = vsel %vm4018_vm4, %v6729_v52, 0  ;;  %v213_v10 = vsel %vm8511_vm1, 0, %v212_v14  ;;  %v243_v17 = vsel %vm8511_vm1, 0, %v242_v22  ;;  %v7677_v30 = vld [vmem:[#allocation3 + $0x8] ss:$8 sps:$4 sm:$0xff]   ;;  %v5066_v42 = vsel %vm4018_vm4, %v6746_v46, 0 }
 0x2fc   :  { %7634 = vmatprep.subr.msk.bf16.mxu1 %vm4018_vm4, %v6729_v52  ;;  %214 = vst [vmem:[#allocation3 + $0x48] sm:$0x1] %v213_v10  ;;  %244 = vst [vmem:[#allocation3 + $0x98] sm:$0x1] %v243_v17  ;;  %v4759_v31 = vld [vmem:[#allocation3 + $0x8] sm:$0xf] }
 0x2fd   :  { %v4792_v26 = vshrl.u32 %v4759_v31, 16  ;;  %v4795_v32 = vshll.u32 %v4759_v31, 16  ;;  %v4809_v56 = vshll.u32 %v4761_v36, 16  ;;  %v4820_v5 = vshrl.u32 %v4763_v11, 16  ;;  %v7682_v29 = vld [vmem:[#allocation3 + $0x68] ss:$8 sps:$4 sm:$0xff]  }
 0x2fe   :  { %v4834_v58 = vshrl.u32 %v4765_v37, 16  ;;  %v4837_v59 = vshll.u32 %v4765_v37, 16  ;;  %v4823_v33 = vshll.u32 %v4763_v11, 16  ;;  %v4848_v63 = vshrl.u32 %v4767_v15, 16  ;;  %v7683_v52 = vld [vmem:[#allocation3 + $0x78] ss:$8 sps:$4 sm:$0xff]  }
 0x2ff   :  { %v4794_v28 = vrot.slane %v4792_v26, 4  ;;  %v4797_v24 = vrot.slane %v4795_v32, 5  ;;  %v4811_v8 = vrot.slane %v4809_v56, 5  ;;  %v4822_v43 = vrot.slane %v4820_v5, 4  ;;  %v4777_v17 = vld [vmem:[#allocation3 + $0x60] sm:$0xf] }
 0x300   :  { %v4836_v57 = vrot.slane %v4834_v58, 4  ;;  %v4825_v62 = vrot.slane %v4823_v33, 5  ;;  %v4851_v47 = vshll.u32 %v4767_v15, 16  ;;  %v4801_v60 = vshll.u32 %v9248_v7, 16  ;;  %v9270_v32 = vld [vmem:[#allocation3 + $0x34] sm:$0x1] }
 0x301   :  { %v4815_v9 = vshll.u32 %v9250_v41, 16  ;;  %v4862_v51 = vshrl.u32 %v4769_v39, 16  ;;  %v4865_v38 = vshll.u32 %v4769_v39, 16  ;;  %v4918_v58 = vshrl.u32 %v4777_v17, 16  ;;  %v7684_v15 = vld [vmem:[#allocation3 + $0x88] ss:$8 sps:$4 sm:$0xff]  }
 0x302   :  { %7229 = vmatmul.mubr.msk.bf16.gmra.mrb[4].mxu1 %vm3993_vm3, %v6683_v6  ;;  %v4826_v16 = vor.u32 %v4825_v62, %v4822_v43 }
 0x303   :  { %7232 = vmatprep.mubr.msk.bf16.mxu1 %vm3993_vm3, %v6684_v54  ;;  %v9261_v54 = vld [vmem:[#allocation3 + $0x2c] sm:$0x1]  ;;  %v4817_v14 = vrot.slane %v4815_v9, 5  ;;  %v4864_v22 = vrot.slane %v4862_v51, 4  ;;  %v4867_v10 = vrot.slane %v4865_v38, 5 }
 0x304   :  { %v4781_v51 = vld [vmem:[#allocation3 + $0x70] sm:$0xf] }
 0x305   :  { %v4868_v5 = vor.u32 %v4867_v10, %v4864_v22  ;;  %v4949_v22 = vshll.u32 %v4781_v51, 16  ;;  %v4783_v10 = vld [vmem:[#allocation3 + $0x78] sm:$0xf] }
 0x30a   :  { %7233 = vmatmul.mubr.msk.bf16.gmra.mrb[8].mxu1 %vm3993_vm3, %v6685_v23  ;;  %v4850_v23 = vrot.slane %v4848_v63, 4 }
 0x30b   :  { %7236 = vmatprep.mubr.msk.bf16.mxu1 %vm3993_vm3, %v6686_v44  ;;  %v4853_v44 = vrot.slane %v4851_v47, 5  ;;  %v4869_v47 = vrot.slane %v4868_v5, 4  ;;  %v4951_v5 = vrot.slane %v4949_v22, 5 }
 0x312   :  { %7237 = vmatmul.mubr.msk.bf16.gmra.mrb[12].mxu1 %vm3993_vm3, %v6687_v18  ;;  %v4803_v18 = vrot.slane %v4801_v60, 5  ;;  %v9283_v60 = vld [vmem:[#allocation3 + $0x44] sm:$0x1] }
 0x313   :  { %7242 = vmatprep.mubr.msk.bf16.mxu1 %vm3993_vm3, %v6713_v21  ;;  %v273_v21 = vld [vmem:[#allocation3 + $0x4c] sm:$0x1] }
 0x314   :  { %v274_v20 = vsel %vm8535_vm2, 0, %v273_v21  ;;  %v303_v21 = vld [vmem:[#allocation3 + $0x9c] sm:$0x1] }
 0x315   :  { %275 = vst [vmem:[#allocation3 + $0x4c] sm:$0x1] %v274_v20  ;;  %v4854_v20 = vor.u32 %v4853_v44, %v4850_v23  ;;  %v4779_v44 = vld [vmem:[#allocation3 + $0x68] sm:$0xf] }
 0x31a   :  { %7243 = vmatmul.mubr.msk.bf16.vlgmr.msra.gmra.mrb[0].mxu1 %vm3993_vm3, %v6714_v55  ;;  %v9239_v55 = vld [vmem:[%s9630_s3 + $0x14] sm:$0xf] }
 0x31b   :  { %7259 = vmatpush3.bf16.msra.mxu1 %v4644_v13  ;;  %7246 = vmatprep.mubr.msk.bf16.mxu1 %vm3993_vm3, %v6715_v4  ;;  %v4806_v4 = vshrl.u32 %v4761_v36, 16  ;;  %v4771_v13 = vld [vmem:[#allocation3 + $0x38] sm:$0xf]  ;;  %v4827_v36 = vrot.slane %v4826_v16, 4 }
 0x31c   :  { %7635 = vmatprep.subr.msk.bf16.mxu1 %vm4018_vm4, %v6746_v46  ;;  %v4773_v46 = vld [vmem:[#allocation3 + $0x40] sm:$0xf]  ;;  %v4876_v56 = vshrl.u32 %v4771_v13, 16  ;;  %v4879_v11 = vshll.u32 %v4771_v13, 16 }
 0x31d   :  { %v4808_v25 = vrot.slane %v4806_v4, 4  ;;  %v9272_v4 = vld [vmem:[#allocation3 + $0x3c] sm:$0x1]  ;;  %v4890_v37 = vshrl.u32 %v4773_v46, 16 }
 0x31e   :  { %v4885_v43 = vshll.u32 %v9272_v4, 16  ;;  %v4878_v39 = vrot.slane %v4876_v56, 4  ;;  %v4963_v56 = vshll.u32 %v4783_v10, 16 }
 0x31f   :  { %v4812_v1 = vor.u32 %v4811_v8, %v4808_v25  ;;  %v4892_v62 = vrot.slane %v4890_v37, 4 }
 0x321   :  { %v4813_v6 = vrot.slane %v4812_v1, 4  ;;  %v4881_v1 = vrot.slane %v4879_v11, 5 }
 0x322   :  { %7247 = vmatmul.mubr.msk.bf16.gmra.mrb[4].mxu1 %vm3993_vm3, %v6716_v49  ;;  %v9252_v49 = vld [vmem:[#allocation3 + $0x1c] sm:$0x1] }
 0x323   :  { %7250 = vmatprep.mubr.msk.bf16.mxu1 %vm3993_vm3, %v6717_v34  ;;  %v4798_v34 = vor.u32 %v4797_v24, %v4794_v28  ;;  %v4829_v61 = vshll.u32 %v9252_v49, 16  ;;  %v4893_v28 = vshll.u32 %v4773_v46, 16  ;;  %v4775_v24 = vld [vmem:[#allocation3 + $0x58] sm:$0xf]  ;;  %v9292_v46 = vld [vmem:[#allocation3 + $0x64] sm:$0x1] }
 0x325   :  { %v4831_v31 = vrot.slane %v4829_v61, 5  ;;  %v4895_v63 = vrot.slane %v4893_v28, 5  ;;  %v9288_v61 = vld [vmem:[#allocation3 + $0x5c] sm:$0x1]  ;;  %v9299_v28 = vld [vmem:[#allocation3 + $0x6c] sm:$0x1] }
 0x327   :  { %v4832_v0 = vsel %vm7986_vm9, %v4827_v36, %v4831_v31  ;;  %v4896_v13 = vor.u32 %v4895_v63, %v4892_v62  ;;  %v4965_v62 = vrot.slane %v4963_v56, 5  ;;  %v4787_v63 = vld [vmem:[#allocation3 + $0x88] sm:$0xf]  ;;  %v9330_v56 = vld [vmem:[#allocation3 + $0x94] sm:$0x1] }
 0x329   :  { %v4897_v37 = vrot.slane %v4896_v13, 4 }
 0x32a   :  { %7251 = vmatmul.mubr.msk.bf16.gmra.mrb[8].mxu1 %vm3993_vm3, %v6718_v3  ;;  %v4839_v3 = vrot.slane %v4837_v59, 5  ;;  %v4921_v59 = vshll.u32 %v4777_v17, 16 }
 0x32b   :  { %7254 = vmatprep.mubr.msk.bf16.mxu1 %vm3993_vm3, %v6719_v2  ;;  %v4799_v2 = vrot.slane %v4798_v34, 4  ;;  %v4855_v34 = vrot.slane %v4854_v20, 4  ;;  %v4960_v20 = vshrl.u32 %v4783_v10, 16 }
 0x32c   :  { %v4840_v48 = vor.u32 %v4839_v3, %v4836_v57  ;;  %v4904_v57 = vshrl.u32 %v4775_v24, 16  ;;  %v4907_v3 = vshll.u32 %v4775_v24, 16  ;;  %v4923_v9 = vrot.slane %v4921_v59, 5 }
 0x32e   :  { %v4906_v16 = vrot.slane %v4904_v57, 4  ;;  %v4909_v23 = vrot.slane %v4907_v3, 5 }
 0x330   :  { %v4910_v36 = vor.u32 %v4909_v23, %v4906_v16  ;;  %v9322_v23 = vld [vmem:[#allocation3 + $0x7c] sm:$0x1] }
 0x332   :  { %7255 = vmatmul.mubr.msk.bf16.gmra.mrb[12].mxu1 %vm3993_vm3, %v6720_v12  ;;  %v4843_v12 = vshll.u32 %v9255_v53, 16  ;;  %v4911_v3 = vrot.slane %v4910_v36, 4 }
 0x333   :  { %7260 = vmatprep.mubr.msk.bf16.mxu1 %vm3993_vm3, %v7677_v30  ;;  %v4804_v30 = vsel %vm7986_vm9, %v4799_v2, %v4803_v18  ;;  %v4882_v18 = vor.u32 %v4881_v1, %v4878_v39  ;;  %v4962_v1 = vrot.slane %v4960_v20, 4 }
 0x334   :  { %v4845_v26 = vrot.slane %v4843_v12, 5 }
 0x335   :  { %v4883_v59 = vrot.slane %v4882_v18, 4  ;;  %v4991_v18 = vshll.u32 %v4787_v63, 16  ;;  %v4966_v22 = vor.u32 %v4965_v62, %v4962_v1  ;;  %v5181_v1 = vld [vmem:[#allocation3 + $0x8] sm:$0xe] }
 0x337   :  { %v4993_v36 = vrot.slane %v4991_v18, 5  ;;  %v5183_v18 = vld [vmem:[#allocation3 + $0x18] sm:$0xe] }
 0x33a   :  { %7261 = vmatmul.mubr.msk.bf16.vlgmr.msra.gmra.mrb[0].mxu1 %vm3993_vm3, %v7678_v35  ;;  %v4841_v35 = vrot.slane %v4840_v48, 4  ;;  %v4785_v48 = vld [vmem:[#allocation3 + $0x80] sm:$0xf] }
 0x33b   :  { %7277 = vmatpush3.bf16.msra.mxu1 %v5066_v42  ;;  %7264 = vmatprep.mubr.msk.bf16.mxu1 %vm3993_vm3, %v7679_v19  ;;  %v4857_v42 = vshll.u32 %v9261_v54, 16  ;;  %v4818_v19 = vsel %vm7986_vm9, %v4813_v6, %v4817_v14  ;;  %v4887_v6 = vrot.slane %v4885_v43, 5  ;;  %v4946_v14 = vshrl.u32 %v4781_v51, 16 }
 0x33c   :  { %7636 = vmatprep.subr.msk.bf16.mxu1 %vm4018_vm4, %v9239_v55  ;;  %v6747_v25 = vcombine.low %v4804_v30, %v4818_v19  ;;  %v4846_v8 = vsel %vm7986_vm9, %v4841_v35, %v4845_v26  ;;  %v4974_v30 = vshrl.u32 %v4785_v48, 16  ;;  %v4977_v31 = vshll.u32 %v4785_v48, 16 }
 0x33d   :  { %v4859_v33 = vrot.slane %v4857_v42, 5  ;;  %v6748_v38 = vcombine.low %v4832_v0, %v4846_v8  ;;  %v4899_v35 = vshll.u32 %v9283_v60, 16  ;;  %v4913_v42 = vshll.u32 %v9288_v61, 16 }
 0x33e   :  { %v4935_v19 = vshll.u32 %v4779_v44, 16  ;;  %v4927_v26 = vshll.u32 %v9292_v46, 16  ;;  %v4948_v24 = vrot.slane %v4946_v14, 4  ;;  %v4979_v8 = vrot.slane %v4977_v31, 5 }
 0x33f   :  { %v4860_v12 = vsel %vm7986_vm9, %v4855_v34, %v4859_v33  ;;  %v4789_v33 = vld [vmem:[#allocation3 + $0x90] sm:$0xf]  ;;  %v9308_v34 = vld [vmem:[#allocation3 + $0x74] sm:$0x1]  ;;  %v4969_v31 = vshll.u32 %v9322_v23, 16 }
 0x340   :  { %v4937_v57 = vrot.slane %v4935_v19, 5  ;;  %v4929_v39 = vrot.slane %v4927_v26, 5  ;;  %v5005_v51 = vshll.u32 %v4789_v33, 16  ;;  %v4955_v16 = vshll.u32 %v9308_v34, 16 }
 0x341   :  { %v4967_v26 = vrot.slane %v4966_v22, 4  ;;  %v5185_v22 = vld [vmem:[#allocation3 + $0x28] sm:$0xe] }
 0x342   :  { %7265 = vmatmul.mubr.msk.bf16.gmra.mrb[4].mxu1 %vm3993_vm3, %v7680_v40  ;;  %v304_v40 = vsel %vm8535_vm2, 0, %v303_v21  ;;  %v4932_v21 = vshrl.u32 %v4779_v44, 16  ;;  %v4988_v44 = vshrl.u32 %v4787_v63, 16  ;;  %v5235_v63 = vrot.slane %v9250_v41, 5 }
 0x343   :  { %7268 = vmatprep.mubr.msk.bf16.mxu1 %vm3993_vm3, %v7681_v45  ;;  %v4871_v45 = vshll.u32 %v9270_v32, 16  ;;  %305 = vst [vmem:[#allocation3 + $0x9c] sm:$0x1] %v304_v40 }
 0x344   :  { %v4934_v43 = vrot.slane %v4932_v21, 4  ;;  %v4957_v21 = vrot.slane %v4955_v16, 5  ;;  %v4990_v19 = vrot.slane %v4988_v44, 4  ;;  %v5186_v16 = vld [vmem:[#allocation3 + $0x30] sm:$0xe] }
 0x345   :  { %v4873_v2 = vrot.slane %v4871_v45, 5  ;;  %v4901_v45 = vrot.slane %v4899_v35, 5 }
 0x347   :  { %v4902_v0 = vsel %vm7986_vm9, %v4897_v37, %v4901_v45  ;;  %v5182_v45 = vld [vmem:[#allocation3 + $0x10] sm:$0xe] }
 0x348   :  { %v6764_v62 = vrot.slane %v5182_v45, 9 }
 0x34a   :  { %7269 = vmatmul.mubr.msk.bf16.gmra.mrb[8].mxu1 %vm3993_vm3, %v7682_v29  ;;  %v4920_v29 = vrot.slane %v4918_v58, 4  ;;  %v9304_v58 = vld [vmem:[%s9630_s3 + $0x18] sm:$0xf] }
 0x34b   :  { %7272 = vmatprep.mubr.msk.bf16.mxu1 %vm3993_vm3, %v7683_v52  ;;  %v5344_v52 = vsel %vm4018_vm4, %v9239_v55, 0  ;;  %v4874_v55 = vsel %vm7986_vm9, %v4869_v47, %v4873_v2  ;;  %v4952_v47 = vor.u32 %v4951_v5, %v4948_v24  ;;  %v4941_v2 = vshll.u32 %v9299_v28, 16 }
 0x34c   :  { %v4924_v17 = vor.u32 %v4923_v9, %v4920_v29  ;;  %v6749_v11 = vcombine.low %v4860_v12, %v4874_v55  ;;  %v9314_v29 = vld [vmem:[#allocation3 + $0x84] sm:$0x1]  ;;  %v5002_v9 = vshrl.u32 %v4789_v33, 16  ;;  %v4938_v12 = vor.u32 %v4937_v57, %v4934_v43 }
 0x34d   :  { %v4953_v55 = vrot.slane %v4952_v47, 4  ;;  %v4971_v5 = vrot.slane %v4969_v31, 5  ;;  %v5011_v33 = vshll.u32 %v9330_v56, 16  ;;  %v5247_v31 = vrot.slane %v9261_v54, 5 }
 0x34e   :  { %v4925_v40 = vrot.slane %v4924_v17, 4  ;;  %v5004_v17 = vrot.slane %v5002_v9, 4  ;;  %v6763_v9 = vrot.slane %v5181_v1, 9  ;;  %v5275_v1 = vrot.slane %v9308_v34, 5 }
 0x34f   :  { %v4958_v37 = vsel %vm7986_vm9, %v4953_v55, %v4957_v21  ;;  %v4972_v43 = vsel %vm7986_vm9, %v4967_v26, %v4971_v5  ;;  %v5013_v47 = vrot.slane %v5011_v33, 5  ;;  %v6765_v55 = vrot.slane %v5183_v18, 9  ;;  %v5187_v26 = vld [vmem:[#allocation3 + $0x38] sm:$0xe] }
 0x350   :  { %v5263_v33 = vrot.slane %v9288_v61, 5 }
 0x352   :  { %7273 = vmatmul.mubr.msk.bf16.gmra.mrb[12].mxu1 %vm3993_vm3, %v7684_v15  ;;  %v4915_v15 = vrot.slane %v4913_v42, 5  ;;  %v4939_v42 = vrot.slane %v4938_v12, 4 }
 0x353   :  { %7278 = vmatprep.mubr.msk.bf16.mxu1 %vm3993_vm3, %v6747_v25  ;;  %v4976_v25 = vrot.slane %v4974_v30, 4  ;;  %v5007_v30 = vrot.slane %v5005_v51, 5  ;;  %v5231_v51 = vrot.slane %v9248_v7, 5  ;;  %v5243_v7 = vrot.slane %v9255_v53, 5 }
 0x354   :  { %v4916_v14 = vsel %vm7986_vm9, %v4911_v3, %v4915_v15 }
 0x355   :  { %v4980_v48 = vor.u32 %v4979_v8, %v4976_v25  ;;  %v5008_v24 = vor.u32 %v5007_v30, %v5004_v17  ;;  %v4994_v8 = vor.u32 %v4993_v36, %v4990_v19  ;;  %v5232_v44 = vsel %vm8236_vm14, %v6763_v9, %v5231_v51  ;;  %v5190_v19 = vld [vmem:[#allocation3 + $0x60] sm:$0xe] }
 0x356   :  { %v5239_v17 = vrot.slane %v9252_v49, 5  ;;  %v6767_v30 = vrot.slane %v5185_v22, 9  ;;  %v5543_v36 = vsel %vm4018_vm4, %v9304_v58, 0  ;;  %v6772_v5 = vrot.slane %v5190_v19, 9  ;;  %v7685_v22 = vld [vmem:[#allocation3 + $0x10] ss:$8 sps:$4 sm:$0xff]  }
 0x357   :  { %v4981_v35 = vrot.slane %v4980_v48, 4  ;;  %v5184_v48 = vld [vmem:[#allocation3 + $0x20] sm:$0xe]  ;;  %v5271_v9 = vrot.slane %v9299_v28, 5  ;;  %v9424_v19 = vld [vmem:[#allocation3 + $0x14] sm:$0x1] }
 0x358   :  { %v5240_v21 = vsel %vm8236_vm14, %v6765_v55, %v5239_v17  ;;  %v5248_v49 = vsel %vm8236_vm14, %v6767_v30, %v5247_v31  ;;  %v7687_v55 = vld [vmem:[#allocation3 + $0x30] ss:$8 sps:$4 sm:$0xff]  }
 0x359   :  { %v5660_v17 = vld [vmem:[#allocation3 + $0x18] sm:$0xf] }
 0x35a   :  { %7279 = vmatmul.mubr.msk.bf16.vlgmr.msra.gmra.mrb[0].mxu1 %vm3993_vm3, %v6748_v38  ;;  %v4888_v38 = vsel %vm7986_vm9, %v4883_v59, %v4887_v6  ;;  %v4983_v6 = vshll.u32 %v9314_v29, 16 }
 0x35b   :  { %7295 = vmatpush3.bf16.msra.mxu1 %v5344_v52  ;;  %7282 = vmatprep.mubr.msk.bf16.mxu1 %vm3993_vm3, %v6749_v11  ;;  %v4930_v52 = vsel %vm7986_vm9, %v4925_v40, %v4929_v39  ;;  %v6750_v13 = vcombine.low %v4888_v38, %v4902_v0  ;;  %v4943_v11 = vrot.slane %v4941_v2, 5  ;;  %v9336_v40 = vld [vmem:[#allocation3 + $0x8c] sm:$0x1]  ;;  %v5009_v39 = vrot.slane %v5008_v24, 4  ;;  %v6813_v24 = vld [vmem:[%s9630_s3 + $0x1c] sm:$0xf] }
 0x35c   :  { %7637 = vmatprep.subr.msk.bf16.mxu1 %vm4018_vm4, %v9304_v58  ;;  %v6751_v10 = vcombine.low %v4916_v14, %v4930_v52  ;;  %v4985_v20 = vrot.slane %v4983_v6, 5  ;;  %v4997_v3 = vshll.u32 %v9336_v40, 16  ;;  %v4995_v0 = vrot.slane %v4994_v8, 4 }
 0x35d   :  { %v4944_v25 = vsel %vm7986_vm9, %v4939_v42, %v4943_v11  ;;  %v5014_v52 = vsel %vm7986_vm9, %v5009_v39, %v5013_v47  ;;  %v5236_v2 = vsel %vm8236_vm14, %v6764_v62, %v5235_v63  ;;  %v6766_v14 = vrot.slane %v5184_v48, 9  ;;  %v5188_v42 = vld [vmem:[#allocation3 + $0x40] sm:$0xe]  ;;  %v5193_v62 = vld [vmem:[#allocation3 + $0x78] sm:$0xe] }
 0x35e   :  { %v4986_v59 = vsel %vm7986_vm9, %v4981_v35, %v4985_v20  ;;  %v6752_v15 = vcombine.low %v4944_v25, %v4958_v37  ;;  %v4999_v38 = vrot.slane %v4997_v3, 5  ;;  %v6768_v6 = vrot.slane %v5186_v16, 9  ;;  %v5189_v37 = vld [vmem:[#allocation3 + $0x58] sm:$0xe]  ;;  %v5191_v3 = vld [vmem:[#allocation3 + $0x68] sm:$0xe] }
 0x35f   :  { %v6753_v57 = vcombine.low %v4972_v43, %v4986_v59  ;;  %v5244_v35 = vsel %vm8236_vm14, %v6766_v14, %v5243_v7  ;;  %v6770_v20 = vrot.slane %v5188_v42, 9  ;;  %v5259_v11 = vrot.slane %v9283_v60, 5  ;;  %v5194_v43 = vld [vmem:[#allocation3 + $0x80] sm:$0xe]  ;;  %v5195_v16 = vld [vmem:[#allocation3 + $0x88] sm:$0xe] }
 0x360   :  { %v5000_v12 = vsel %vm7986_vm9, %v4995_v0, %v4999_v38  ;;  %v5267_v59 = vrot.slane %v9292_v46, 5  ;;  %v6769_v58 = vrot.slane %v5187_v26, 9  ;;  %v5255_v25 = vrot.slane %v9272_v4, 5 }
 0x361   :  { %v6754_v41 = vcombine.low %v5000_v12, %v5014_v52  ;;  %v6771_v8 = vrot.slane %v5189_v37, 9  ;;  %v5260_v60 = vsel %vm8236_vm14, %v6770_v20, %v5259_v11  ;;  %v6776_v63 = vrot.slane %v5194_v43, 9  ;;  %v7689_v37 = vld [vmem:[#allocation3 + $0x60] ss:$8 sps:$4 sm:$0xff]  }
 0x362   :  { %7283 = vmatmul.mubr.msk.bf16.gmra.mrb[4].mxu1 %vm3993_vm3, %v6750_v13  ;;  %v6780_v13 = vcombine.low %v5232_v44, %v5236_v2  ;;  %v5268_v45 = vsel %vm8236_vm14, %v6772_v5, %v5267_v59  ;;  %v5256_v46 = vsel %vm8236_vm14, %v6769_v58, %v5255_v25  ;;  %v5283_v0 = vrot.slane %v9314_v29, 5  ;;  %v5196_v2 = vld [vmem:[#allocation3 + $0x90] sm:$0xe]  ;;  %v9427_v5 = vld [vmem:[#allocation3 + $0x1c] sm:$0x1] }
 0x363   :  { %7286 = vmatprep.mubr.msk.bf16.mxu1 %vm3993_vm3, %v6751_v10  ;;  %v5251_v10 = vrot.slane %v9270_v32, 5  ;;  %v6781_v32 = vcombine.low %v5240_v21, %v5244_v35  ;;  %v5264_v4 = vsel %vm8236_vm14, %v6771_v8, %v5263_v33  ;;  %v6773_v47 = vrot.slane %v5191_v3, 9  ;;  %v5662_v35 = vld [vmem:[#allocation3 + $0x20] sm:$0xf]  ;;  %v5668_v25 = vld [vmem:[#allocation3 + $0x38] sm:$0xf] }
 0x364   :  { %v6784_v39 = vcombine.low %v5264_v4, %v5268_v45  ;;  %v6775_v51 = vrot.slane %v5193_v62, 9  ;;  %v5279_v38 = vrot.slane %v9322_v23, 5  ;;  %v5284_v34 = vsel %vm8236_vm14, %v6776_v63, %v5283_v0  ;;  %v5670_v63 = vld [vmem:[#allocation3 + $0x40] sm:$0xf] }
 0x365   :  { %v5252_v53 = vsel %vm8236_vm14, %v6768_v6, %v5251_v10  ;;  %v5272_v48 = vsel %vm8236_vm14, %v6773_v47, %v5271_v9  ;;  %v6778_v28 = vrot.slane %v5196_v2, 9  ;;  %v5291_v44 = vrot.slane %v9330_v56, 5  ;;  %v7686_v56 = vld [vmem:[#allocation3 + $0x20] ss:$8 sps:$4 sm:$0xff]   ;;  %v5658_v10 = vld [vmem:[#allocation3 + $0x10] sm:$0xf] }
 0x366   :  { %v6782_v54 = vcombine.low %v5248_v49, %v5252_v53  ;;  %v5280_v29 = vsel %vm8236_vm14, %v6775_v51, %v5279_v38  ;;  %v6777_v23 = vrot.slane %v5195_v16, 9  ;;  %v5287_v18 = vrot.slane %v9336_v40, 5  ;;  %v9418_v40 = vld [vmem:[%s9630_s3 + $0x20] sm:$0xf]  ;;  %v5664_v53 = vld [vmem:[#allocation3 + $0x28] sm:$0xf] }
 0x367   :  { %v5965_v6 = vsel %vm4018_vm4, %v6813_v24, 0  ;;  %v5691_v30 = vshrl.u32 %v5658_v10, 16  ;;  %v5694_v31 = vshll.u32 %v5658_v10, 16  ;;  %v5705_v42 = vshrl.u32 %v5660_v17, 16  ;;  %v5672_v38 = vld [vmem:[#allocation3 + $0x48] sm:$0xf] }
 0x368   :  { %v5288_v14 = vsel %vm8236_vm14, %v6777_v23, %v5287_v18  ;;  %v5708_v21 = vshll.u32 %v5660_v17, 16  ;;  %v5719_v49 = vshrl.u32 %v5662_v35, 16  ;;  %v5722_v26 = vshll.u32 %v5662_v35, 16  ;;  %v7691_v16 = vld [vmem:[#allocation3 + $0x80] ss:$8 sps:$4 sm:$0xff]  }
 0x369   :  { %v5733_v20 = vshrl.u32 %v5664_v53, 16  ;;  %v5736_v11 = vshll.u32 %v5664_v53, 16  ;;  %v5700_v59 = vshll.u32 %v9424_v19, 16  ;;  %v5707_v58 = vrot.slane %v5705_v42, 4  ;;  %v5676_v10 = vld [vmem:[#allocation3 + $0x68] sm:$0xf] }
 0x36a   :  { %7287 = vmatmul.mubr.msk.bf16.gmra.mrb[8].mxu1 %vm3993_vm3, %v6752_v15  ;;  %v5192_v15 = vld [vmem:[#allocation3 + $0x70] sm:$0xe]  ;;  %v5710_v33 = vrot.slane %v5708_v21, 5  ;;  %v5721_v45 = vrot.slane %v5719_v49, 4  ;;  %v5778_v23 = vshll.u32 %v5670_v63, 16 }
 0x36b   :  { %7290 = vmatprep.mubr.msk.bf16.mxu1 %vm3993_vm3, %v6753_v57  ;;  %v6783_v57 = vcombine.low %v5256_v46, %v5260_v60  ;;  %v6774_v61 = vrot.slane %v5192_v15, 9  ;;  %v9431_v60 = vld [vmem:[#allocation3 + $0x24] sm:$0x1]  ;;  %v5724_v15 = vrot.slane %v5722_v26, 5  ;;  %v9433_v46 = vld [vmem:[#allocation3 + $0x2c] sm:$0x1] }
 0x36c   :  { %v5735_v43 = vrot.slane %v5733_v20, 4  ;;  %v5728_v62 = vshll.u32 %v9431_v60, 16  ;;  %v5702_v47 = vrot.slane %v5700_v59, 5  ;;  %v5711_v9 = vor.u32 %v5710_v33, %v5707_v58  ;;  %v9444_v53 = vld [vmem:[#allocation3 + $0x3c] sm:$0x1] }
 0x36d   :  { %v5276_v52 = vsel %vm8236_vm14, %v6774_v61, %v5275_v1  ;;  %v5764_v61 = vshll.u32 %v5668_v25, 16  ;;  %v5714_v1 = vshll.u32 %v9427_v5, 16  ;;  %v5742_v51 = vshll.u32 %v9433_v46, 16 }
 0x36e   :  { %v6785_v12 = vcombine.low %v5272_v48, %v5276_v52  ;;  %v7690_v52 = vld [vmem:[#allocation3 + $0x70] ss:$8 sps:$4 sm:$0xff]   ;;  %v5780_v26 = vrot.slane %v5778_v23, 5  ;;  %v5770_v59 = vshll.u32 %v9444_v53, 16 }
 0x36f   :  { %v5716_v18 = vrot.slane %v5714_v1, 5  ;;  %v5744_v35 = vrot.slane %v5742_v51, 5  ;;  %v9461_v1 = vld [vmem:[#allocation3 + $0x6c] sm:$0x1] }
 0x372   :  { %7291 = vmatmul.mubr.msk.bf16.gmra.mrb[12].mxu1 %vm3993_vm3, %v6754_v41  ;;  %v6786_v41 = vcombine.low %v5280_v29, %v5284_v34  ;;  %v5725_v34 = vor.u32 %v5724_v15, %v5721_v45  ;;  %v5674_v29 = vld [vmem:[#allocation3 + $0x60] sm:$0xf] }
 0x373   :  { %7296 = vmatprep.mubr.msk.bf16.mxu1 %vm3993_vm3, %v6780_v13  ;;  %v5292_v13 = vsel %vm8236_vm14, %v6778_v28, %v5291_v44  ;;  %v5766_v28 = vrot.slane %v5764_v61, 5  ;;  %v5775_v44 = vshrl.u32 %v5670_v63, 16  ;;  %v5806_v17 = vshll.u32 %v5674_v29, 16 }
 0x374   :  { %v6787_v7 = vcombine.low %v5288_v14, %v5292_v13  ;;  %v5730_v13 = vrot.slane %v5728_v62, 5  ;;  %v9439_v14 = vld [vmem:[#allocation3 + $0x34] sm:$0x1]  ;;  %v5680_v62 = vld [vmem:[#allocation3 + $0x78] sm:$0xf] }
 0x375   :  { %v5756_v21 = vshll.u32 %v9439_v14, 16  ;;  %v5777_v49 = vrot.slane %v5775_v44, 4  ;;  %v6146_v50 = vrot.slane %v9439_v14, 5  ;;  %v6088_v14 = vld [vmem:[#allocation3 + $0x60] sm:$0xe] }
 0x377   :  { %v5781_v61 = vor.u32 %v5780_v26, %v5777_v49  ;;  %v5758_v63 = vrot.slane %v5756_v21, 5  ;;  %v5686_v26 = vld [vmem:[#allocation3 + $0x90] sm:$0xf] }
 0x379   :  { %v5782_v44 = vrot.slane %v5781_v61, 4  ;;  %v9486_v61 = vld [vmem:[#allocation3 + $0x84] sm:$0x1] }
 0x37a   :  { %7297 = vmatmul.mubr.msk.bf16.vlgmr.msra.gmra.mrb[0].mxu1 %vm3993_vm3, %v6781_v32  ;;  %v5693_v32 = vrot.slane %v5691_v30, 4  ;;  %v5726_v30 = vrot.slane %v5725_v34, 4 }
 0x37b   :  { %7313 = vmatpush3.bf16.msra.mxu1 %v5543_v36  ;;  %7300 = vmatprep.mubr.msk.bf16.mxu1 %vm3993_vm3, %v6782_v54  ;;  %v5696_v36 = vrot.slane %v5694_v31, 5  ;;  %v7688_v54 = vld [vmem:[#allocation3 + $0x40] ss:$8 sps:$4 sm:$0xff]  }
 0x37c   :  { %7638 = vmatprep.subr.msk.bf16.mxu1 %vm4018_vm4, %v6813_v24  ;;  %v5666_v24 = vld [vmem:[#allocation3 + $0x30] sm:$0xf] }
 0x37d   :  { %v5697_v8 = vor.u32 %v5696_v36, %v5693_v32  ;;  %v5747_v4 = vshrl.u32 %v5666_v24, 16  ;;  %v5750_v3 = vshll.u32 %v5666_v24, 16  ;;  %v9447_v36 = vld [vmem:[#allocation3 + $0x44] sm:$0x1] }
 0x37f   :  { %v5698_v0 = vrot.slane %v5697_v8, 4  ;;  %v5749_v48 = vrot.slane %v5747_v4, 4  ;;  %v7692_v8 = vld [vmem:[#allocation3 + $0x90] ss:$8 sps:$4 sm:$0xff]   ;;  %v5731_v4 = vsel %vm7986_vm9, %v5726_v30, %v5730_v13  ;;  %v5684_v13 = vld [vmem:[#allocation3 + $0x88] sm:$0xf] }
 0x380   :  { %v5876_v21 = vshll.u32 %v5684_v13, 16 }
 0x382   :  { %7301 = vmatmul.mubr.msk.bf16.gmra.mrb[4].mxu1 %vm3993_vm3, %v6783_v57  ;;  %v5738_v57 = vrot.slane %v5736_v11, 5  ;;  %v5817_v11 = vshrl.u32 %v5676_v10, 16 }
 0x383   :  { %7304 = vmatprep.mubr.msk.bf16.mxu1 %vm3993_vm3, %v6784_v39  ;;  %v5761_v39 = vshrl.u32 %v5668_v25, 16  ;;  %v5808_v25 = vrot.slane %v5806_v17, 5 }
 0x384   :  { %v5739_v2 = vor.u32 %v5738_v57, %v5735_v43  ;;  %v5784_v43 = vshll.u32 %v9447_v36, 16  ;;  %v9455_v57 = vld [vmem:[#allocation3 + $0x64] sm:$0x1] }
 0x385   :  { %v5812_v23 = vshll.u32 %v9455_v57, 16 }
 0x386   :  { %v5740_v31 = vrot.slane %v5739_v2, 4  ;;  %v5682_v2 = vld [vmem:[#allocation3 + $0x80] sm:$0xf] }
 0x387   :  { %v5814_v49 = vrot.slane %v5812_v23, 5 }
 0x388   :  { %v5745_v45 = vsel %vm7986_vm9, %v5740_v31, %v5744_v35 }
 0x38a   :  { %7305 = vmatmul.mubr.msk.bf16.gmra.mrb[8].mxu1 %vm3993_vm3, %v6785_v12  ;;  %v5752_v12 = vrot.slane %v5750_v3, 5  ;;  %v6243_v3 = vsel %vm4018_vm4, %v9418_v40, 0 }
 0x38b   :  { %7308 = vmatprep.mubr.msk.bf16.mxu1 %vm3993_vm3, %v6786_v41  ;;  %v5763_v41 = vrot.slane %v5761_v39, 4 }
 0x38c   :  { %v5753_v42 = vor.u32 %v5752_v12, %v5749_v48  ;;  %v5786_v12 = vrot.slane %v5784_v43, 5 }
 0x38d   :  { %v5767_v32 = vor.u32 %v5766_v28, %v5763_v41  ;;  %v5848_v41 = vshll.u32 %v5680_v62, 16 }
 0x38e   :  { %v5754_v15 = vrot.slane %v5753_v42, 4  ;;  %v5873_v42 = vshrl.u32 %v5684_v13, 16 }
 0x38f   :  { %v5768_v39 = vrot.slane %v5767_v32, 4  ;;  %v5850_v35 = vrot.slane %v5848_v41, 5 }
 0x390   :  { %v5759_v48 = vsel %vm7986_vm9, %v5754_v15, %v5758_v63  ;;  %v9484_v15 = vld [vmem:[#allocation3 + $0x7c] sm:$0x1] }
 0x392   :  { %7309 = vmatmul.mubr.msk.bf16.gmra.mrb[12].mxu1 %vm3993_vm3, %v6787_v7  ;;  %v5789_v7 = vshrl.u32 %v5672_v38, 16 }
 0x393   :  { %7314 = vmatprep.mubr.msk.bf16.mxu1 %vm3993_vm3, %v7685_v22  ;;  %v5792_v22 = vshll.u32 %v5672_v38, 16  ;;  %v6815_v38 = vcombine.low %v5731_v4, %v5745_v45  ;;  %v5875_v4 = vrot.slane %v5873_v42, 4 }
 0x395   :  { %v5794_v20 = vrot.slane %v5792_v22, 5 }
 0x39a   :  { %7315 = vmatmul.mubr.msk.bf16.vlgmr.msra.gmra.mrb[0].mxu1 %vm3993_vm3, %v7686_v56  ;;  %v5703_v56 = vsel %vm7986_vm9, %v5698_v0, %v5702_v47  ;;  %v9464_v0 = vld [vmem:[#allocation3 + $0x4c] sm:$0x1] }
 0x39b   :  { %7331 = vmatpush3.bf16.msra.mxu1 %v5965_v6  ;;  %7318 = vmatprep.mubr.msk.bf16.mxu1 %vm3993_vm3, %v7687_v55  ;;  %v5712_v6 = vrot.slane %v5711_v9, 4  ;;  %v5803_v55 = vshrl.u32 %v5674_v29, 16  ;;  %v5819_v9 = vrot.slane %v5817_v11, 4  ;;  %v5798_v34 = vshll.u32 %v9464_v0, 16  ;;  %v5678_v29 = vld [vmem:[#allocation3 + $0x70] sm:$0xf] }
 0x39c   :  { %7639 = vmatprep.subr.msk.bf16.mxu1 %vm4018_vm4, %v9418_v40  ;;  %v5831_v17 = vshrl.u32 %v5678_v29, 16  ;;  %v5834_v30 = vshll.u32 %v5678_v29, 16  ;;  %v5868_v29 = vshll.u32 %v9486_v61, 16 }
 0x39d   :  { %v5717_v24 = vsel %vm7986_vm9, %v5712_v6, %v5716_v18  ;;  %v5805_v58 = vrot.slane %v5803_v55, 4  ;;  %v5826_v18 = vshll.u32 %v9461_v1, 16  ;;  %v5862_v6 = vshll.u32 %v5682_v2, 16 }
 0x39e   :  { %v6814_v33 = vcombine.low %v5703_v56, %v5717_v24  ;;  %v5859_v56 = vshrl.u32 %v5682_v2, 16  ;;  %v5688_v24 = vld [vmem:[#allocation3 + $0x98] sm:$0xf]  ;;  %v9492_v2 = vld [vmem:[#allocation3 + $0x8c] sm:$0x1] }
 0x39f   :  { %v5809_v40 = vor.u32 %v5808_v25, %v5805_v58  ;;  %v9480_v25 = vld [vmem:[#allocation3 + $0x74] sm:$0x1]  ;;  %v5901_v63 = vshrl.u32 %v5688_v24, 16  ;;  %v5882_v13 = vshll.u32 %v9492_v2, 16 }
 0x3a0   :  { %v5861_v11 = vrot.slane %v5859_v56, 4  ;;  %v9498_v56 = vld [vmem:[#allocation3 + $0x94] sm:$0x1] }
 0x3a1   :  { %v5810_v55 = vrot.slane %v5809_v40, 4  ;;  %v5854_v40 = vshll.u32 %v9484_v15, 16 }
 0x3a2   :  { %7319 = vmatmul.mubr.msk.bf16.gmra.mrb[4].mxu1 %vm3993_vm3, %v7688_v54  ;;  %v5791_v54 = vrot.slane %v5789_v7, 4 }
 0x3a3   :  { %7322 = vmatprep.mubr.msk.bf16.mxu1 %vm3993_vm3, %v7689_v37  ;;  %v5820_v37 = vshll.u32 %v5676_v10, 16  ;;  %v5800_v10 = vrot.slane %v5798_v34, 5  ;;  %v5815_v45 = vsel %vm7986_vm9, %v5810_v55, %v5814_v49 }
 0x3a4   :  { %v5795_v47 = vor.u32 %v5794_v20, %v5791_v54  ;;  %v5787_v54 = vsel %vm7986_vm9, %v5782_v44, %v5786_v12  ;;  %v5828_v20 = vrot.slane %v5826_v18, 5  ;;  %v5903_v44 = vrot.slane %v5901_v63, 4 }
 0x3a5   :  { %v5822_v51 = vrot.slane %v5820_v37, 5  ;;  %v5864_v37 = vrot.slane %v5862_v6, 5 }
 0x3a6   :  { %v5796_v7 = vrot.slane %v5795_v47, 4  ;;  %v5904_v47 = vshll.u32 %v5688_v24, 16 }
 0x3a7   :  { %v5823_v22 = vor.u32 %v5822_v51, %v5819_v9  ;;  %v5840_v9 = vshll.u32 %v9480_v25, 16  ;;  %v5865_v51 = vor.u32 %v5864_v37, %v5861_v11 }
 0x3a8   :  { %v5906_v23 = vrot.slane %v5904_v47, 5  ;;  %v6083_v47 = vld [vmem:[#allocation3 + $0x28] sm:$0xe] }
 0x3a9   :  { %v5824_v58 = vrot.slane %v5823_v22, 4  ;;  %v5866_v18 = vrot.slane %v5865_v51, 4  ;;  %v5856_v22 = vrot.slane %v5854_v40, 5  ;;  %v5842_v6 = vrot.slane %v5840_v9, 5  ;;  %v6084_v9 = vld [vmem:[#allocation3 + $0x30] sm:$0xe] }
 0x3aa   :  { %7323 = vmatmul.mubr.msk.bf16.gmra.mrb[8].mxu1 %vm3993_vm3, %v7690_v52  ;;  %v5772_v52 = vrot.slane %v5770_v59, 5  ;;  %v5801_v59 = vsel %vm7986_vm9, %v5796_v7, %v5800_v10  ;;  %v5870_v10 = vrot.slane %v5868_v29, 5  ;;  %v6085_v40 = vld [vmem:[#allocation3 + $0x38] sm:$0xe]  ;;  %v6138_v29 = vrot.slane %v9431_v60, 5 }
 0x3ab   :  { %7326 = vmatprep.mubr.msk.bf16.mxu1 %vm3993_vm3, %v7691_v16  ;;  %v5845_v16 = vshrl.u32 %v5680_v62, 16  ;;  %v5890_v62 = vshll.u32 %v5686_v26, 16 }
 0x3ac   :  { %v5773_v28 = vsel %vm7986_vm9, %v5768_v39, %v5772_v52  ;;  %v5878_v39 = vrot.slane %v5876_v21, 5  ;;  %v5829_v52 = vsel %vm7986_vm9, %v5824_v58, %v5828_v20  ;;  %v5871_v21 = vsel %vm7986_vm9, %v5866_v18, %v5870_v10 }
 0x3ad   :  { %v5847_v31 = vrot.slane %v5845_v16, 4  ;;  %v6816_v32 = vcombine.low %v5759_v48, %v5773_v28  ;;  %v6818_v48 = vcombine.low %v5815_v45, %v5829_v52  ;;  %v5892_v28 = vrot.slane %v5890_v62, 5 }
 0x3ae   :  { %v5879_v16 = vor.u32 %v5878_v39, %v5875_v4  ;;  %v6130_v45 = vrot.slane %v9424_v19, 5  ;;  %v6134_v39 = vrot.slane %v9427_v5, 5  ;;  %v6142_v5 = vrot.slane %v9433_v46, 5 }
 0x3af   :  { %v5851_v43 = vor.u32 %v5850_v35, %v5847_v31  ;;  %v5907_v35 = vor.u32 %v5906_v23, %v5903_v44  ;;  %v6086_v44 = vld [vmem:[#allocation3 + $0x40] sm:$0xe]  ;;  %v6087_v23 = vld [vmem:[#allocation3 + $0x48] sm:$0xe]  ;;  %v6158_v10 = vrot.slane %v9464_v0, 5 }
 0x3b0   :  { %v5880_v55 = vrot.slane %v5879_v16, 4  ;;  %v6835_v16 = vrot.slane %v6085_v40, 9  ;;  %v6836_v60 = vrot.slane %v6086_v44, 9 }
 0x3b1   :  { %v5852_v12 = vrot.slane %v5851_v43, 4 }
 0x3b2   :  { %7327 = vmatmul.mubr.msk.bf16.gmra.mrb[12].mxu1 %vm3993_vm3, %v7692_v8  ;;  %v5833_v8 = vrot.slane %v5831_v17, 4  ;;  %v9500_v17 = vld [vmem:[#allocation3 + $0x9c] sm:$0x1] }
 0x3b3   :  { %7332 = vmatprep.mubr.msk.bf16.mxu1 %vm3993_vm3, %v6814_v33  ;;  %v5836_v33 = vrot.slane %v5834_v30, 5  ;;  %v5857_v30 = vsel %vm7986_vm9, %v5852_v12, %v5856_v22  ;;  %v5910_v42 = vshll.u32 %v9500_v17, 16 }
 0x3b5   :  { %v5837_v34 = vor.u32 %v5836_v33, %v5833_v8  ;;  %v5912_v58 = vrot.slane %v5910_v42, 5  ;;  %v6081_v8 = vld [vmem:[#allocation3 + $0x18] sm:$0xe]  ;;  %v6166_v42 = vrot.slane %v9461_v1, 5  ;;  %v6174_v1 = vrot.slane %v9484_v15, 5 }
 0x3b6   :  { %v6831_v4 = vrot.slane %v6081_v8, 9  ;;  %v6170_v8 = vrot.slane %v9480_v25, 5 }
 0x3b7   :  { %v5838_v7 = vrot.slane %v5837_v34, 4  ;;  %v6833_v34 = vrot.slane %v6083_v47, 9  ;;  %v6186_v47 = vrot.slane %v9498_v56, 5 }
 0x3b8   :  { %v6135_v19 = vsel %vm8236_vm14, %v6831_v4, %v6134_v39  ;;  %v6094_v4 = vld [vmem:[#allocation3 + $0x90] sm:$0xe]  ;;  %v6095_v39 = vld [vmem:[#allocation3 + $0x98] sm:$0xe] }
 0x3b9   :  { %v5843_v49 = vsel %vm7986_vm9, %v5838_v7, %v5842_v6  ;;  %v6837_v6 = vrot.slane %v6087_v23, 9 }
 0x3ba   :  { %7333 = vmatmul.mubr.msk.bf16.vlgmr.msra.gmra.mrb[0].mxu1 %vm3993_vm3, %v6815_v38  ;;  %v6817_v38 = vcombine.low %v5787_v54, %v5801_v59  ;;  %v6080_v54 = vld [vmem:[#allocation3 + $0x10] sm:$0xe]  ;;  %v6819_v20 = vcombine.low %v5843_v49, %v5857_v30  ;;  %v5908_v59 = vrot.slane %v5907_v35, 4  ;;  %v6838_v30 = vrot.slane %v6088_v14, 9  ;;  %v6092_v49 = vld [vmem:[#allocation3 + $0x80] sm:$0xe] }
 0x3bb   :  { %7349 = vmatpush3.bf16.msra.mxu1 %v6243_v3  ;;  %7336 = vmatprep.mubr.msk.bf16.mxu1 %vm3993_vm3, %v6816_v32  ;;  %v5887_v3 = vshrl.u32 %v5686_v26, 16  ;;  %v5884_v32 = vrot.slane %v5882_v13, 5  ;;  %v5896_v26 = vshll.u32 %v9498_v56, 16  ;;  %v6830_v33 = vrot.slane %v6080_v54, 9  ;;  %v6090_v54 = vld [vmem:[#allocation3 + $0x70] sm:$0xe] }
 0x3bc   :  { %v5913_v62 = vsel %vm7986_vm9, %v5908_v59, %v5912_v58  ;;  %v6178_v59 = vrot.slane %v9486_v61, 5  ;;  %v6840_v58 = vrot.slane %v6090_v54, 9  ;;  %v9578_v56 = vld [vmem:[%s9631_s4] ss:$0 sm:$0xff]  ;;  %s7747_s4 = smov [#allocation7]  }
 0x3bd   :  { %v5889_v41 = vrot.slane %v5887_v3, 4  ;;  %v5885_v11 = vsel %vm7986_vm9, %v5880_v55, %v5884_v32  ;;  %v5898_v43 = vrot.slane %v5896_v26, 5  ;;  %v6131_v63 = vsel %vm8236_vm14, %v6830_v33, %v6130_v45  ;;  %v6089_v55 = vld [vmem:[#allocation3 + $0x68] sm:$0xe]  ;;  %v6091_v32 = vld [vmem:[#allocation3 + $0x78] sm:$0xe] }
 0x3be   :  { %v6820_v37 = vcombine.low %v5871_v21, %v5885_v11  ;;  %v6847_v52 = vcombine.low %v6131_v63, %v6135_v19  ;;  %v6839_v35 = vrot.slane %v6089_v55, 9  ;;  %v6841_v11 = vrot.slane %v6091_v32, 9  ;;  %s6434_s20 = sshll.u32 %s7747_s4, 4  ;;  %s6435_s20 = int_to_ptr.vmem [resolvable:$true] %s6434_s20 }
 0x3bf   :  { %v5893_v31 = vor.u32 %v5892_v28, %v5889_v41  ;;  %v6150_v41 = vrot.slane %v9444_v53, 5  ;;  %v6143_v28 = vsel %vm8236_vm14, %v6833_v34, %v6142_v5  ;;  %v6154_v53 = vrot.slane %v9447_v36, 5  ;;  %s7716_s21 = scalar_lea.vmem %s6435_s20, 1024  ;;  %p7721_p9 = scmp.lt.s32.totalorder %s6435_s20, %s6435_s20 }
 0x3c0   :  { %v6159_v36 = vsel %vm8236_vm14, %v6837_v6, %v6158_v10  ;;  %v6182_v45 = vrot.slane %v9492_v2, 5  ;;  %v6844_v63 = vrot.slane %v6094_v4, 9  ;;  %v6845_v2 = vrot.slane %v6095_v39, 9  ;;  %p7717_p8 = scmp.ne.s32.totalorder %s6435_s20, %s7716_s21  ;;  %p7722_p10 = scmp.lt.s32.totalorder %s7716_s21, %s7716_s21 }
 0x3c1   :  { %v5894_v24 = vrot.slane %v5893_v31, 4  ;;  %v6151_v7 = vsel %vm8236_vm14, %v6835_v16, %v6150_v41  ;;  %v6162_v31 = vrot.slane %v9455_v57, 5  ;;  %v6155_v21 = vsel %vm8236_vm14, %v6836_v60, %v6154_v53 }
 0x3c2   :  { %7337 = vmatmul.mubr.msk.bf16.gmra.mrb[4].mxu1 %vm3993_vm3, %v6817_v38  ;;  %v6082_v38 = vld [vmem:[#allocation3 + $0x20] sm:$0xe]  ;;  %v6850_v26 = vcombine.low %v6155_v21, %v6159_v36  ;;  %v6167_v57 = vsel %vm8236_vm14, %v6839_v35, %v6166_v42  ;;  %p7723_p11 = por %p7722_p10, %p7721_p9 }
 0x3c3   :  { %7340 = vmatprep.mubr.msk.bf16.mxu1 %vm3993_vm3, %v6818_v48  ;;  %v5899_v3 = vsel %vm7986_vm9, %v5894_v24, %v5898_v43  ;;  %v6834_v48 = vrot.slane %v6084_v9, 9  ;;  %v6832_v12 = vrot.slane %v6082_v38, 9  ;;  %v6163_v0 = vsel %vm8236_vm14, %v6838_v30, %v6162_v31 }
 0x3c4   :  { %v6821_v51 = vcombine.low %v5899_v3, %v5913_v62  ;;  %v6842_v24 = vrot.slane %v6092_v49, 9  ;;  %v6175_v43 = vsel %vm8236_vm14, %v6841_v11, %v6174_v1  ;;  %v6171_v3 = vsel %vm8236_vm14, %v6840_v58, %v6170_v8  ;;  %p7724_p12 = pnand %p7723_p11, %p7717_p8 }
 0x3c5   :  { %v6147_v46 = vsel %vm8236_vm14, %v6834_v48, %v6146_v50  ;;  %v6139_v18 = vsel %vm8236_vm14, %v6832_v12, %v6138_v29  ;;  %v6852_v61 = vcombine.low %v6171_v3, %v6175_v43  ;;  %v6190_v9 = vrot.slane %v9500_v17, 5 }
 0x3c6   :  { %v6848_v13 = vcombine.low %v6139_v18, %v6143_v28  ;;  %v6849_v22 = vcombine.low %v6147_v46, %v6151_v7  ;;  %v6179_v15 = vsel %vm8236_vm14, %v6842_v24, %v6178_v59 }
 0x3c7   :  { %v6191_v19 = vsel %vm8236_vm14, %v6845_v2, %v6190_v9 }
 0x3ca   :  { %7341 = vmatmul.mubr.msk.bf16.gmra.mrb[8].mxu1 %vm3993_vm3, %v6819_v20  ;;  %v6851_v20 = vcombine.low %v6163_v0, %v6167_v57 }
 0x3cb   :  { %7344 = vmatprep.mubr.msk.bf16.mxu1 %vm3993_vm3, %v6820_v37  ;;  %v6093_v37 = vld [vmem:[#allocation3 + $0x88] sm:$0xe] }
 0x3cc   :  { %v6843_v33 = vrot.slane %v6093_v37, 9 }
 0x3ce   :  { %v6183_v62 = vsel %vm8236_vm14, %v6843_v33, %v6182_v45 }
 0x3cf   :  { %v6853_v25 = vcombine.low %v6179_v15, %v6183_v62 }
 0x3d2   :  { %7345 = vmatmul.mubr.msk.bf16.gmra.mrb[12].mxu1 %vm3993_vm3, %v6821_v51  ;;  %v6187_v51 = vsel %vm8236_vm14, %v6844_v63, %v6186_v47 }
 0x3d3   :  { %7350 = vmatprep.mubr.msk.bf16.mxu1 %vm3993_vm3, %v6847_v52  ;;  %v6854_v38 = vcombine.low %v6187_v51, %v6191_v19 }
 0x3da   :  { %7351 = vmatmul.mubr.msk.bf16.vlgmr.msra.gmra.mrb[0].mxu1 %vm3993_vm3, %v6848_v13 }
 0x3db   :  { %7354 = vmatprep.mubr.msk.bf16.mxu1 %vm3993_vm3, %v6849_v22 }
 0x3e2   :  { %7355 = vmatmul.mubr.msk.bf16.gmra.mrb[4].mxu1 %vm3993_vm3, %v6850_v26 }
 0x3e3   :  { %7358 = vmatprep.mubr.msk.bf16.mxu1 %vm3993_vm3, %v6851_v20 }
 0x3ea   :  { %7359 = vmatmul.mubr.msk.bf16.gmra.mrb[8].mxu1 %vm3993_vm3, %v6852_v61 }
 0x3eb   :  { %7362 = vmatprep.mubr.msk.bf16.mxu1 %vm3993_vm3, %v6853_v25 }
 0x3f2   :  { %7363 = vmatmul.mubr.msk.bf16.gmra.mrb[12].mxu1 %vm3993_vm3, %v6854_v38 }
 0x4ad   :  { %v7352_v52 = vpop.f32.mrb[0].mxu1 }
 0x4ae   :  { %v6367_v17 = vadd.f32 %v7352_v52, %v9578_v56  ;;  %v6279_v34 = vpop.f32.mrb[1].mxu1 }
 0x4af   :  { %v6365_v5 = vadd.f32 %v9578_v56, %v6279_v34  ;;  %v7353_v40 = vpop.f32.mrb[2].mxu1 }
 0x4b0   :  { %v6383_v48 = vmax.f32 %v6367_v17, 0.0  ;;  %v6368_v50 = vadd.f32 %v7353_v40, %v9578_v56  ;;  %v6282_v27 = vpop.f32.mrb[3].mxu1 }
 0x4b1   :  { %v6381_v12 = vmax.f32 %v6365_v5, 0.0  ;;  %v6366_v29 = vadd.f32 %v9578_v56, %v6282_v27 }
 0x4b2   :  { %v6399_v16 = vpack.c.bf16 %v6383_v48, %v6383_v48  ;;  %v6384_v41 = vmax.f32 %v6368_v50, 0.0 }
 0x4b3   :  { %v6397_v28 = vpack.c.bf16 %v6381_v12, %v6381_v12  ;;  %v6382_v44 = vmax.f32 %v6366_v29, 0.0 }
 0x4b4   :  { %6415 = vst.msk [vmem:[#allocation7 + $0x8] sm:$0xf] %vm172_vm15, %v6399_v16  ;;  %v6400_v46 = vpack.c.bf16 %v6384_v41, %v6384_v41 }
 0x4b5   :  { %6413 = vst.msk [vmem:[#allocation7] sm:$0xf] %vm172_vm15, %v6397_v28  ;;  %v6398_v23 = vpack.c.bf16 %v6382_v44, %v6382_v44  ;;  %v7356_v18 = vpop.f32.mrb[4].mxu1 }
 0x4b6   :  { %6416 = vst.msk [vmem:[#allocation7 + $0xc] sm:$0xf] %vm172_vm15, %v6400_v46  ;;  %v6371_v14 = vadd.f32 %v7356_v18, %v9578_v56  ;;  %v6295_v13 = vpop.f32.mrb[5].mxu1 }
 0x4b7   :  { %6414 = vst.msk [vmem:[#allocation7 + $0x4] sm:$0xf] %vm172_vm15, %v6398_v23  ;;  %v6369_v7 = vadd.f32 %v9578_v56, %v6295_v13  ;;  %v7357_v60 = vpop.f32.mrb[6].mxu1 }
 0x4b8   :  { %v6387_v22 = vmax.f32 %v6371_v14, 0.0  ;;  %v6372_v53 = vadd.f32 %v7357_v60, %v9578_v56  ;;  %v6298_v6 = vpop.f32.mrb[7].mxu1 }
 0x4b9   :  { %v6385_v10 = vmax.f32 %v6369_v7, 0.0  ;;  %v6370_v55 = vadd.f32 %v9578_v56, %v6298_v6 }
 0x4ba   :  { %v6403_v30 = vpack.c.bf16 %v6387_v22, %v6387_v22  ;;  %v6388_v31 = vmax.f32 %v6372_v53, 0.0 }
 0x4bb   :  { %v6401_v35 = vpack.c.bf16 %v6385_v10, %v6385_v10  ;;  %v6386_v42 = vmax.f32 %v6370_v55, 0.0 }
 0x4bc   :  { %6419 = vst.msk [vmem:[#allocation7 + $0x18] sm:$0xf] %vm172_vm15, %v6403_v30  ;;  %v6404_v21 = vpack.c.bf16 %v6388_v31, %v6388_v31 }
 0x4bd   :  { %6417 = vst.msk [vmem:[#allocation7 + $0x10] sm:$0xf] %vm172_vm15, %v6401_v35  ;;  %v6402_v36 = vpack.c.bf16 %v6386_v42, %v6386_v42  ;;  %v7360_v0 = vpop.f32.mrb[8].mxu1 }
 0x4be   :  { %6420 = vst.msk [vmem:[#allocation7 + $0x1c] sm:$0xf] %vm172_vm15, %v6404_v21  ;;  %v6375_v32 = vadd.f32 %v7360_v0, %v9578_v56  ;;  %v6311_v49 = vpop.f32.mrb[9].mxu1 }
 0x4bf   :  { %6418 = vst.msk [vmem:[#allocation7 + $0x14] sm:$0xf] %vm172_vm15, %v6402_v36  ;;  %v6373_v26 = vadd.f32 %v9578_v56, %v6311_v49  ;;  %v7361_v57 = vpop.f32.mrb[10].mxu1 }
 0x4c0   :  { %v6391_v54 = vmax.f32 %v6375_v32, 0.0  ;;  %v6376_v20 = vadd.f32 %v7361_v57, %v9578_v56  ;;  %v6314_v11 = vpop.f32.mrb[11].mxu1 }
 0x4c1   :  { %v6389_v1 = vmax.f32 %v6373_v26, 0.0  ;;  %v6374_v37 = vadd.f32 %v9578_v56, %v6314_v11 }
 0x4c2   :  { %v6407_v24 = vpack.c.bf16 %v6391_v54, %v6391_v54  ;;  %v6392_v59 = vmax.f32 %v6376_v20, 0.0 }
 0x4c3   :  { %v6405_v58 = vpack.c.bf16 %v6389_v1, %v6389_v1  ;;  %v6390_v8 = vmax.f32 %v6374_v37, 0.0 }
 0x4c4   :  { %6423 = vst.msk [vmem:[#allocation7 + $0x28] sm:$0xf] %vm172_vm15, %v6407_v24  ;;  %v6408_v33 = vpack.c.bf16 %v6392_v59, %v6392_v59 }
 0x4c5   :  { %6421 = vst.msk [vmem:[#allocation7 + $0x20] sm:$0xf] %vm172_vm15, %v6405_v58  ;;  %v6406_v45 = vpack.c.bf16 %v6390_v8, %v6390_v8  ;;  %v7364_v43 = vpop.f32.mrb[12].mxu1 }
 0x4c6   :  { %6424 = vst.msk [vmem:[#allocation7 + $0x2c] sm:$0xf] %vm172_vm15, %v6408_v33  ;;  %v6379_v4 = vadd.f32 %v7364_v43, %v9578_v56  ;;  %v6327_v15 = vpop.f32.mrb[13].mxu1 }
 0x4c7   :  { %6422 = vst.msk [vmem:[#allocation7 + $0x24] sm:$0xf] %vm172_vm15, %v6406_v45  ;;  %v6377_v39 = vadd.f32 %v9578_v56, %v6327_v15  ;;  %v7365_v3 = vpop.f32.mrb[14].mxu1 }
 0x4c8   :  { %v6395_v61 = vmax.f32 %v6379_v4, 0.0  ;;  %v6380_v62 = vadd.f32 %v7365_v3, %v9578_v56  ;;  %v6330_v63 = vpop.f32.mrb[15].mxu1 }
 0x4c9   :  { %v6393_v25 = vmax.f32 %v6377_v39, 0.0  ;;  %v6378_v47 = vadd.f32 %v9578_v56, %v6330_v63 }
 0x4ca   :  { %v6411_v2 = vpack.c.bf16 %v6395_v61, %v6395_v61  ;;  %v6396_v9 = vmax.f32 %v6380_v62, 0.0 }
 0x4cb   :  { %v6409_v51 = vpack.c.bf16 %v6393_v25, %v6393_v25  ;;  %v6394_v19 = vmax.f32 %v6378_v47, 0.0 }
 0x4cc   :  { %6427 = vst.msk [vmem:[#allocation7 + $0x38] sm:$0xf] %vm172_vm15, %v6411_v2  ;;  %v6412_v38 = vpack.c.bf16 %v6396_v9, %v6396_v9 }
 0x4cd   :  { %6425 = vst.msk [vmem:[#allocation7 + $0x30] sm:$0xf] %vm172_vm15, %v6409_v51  ;;  %v6410_v52 = vpack.c.bf16 %v6394_v19, %v6394_v19 }
 0x4ce   :  { %6428 = vst.msk [vmem:[#allocation7 + $0x3c] sm:$0xf] %vm172_vm15, %v6412_v38 }
 0x4cf   :  { %6426 = vst.msk [vmem:[#allocation7 + $0x34] sm:$0xf] %vm172_vm15, %v6410_v52 }
 0x4d0   :  { %7727 = shalt.err (!%p7724_p12)
}
 0x4d1   :  { %s7728_s24 = scalar_lea.hbm %s9632_s5, 1024 }
 0x4d2   :  { %p7729_p13 = scmp.ne.s32.totalorder %s9632_s5, %s7728_s24  ;;  %p7732_p0 = scmp.lt.u32.totalorder %s7728_s24, %s9632_s5 }
 0x4d4   :  { %p7734_p1 = pnand %p7732_p0, %p7729_p13 }
 0x4d6   :  { %7737 = shalt.err (!%p7734_p1)
}
 0x4d7   :  { %6440 = dma.vmem_to_hbm [thread:$0]  %s6435_s20, 1024, %s9632_s5, [#allocation6], %s7743_s28, %s7743_s28, %s7744_s29  }
 0x4d8   :  { %7740 = dma.done.wait [#allocation6], 1024  }
 0x4d9   :  { %7741 = vsyncadd [#allocation6], 4294966272 }
 0x4da   :  { %6444 = vsyncpa [#allocation5], 1 }
 0x4db   :  { %6445 = vsyncpa [#allocation6], 1 }

</bundles_post_ra>
